<compile_context>
chip_gen: v7x
topology: tpu7x:2x2x1
jax: 0.10.0
libtpu: 0.0.40
codegen_flags: <defaults>
</compile_context>

<pallas_src>
import jax
import jax.numpy as jnp
from jax.experimental import pallas as pl
from jax.experimental.pallas import tpu as pltpu

_BN_EPS = 1e-5
_SQRT_2_OVER_PI = 0.7978845608028654


def _gelu_tanh(x):
    # tanh-approximate GELU (one EUP tanh per element); |err| vs exact erf GELU < ~3e-4.
    return 0.5 * x * (1.0 + jnp.tanh(_SQRT_2_OVER_PI * (x + 0.044715 * x * x * x)))


# ------------- fused Pallas kernel: conv+BN+GELU -> conv+BN+GELU -> MaxPool2d(2) -------------

def unet_down_kernel(x_ref, w1_ref, b1_ref, w2_ref, b2_ref, o_ref,
                     y1p_ref, cat_ref, y2_ref):
    # x_ref  : (B, H, W, K1)        bf16  conv1 3x3 taps pre-concatenated along channels
    # w1_ref : (K1, Cf)             bf16  conv1 weights (tap-major), BN1 folded
    # b1_ref : (1, Cf)              f32   conv1 bias with BN1 folded
    # w2_ref : (9*Cf, Cf)           bf16  conv2 weights (tap-major), BN2 folded
    # b2_ref : (1, Cf)              f32   conv2 bias with BN2 folded
    # o_ref  : (B, H//2, W//2, Cf)  f32   pooled output
    # y1p_ref: (B, H+2, W+32, Cf)   bf16  scratch: zero-rim-padded conv1 activations
    #                                      (interior rows 1..H, columns 16..16+W-1)
    # cat_ref: (B*H*W, 9*Cf)        bf16  scratch: conv2 taps concatenated along K
    # y2_ref : (B, H, W, Cf)        f32   scratch: conv2 activations (pool input)
    b, h, w, k1 = x_ref.shape
    cf = o_ref.shape[3]
    ho, wo = h // 2, w // 2
    m = b * h * w

    # ---- conv1 (+ folded BN1): ONE MXU matmul, f32 accumulation, tanh GELU ----
    y1 = _gelu_tanh(jnp.dot(x_ref[...].reshape(m, k1), w1_ref[...],
                            preferred_element_type=jnp.float32) + b1_ref[...])   # (m, cf) f32

    # ---- stage bf16 conv1 activations with a zero rim for conv2's halo reads ----
    # Only the rim that conv2 actually reads (cols 15..16+W) is zeroed each step; the
    # interior store at column offset 16 is bf16-sublane-tile aligned.
    zrow = jnp.zeros((b, 1, w + 2, cf), jnp.bfloat16)
    zcol = jnp.zeros((b, h, 1, cf), jnp.bfloat16)
    y1p_ref[:, pl.ds(0, 1), pl.ds(15, w + 2), :] = zrow            # top halo row
    y1p_ref[:, pl.ds(h + 1, 1), pl.ds(15, w + 2), :] = zrow        # bottom halo row
    y1p_ref[:, pl.ds(1, h), pl.ds(15, 1), :] = zcol                # left halo column
    y1p_ref[:, pl.ds(1, h), pl.ds(16 + w, 1), :] = zcol            # right halo column
    y1p_ref[:, pl.ds(1, h), pl.ds(16, w), :] = (
        y1.astype(jnp.bfloat16).reshape(b, h, w, cf))              # aligned interior store

    # ---- build conv2's K-concatenated operand: tap t at lane offset t*Cf (aligned) ----
    for tap in range(9):
        di, dj = tap // 3, tap % 3
        cat_ref[:, pl.ds(tap * cf, cf)] = (
            y1p_ref[:, pl.ds(di, h), pl.ds(15 + dj, w), :].reshape(m, cf))

    # ---- conv2 (+ folded BN2): ONE MXU matmul ----
    y2 = _gelu_tanh(jnp.dot(cat_ref[...], w2_ref[...],
                            preferred_element_type=jnp.float32) + b2_ref[...])   # (m, cf) f32
    y2_ref[...] = y2.reshape(b, h, w, cf)

    # ---- MaxPool2d(2): h-direction max first (outer-dim stride-2), then w-direction ----
    hmax = jnp.maximum(y2_ref[:, pl.ds(0, ho, 2), :, :],
                       y2_ref[:, pl.ds(1, ho, 2), :, :])           # (B, ho, W, Cf)
    y2_ref[:, pl.ds(0, ho), :, :] = hmax
    o_ref[...] = jnp.maximum(
        y2_ref[:, pl.ds(0, ho), pl.ds(0, wo, 2), :],
        y2_ref[:, pl.ds(0, ho), pl.ds(1, wo, 2), :]).astype(o_ref.dtype)


# ---------------- trace-time parameter preparation ----------------

def _w_to_taps(w_oihw):
    # torch OIHW (Cout, Cin, 3, 3) -> (9, Cin, Cout), tap index = kh*3 + kw
    co, ci = w_oihw.shape[0], w_oihw.shape[1]
    return jnp.transpose(w_oihw, (2, 3, 1, 0)).reshape(9, ci, co)


def _fold_bn(w_taps, bias, gamma, beta, mean, var):
    # eval-mode BatchNorm2d folded into the conv:
    #   y = (conv(x) + b - mean) * gamma * rsqrt(var + eps) + beta
    scale = gamma * jax.lax.rsqrt(var + _BN_EPS)                       # (Cout,)
    w_f = (w_taps * scale).astype(jnp.bfloat16)                        # (9, Cin, Cout) bf16
    b_f = ((bias - mean) * scale + beta).astype(jnp.float32).reshape(1, -1)
    return w_f, b_f


# ---------------- wrapper ----------------

def unet_down_forward(x_nchw, params, block_batch=None):
    (w1, b1, bn1), (w2, b2, bn2) = params
    n, cin, h, w = x_nchw.shape
    cf = w1.shape[0]
    assert h % 2 == 0 and w % 2 == 0, "MaxPool2d(2) needs even spatial dims"
    # W a multiple of 8 keeps the (B,H,W,C)<->(M,C) reshapes and the offset-16 interior
    # store relayout-free (16 is ideal for the bf16 scratch).
    assert w % 8 == 0, "W must be a multiple of 8 for lane/sublane-aligned staging"
    assert cf % 128 == 0, "n_feat must be a multiple of 128 for lane-dense output stores"

    w1_t, b1_v = _fold_bn(_w_to_taps(w1), b1, *bn1)     # (9, cin, cf) bf16, (1, cf) f32
    w2_t, b2_v = _fold_bn(_w_to_taps(w2), b2, *bn2)     # (9, cf, cf)  bf16, (1, cf) f32

    # ---- conv1 tap-concat in the wrapper (Cin is tiny): x9 = (N, H, W, 9*cin_p) bf16 ----
    cin_p = max(8, ((cin + 7) // 8) * 8)
    x = jnp.transpose(x_nchw, (0, 2, 3, 1))                                   # NCHW -> NHWC
    xp = jnp.pad(x, ((0, 0), (1, 1), (1, 1), (0, cin_p - cin))).astype(jnp.bfloat16)
    x9 = jnp.concatenate(
        [xp[:, di:di + h, dj:dj + w, :] for di in range(3) for dj in range(3)],
        axis=-1)                                                              # (N, H, W, 9*cin_p)
    k1 = 9 * cin_p

    w1_cat = jnp.pad(w1_t, ((0, 0), (0, cin_p - cin), (0, 0))).reshape(k1, cf)   # (K1, Cf) bf16
    w2_cat = w2_t.reshape(9 * cf, cf)                                            # (9*Cf, Cf) bf16

    # ---- batch blocking: amortize per-step overhead (v5e/v6e) but keep >= 2 grid steps
    # so both v7x TensorCores get work with dimension_semantics=("parallel",). ----
    if block_batch is None:
        block_batch = 1
        for bb in (4, 3, 2):
            if n % bb == 0 and n // bb >= 2:
                block_batch = bb
                break
    assert n % block_batch == 0
    steps = n // block_batch

    ho, wo = h // 2, w // 2
    flops = 2 * n * h * w * (k1 * cf + 9 * cf * cf)
    bytes_accessed = (x9.size * 2 + w1_cat.size * 2 + w2_cat.size * 2
                      + (b1_v.size + b2_v.size) * 4 + n * ho * wo * cf * 4)

    out_nhwc = pl.pallas_call(
        unet_down_kernel,
        out_shape=jax.ShapeDtypeStruct((n, ho, wo, cf), jnp.float32),
        grid=(steps,),
        in_specs=[
            pl.BlockSpec((block_batch, h, w, k1), lambda i: (i, 0, 0, 0)),
            pl.BlockSpec((k1, cf), lambda i: (0, 0)),
            pl.BlockSpec((1, cf), lambda i: (0, 0)),
            pl.BlockSpec((9 * cf, cf), lambda i: (0, 0)),
            pl.BlockSpec((1, cf), lambda i: (0, 0)),
        ],
        out_specs=pl.BlockSpec((block_batch, ho, wo, cf), lambda i: (i, 0, 0, 0)),
        scratch_shapes=[
            pltpu.VMEM((block_batch, h + 2, w + 32, cf), jnp.bfloat16),  # padded conv1 acts
            pltpu.VMEM((block_batch * h * w, 9 * cf), jnp.bfloat16),     # conv2 K-concat
            pltpu.VMEM((block_batch, h, w, cf), jnp.float32),            # conv2 acts / pool
        ],
        compiler_params=pltpu.CompilerParams(dimension_semantics=("parallel",)),
        cost_estimate=pl.CostEstimate(flops=int(flops),
                                      transcendentals=int(2 * n * h * w * cf),
                                      bytes_accessed=int(bytes_accessed)),
    )(x9, w1_cat, b1_v, w2_cat, b2_v)

    return jnp.transpose(out_nhwc, (0, 3, 1, 2))            # back to NCHW


# ---------------- deterministic params & references ----------------

def init_params(key, cin, cout):
    ks = jax.random.split(key, 4)

    def conv_params(k, ci, co):
        k1, k2 = jax.random.split(k)
        w = 0.1 * jax.random.normal(k1, (co, ci, 3, 3), jnp.float32)   # torch OIHW
        b = 0.1 * jax.random.normal(k2, (co,), jnp.float32)
        return w, b

    def bn_params(k, co):
        k1, k2, k3, k4 = jax.random.split(k, 4)
        gamma = 1.0 + 0.1 * jax.random.normal(k1, (co,), jnp.float32)
        beta = 0.1 * jax.random.normal(k2, (co,), jnp.float32)
        mean = 0.1 * jax.random.normal(k3, (co,), jnp.float32)
        var = 1.0 + 0.1 * jax.random.uniform(k4, (co,), jnp.float32)
        return gamma, beta, mean, var

    w1, b1 = conv_params(ks[0], cin, cout)
    w2, b2 = conv_params(ks[2], cout, cout)
    return (w1, b1, bn_params(ks[1], cout)), (w2, b2, bn_params(ks[3], cout))


def _conv3x3_same_nhwc(x, w_hwio, precision=None):
    return jax.lax.conv_general_dilated(
        x, w_hwio, window_strides=(1, 1), padding='SAME',
        dimension_numbers=('NHWC', 'HWIO', 'NHWC'),
        precision=precision, preferred_element_type=jnp.float32)


def reference_matched(x_nchw, params):
    """XLA reference at the kernel's numerics (bf16 operands, folded BN, f32 accumulation,
    tanh GELU) — validates the Pallas indexing / fold / pooling plumbing."""
    (w1, b1, bn1), (w2, b2, bn2) = params
    w1_t, b1_v = _fold_bn(_w_to_taps(w1), b1, *bn1)
    w2_t, b2_v = _fold_bn(_w_to_taps(w2), b2, *bn2)
    to_hwio = lambda wt: wt.reshape(3, 3, wt.shape[1], wt.shape[2])
    x = jnp.transpose(x_nchw, (0, 2, 3, 1)).astype(jnp.bfloat16)
    y = jax.nn.gelu(_conv3x3_same_nhwc(x, to_hwio(w1_t)) + b1_v[0], approximate=True)
    y = jax.nn.gelu(_conv3x3_same_nhwc(y.astype(jnp.bfloat16), to_hwio(w2_t)) + b2_v[0],
                    approximate=True)
    n, h, w, c = y.shape
    y = y.reshape(n, h // 2, 2, w // 2, 2, c).max(axis=(2, 4))
    return jnp.transpose(y, (0, 3, 1, 2))


def reference_f32(x_nchw, params):
    """Torch-faithful f32 reference: unfused eval-mode BatchNorm, exact (erf) GELU."""
    (w1, b1, (g1, be1, m1, v1)), (w2, b2, (g2, be2, m2, v2)) = params
    x = jnp.transpose(x_nchw, (0, 2, 3, 1))

    def block(z, wt, b, g, be, m, v):
        y = _conv3x3_same_nhwc(z, jnp.transpose(wt, (2, 3, 1, 0)),
                               precision=jax.lax.Precision.HIGHEST) + b
        y = (y - m) * jax.lax.rsqrt(v + _BN_EPS) * g + be
        return jax.nn.gelu(y, approximate=False)

    y = block(x, w1, b1, g1, be1, m1, v1)
    y = block(y, w2, b2, g2, be2, m2, v2)
    n, h, w, c = y.shape
    y = y.reshape(n, h // 2, 2, w // 2, 2, c).max(axis=(2, 4))
    return jnp.transpose(y, (0, 3, 1, 2))


if __name__ == "__main__":
    key = jax.random.PRNGKey(0)
    kx, kp = jax.random.split(key)
    # Small shapes consistent with the module: n_feat = 128 output channels (spec),
    # batch=2, 16x16 spatial, 3 input channels.
    N, Cin, H, W = 2, 3, 16, 16
    Cf = 128
    x = jax.random.normal(kx, (N, Cin, H, W), jnp.float32)
    params = init_params(kp, Cin, Cf)

    out = jax.block_until_ready(jax.jit(unet_down_forward)(x, params))
    assert out.shape == (N, Cf, H // 2, W // 2), out.shape

    # 1) validate the Pallas implementation against XLA at matched numerics
    err_m = float(jnp.max(jnp.abs(out - reference_matched(x, params))))
    assert err_m < 2e-2, f"max abs diff vs matched-precision reference: {err_m}"

    # 2) validate end-to-end semantics against the torch-faithful f32 math
    #    (bf16 matmul operands + tanh GELU account for the looser bound)
    err_f = float(jnp.max(jnp.abs(out - reference_f32(x, params))))
    assert err_f < 5e-2, f"max abs diff vs f32 reference: {err_f}"

    print("KERNEL_OK")
</pallas_src>

<mosaic_0001>
module attributes {stable_mosaic.version = 11 : i64} {
  func.func @unet_down_kernel(%arg0: i32, %arg1: memref<1x16x16x72xbf16, #tpu.memory_space<vmem>>, %arg2: memref<72x128xbf16, #tpu.memory_space<vmem>>, %arg3: memref<1x128xf32, #tpu.memory_space<vmem>>, %arg4: memref<1152x128xbf16, #tpu.memory_space<vmem>>, %arg5: memref<1x128xf32, #tpu.memory_space<vmem>>, %arg6: memref<1x8x8x128xf32, #tpu.memory_space<vmem>>, %arg7: memref<1x18x48x128xbf16, #tpu.memory_space<vmem>>, %arg8: memref<256x1152xbf16, #tpu.memory_space<vmem>>, %arg9: memref<1x16x16x128xf32, #tpu.memory_space<vmem>>) attributes {dimension_semantics = [#tpu.dimension_semantics<parallel>], iteration_bounds = array<i64: 2>, scalar_prefetch = 0 : i64, scratch_operands = 3 : i64, tpu.core_type = #tpu.core_type<tc>, window_params = [{transform_indices = @transform_0, window_bounds = array<i64: 1, 16, 16, 72>}, {pipeline_mode = #tpu.pipeline_mode<synchronous>, transform_indices = @transform_1, window_bounds = array<i64: 72, 128>}, {pipeline_mode = #tpu.pipeline_mode<synchronous>, transform_indices = @transform_2, window_bounds = array<i64: 1, 128>}, {pipeline_mode = #tpu.pipeline_mode<synchronous>, transform_indices = @transform_3, window_bounds = array<i64: 1152, 128>}, {pipeline_mode = #tpu.pipeline_mode<synchronous>, transform_indices = @transform_4, window_bounds = array<i64: 1, 128>}, {transform_indices = @transform_5, window_bounds = array<i64: 1, 8, 8, 128>}]} {
    %c0 = arith.constant 0 : index
    %c0_0 = arith.constant 0 : index
    %c0_1 = arith.constant 0 : index
    %c0_2 = arith.constant 0 : index
    %0 = vector.load %arg1[%c0, %c0_0, %c0_1, %c0_2] : memref<1x16x16x72xbf16, #tpu.memory_space<vmem>>, vector<1x16x16x72xbf16>
    %1 = vector.shape_cast %0 : vector<1x16x16x72xbf16> to vector<256x72xbf16>
    %c0_3 = arith.constant 0 : index
    %c0_4 = arith.constant 0 : index
    %2 = vector.load %arg2[%c0_3, %c0_4] : memref<72x128xbf16, #tpu.memory_space<vmem>>, vector<72x128xbf16>
    %cst = arith.constant dense<0.000000e+00> : vector<256x128xf32>
    %3 = tpu.matmul %1, %2, %cst {dimension_numbers = #tpu.dot_dimension_numbers<[1], [0], [0], [1], [0, 0, 1, 1], [], []>} : vector<256x72xbf16>, vector<72x128xbf16>, vector<256x128xf32> -> vector<256x128xf32>
    %c0_5 = arith.constant 0 : index
    %c0_6 = arith.constant 0 : index
    %4 = vector.load %arg3[%c0_5, %c0_6] : memref<1x128xf32, #tpu.memory_space<vmem>>, vector<1x128xf32>
    %5 = vector.broadcast %4 : vector<1x128xf32> to vector<256x128xf32>
    %6 = arith.addf %3, %5 : vector<256x128xf32>
    %cst_7 = arith.constant 5.000000e-01 : f32
    %7 = vector.broadcast %cst_7 : f32 to vector<256x128xf32>
    %8 = arith.mulf %7, %6 : vector<256x128xf32>
    %cst_8 = arith.constant 4.471500e-02 : f32
    %9 = vector.broadcast %cst_8 : f32 to vector<256x128xf32>
    %10 = arith.mulf %9, %6 : vector<256x128xf32>
    %11 = arith.mulf %10, %6 : vector<256x128xf32>
    %12 = arith.mulf %11, %6 : vector<256x128xf32>
    %13 = arith.addf %6, %12 : vector<256x128xf32>
    %cst_9 = arith.constant 0.797884583 : f32
    %14 = vector.broadcast %cst_9 : f32 to vector<256x128xf32>
    %15 = arith.mulf %14, %13 : vector<256x128xf32>
    %16 = math.tanh %15 : vector<256x128xf32>
    %cst_10 = arith.constant 1.000000e+00 : f32
    %17 = vector.broadcast %cst_10 : f32 to vector<256x128xf32>
    %18 = arith.addf %17, %16 : vector<256x128xf32>
    %19 = arith.mulf %8, %18 : vector<256x128xf32>
    %cst_11 = arith.constant 0.000000e+00 : bf16
    %20 = vector.broadcast %cst_11 : bf16 to vector<1x1x18x128xbf16>
    %cst_12 = arith.constant 0.000000e+00 : bf16
    %21 = vector.broadcast %cst_12 : bf16 to vector<1x16x1x128xbf16>
    %c0_13 = arith.constant 0 : index
    %c0_14 = arith.constant 0 : index
    %c15 = arith.constant 15 : index
    %c0_15 = arith.constant 0 : index
    %22 = vector.load %arg7[%c0_13, %c0_14, %c15, %c0_15] : memref<1x18x48x128xbf16, #tpu.memory_space<vmem>>, vector<1x1x18x128xbf16>
    tpu.vector_store %arg7[%c0_13, %c0_14, %c15, %c0_15], %20 {strides = array<i32>} : memref<1x18x48x128xbf16, #tpu.memory_space<vmem>>, vector<1x1x18x128xbf16>,
    %c0_16 = arith.constant 0 : index
    %c17 = arith.constant 17 : index
    %c15_17 = arith.constant 15 : index
    %c0_18 = arith.constant 0 : index
    %23 = vector.load %arg7[%c0_16, %c17, %c15_17, %c0_18] : memref<1x18x48x128xbf16, #tpu.memory_space<vmem>>, vector<1x1x18x128xbf16>
    tpu.vector_store %arg7[%c0_16, %c17, %c15_17, %c0_18], %20 {strides = array<i32>} : memref<1x18x48x128xbf16, #tpu.memory_space<vmem>>, vector<1x1x18x128xbf16>,
    %c0_19 = arith.constant 0 : index
    %c1 = arith.constant 1 : index
    %c15_20 = arith.constant 15 : index
    %c0_21 = arith.constant 0 : index
    %24 = vector.load %arg7[%c0_19, %c1, %c15_20, %c0_21] : memref<1x18x48x128xbf16, #tpu.memory_space<vmem>>, vector<1x16x1x128xbf16>
    tpu.vector_store %arg7[%c0_19, %c1, %c15_20, %c0_21], %21 {strides = array<i32>} : memref<1x18x48x128xbf16, #tpu.memory_space<vmem>>, vector<1x16x1x128xbf16>,
    %c0_22 = arith.constant 0 : index
    %c1_23 = arith.constant 1 : index
    %c32 = arith.constant 32 : index
    %c0_24 = arith.constant 0 : index
    %25 = vector.load %arg7[%c0_22, %c1_23, %c32, %c0_24] : memref<1x18x48x128xbf16, #tpu.memory_space<vmem>>, vector<1x16x1x128xbf16>
    tpu.vector_store %arg7[%c0_22, %c1_23, %c32, %c0_24], %21 {strides = array<i32>} : memref<1x18x48x128xbf16, #tpu.memory_space<vmem>>, vector<1x16x1x128xbf16>,
    %26 = arith.truncf %19 : vector<256x128xf32> to vector<256x128xbf16>
    %27 = vector.shape_cast %26 : vector<256x128xbf16> to vector<1x16x16x128xbf16>
    %c0_25 = arith.constant 0 : index
    %c1_26 = arith.constant 1 : index
    %c16 = arith.constant 16 : index
    %c0_27 = arith.constant 0 : index
    %28 = vector.load %arg7[%c0_25, %c1_26, %c16, %c0_27] : memref<1x18x48x128xbf16, #tpu.memory_space<vmem>>, vector<1x16x16x128xbf16>
    tpu.vector_store %arg7[%c0_25, %c1_26, %c16, %c0_27], %27 {strides = array<i32>} : memref<1x18x48x128xbf16, #tpu.memory_space<vmem>>, vector<1x16x16x128xbf16>,
    %c0_28 = arith.constant 0 : index
    %c0_29 = arith.constant 0 : index
    %c15_30 = arith.constant 15 : index
    %c0_31 = arith.constant 0 : index
    %29 = vector.load %arg7[%c0_28, %c0_29, %c15_30, %c0_31] : memref<1x18x48x128xbf16, #tpu.memory_space<vmem>>, vector<1x16x16x128xbf16>
    %30 = vector.shape_cast %29 : vector<1x16x16x128xbf16> to vector<256x128xbf16>
    %c0_32 = arith.constant 0 : index
    %c0_33 = arith.constant 0 : index
    %31 = vector.load %arg8[%c0_32, %c0_33] : memref<256x1152xbf16, #tpu.memory_space<vmem>>, vector<256x128xbf16>
    tpu.vector_store %arg8[%c0_32, %c0_33], %30 {strides = array<i32>} : memref<256x1152xbf16, #tpu.memory_space<vmem>>, vector<256x128xbf16>,
    %c0_34 = arith.constant 0 : index
    %c0_35 = arith.constant 0 : index
    %c16_36 = arith.constant 16 : index
    %c0_37 = arith.constant 0 : index
    %32 = vector.load %arg7[%c0_34, %c0_35, %c16_36, %c0_37] : memref<1x18x48x128xbf16, #tpu.memory_space<vmem>>, vector<1x16x16x128xbf16>
    %33 = vector.shape_cast %32 : vector<1x16x16x128xbf16> to vector<256x128xbf16>
    %c0_38 = arith.constant 0 : index
    %c128 = arith.constant 128 : index
    %34 = vector.load %arg8[%c0_38, %c128] : memref<256x1152xbf16, #tpu.memory_space<vmem>>, vector<256x128xbf16>
    tpu.vector_store %arg8[%c0_38, %c128], %33 {strides = array<i32>} : memref<256x1152xbf16, #tpu.memory_space<vmem>>, vector<256x128xbf16>,
    %c0_39 = arith.constant 0 : index
    %c0_40 = arith.constant 0 : index
    %c17_41 = arith.constant 17 : index
    %c0_42 = arith.constant 0 : index
    %35 = vector.load %arg7[%c0_39, %c0_40, %c17_41, %c0_42] : memref<1x18x48x128xbf16, #tpu.memory_space<vmem>>, vector<1x16x16x128xbf16>
    %36 = vector.shape_cast %35 : vector<1x16x16x128xbf16> to vector<256x128xbf16>
    %c0_43 = arith.constant 0 : index
    %c256 = arith.constant 256 : index
    %37 = vector.load %arg8[%c0_43, %c256] : memref<256x1152xbf16, #tpu.memory_space<vmem>>, vector<256x128xbf16>
    tpu.vector_store %arg8[%c0_43, %c256], %36 {strides = array<i32>} : memref<256x1152xbf16, #tpu.memory_space<vmem>>, vector<256x128xbf16>,
    %c0_44 = arith.constant 0 : index
    %c1_45 = arith.constant 1 : index
    %c15_46 = arith.constant 15 : index
    %c0_47 = arith.constant 0 : index
    %38 = vector.load %arg7[%c0_44, %c1_45, %c15_46, %c0_47] : memref<1x18x48x128xbf16, #tpu.memory_space<vmem>>, vector<1x16x16x128xbf16>
    %39 = vector.shape_cast %38 : vector<1x16x16x128xbf16> to vector<256x128xbf16>
    %c0_48 = arith.constant 0 : index
    %c384 = arith.constant 384 : index
    %40 = vector.load %arg8[%c0_48, %c384] : memref<256x1152xbf16, #tpu.memory_space<vmem>>, vector<256x128xbf16>
    tpu.vector_store %arg8[%c0_48, %c384], %39 {strides = array<i32>} : memref<256x1152xbf16, #tpu.memory_space<vmem>>, vector<256x128xbf16>,
    %c0_49 = arith.constant 0 : index
    %c1_50 = arith.constant 1 : index
    %c16_51 = arith.constant 16 : index
    %c0_52 = arith.constant 0 : index
    %41 = vector.load %arg7[%c0_49, %c1_50, %c16_51, %c0_52] : memref<1x18x48x128xbf16, #tpu.memory_space<vmem>>, vector<1x16x16x128xbf16>
    %42 = vector.shape_cast %41 : vector<1x16x16x128xbf16> to vector<256x128xbf16>
    %c0_53 = arith.constant 0 : index
    %c512 = arith.constant 512 : index
    %43 = vector.load %arg8[%c0_53, %c512] : memref<256x1152xbf16, #tpu.memory_space<vmem>>, vector<256x128xbf16>
    tpu.vector_store %arg8[%c0_53, %c512], %42 {strides = array<i32>} : memref<256x1152xbf16, #tpu.memory_space<vmem>>, vector<256x128xbf16>,
    %c0_54 = arith.constant 0 : index
    %c1_55 = arith.constant 1 : index
    %c17_56 = arith.constant 17 : index
    %c0_57 = arith.constant 0 : index
    %44 = vector.load %arg7[%c0_54, %c1_55, %c17_56, %c0_57] : memref<1x18x48x128xbf16, #tpu.memory_space<vmem>>, vector<1x16x16x128xbf16>
    %45 = vector.shape_cast %44 : vector<1x16x16x128xbf16> to vector<256x128xbf16>
    %c0_58 = arith.constant 0 : index
    %c640 = arith.constant 640 : index
    %46 = vector.load %arg8[%c0_58, %c640] : memref<256x1152xbf16, #tpu.memory_space<vmem>>, vector<256x128xbf16>
    tpu.vector_store %arg8[%c0_58, %c640], %45 {strides = array<i32>} : memref<256x1152xbf16, #tpu.memory_space<vmem>>, vector<256x128xbf16>,
    %c0_59 = arith.constant 0 : index
    %c2 = arith.constant 2 : index
    %c15_60 = arith.constant 15 : index
    %c0_61 = arith.constant 0 : index
    %47 = vector.load %arg7[%c0_59, %c2, %c15_60, %c0_61] : memref<1x18x48x128xbf16, #tpu.memory_space<vmem>>, vector<1x16x16x128xbf16>
    %48 = vector.shape_cast %47 : vector<1x16x16x128xbf16> to vector<256x128xbf16>
    %c0_62 = arith.constant 0 : index
    %c768 = arith.constant 768 : index
    %49 = vector.load %arg8[%c0_62, %c768] : memref<256x1152xbf16, #tpu.memory_space<vmem>>, vector<256x128xbf16>
    tpu.vector_store %arg8[%c0_62, %c768], %48 {strides = array<i32>} : memref<256x1152xbf16, #tpu.memory_space<vmem>>, vector<256x128xbf16>,
    %c0_63 = arith.constant 0 : index
    %c2_64 = arith.constant 2 : index
    %c16_65 = arith.constant 16 : index
    %c0_66 = arith.constant 0 : index
    %50 = vector.load %arg7[%c0_63, %c2_64, %c16_65, %c0_66] : memref<1x18x48x128xbf16, #tpu.memory_space<vmem>>, vector<1x16x16x128xbf16>
    %51 = vector.shape_cast %50 : vector<1x16x16x128xbf16> to vector<256x128xbf16>
    %c0_67 = arith.constant 0 : index
    %c896 = arith.constant 896 : index
    %52 = vector.load %arg8[%c0_67, %c896] : memref<256x1152xbf16, #tpu.memory_space<vmem>>, vector<256x128xbf16>
    tpu.vector_store %arg8[%c0_67, %c896], %51 {strides = array<i32>} : memref<256x1152xbf16, #tpu.memory_space<vmem>>, vector<256x128xbf16>,
    %c0_68 = arith.constant 0 : index
    %c2_69 = arith.constant 2 : index
    %c17_70 = arith.constant 17 : index
    %c0_71 = arith.constant 0 : index
    %53 = vector.load %arg7[%c0_68, %c2_69, %c17_70, %c0_71] : memref<1x18x48x128xbf16, #tpu.memory_space<vmem>>, vector<1x16x16x128xbf16>
    %54 = vector.shape_cast %53 : vector<1x16x16x128xbf16> to vector<256x128xbf16>
    %c0_72 = arith.constant 0 : index
    %c1024 = arith.constant 1024 : index
    %55 = vector.load %arg8[%c0_72, %c1024] : memref<256x1152xbf16, #tpu.memory_space<vmem>>, vector<256x128xbf16>
    tpu.vector_store %arg8[%c0_72, %c1024], %54 {strides = array<i32>} : memref<256x1152xbf16, #tpu.memory_space<vmem>>, vector<256x128xbf16>,
    %c0_73 = arith.constant 0 : index
    %c0_74 = arith.constant 0 : index
    %56 = vector.load %arg8[%c0_73, %c0_74] : memref<256x1152xbf16, #tpu.memory_space<vmem>>, vector<256x1152xbf16>
    %c0_75 = arith.constant 0 : index
    %c0_76 = arith.constant 0 : index
    %57 = vector.load %arg4[%c0_75, %c0_76] : memref<1152x128xbf16, #tpu.memory_space<vmem>>, vector<1152x128xbf16>
    %cst_77 = arith.constant dense<0.000000e+00> : vector<256x128xf32>
    %58 = tpu.matmul %56, %57, %cst_77 {dimension_numbers = #tpu.dot_dimension_numbers<[1], [0], [0], [1], [0, 0, 1, 1], [], []>} : vector<256x1152xbf16>, vector<1152x128xbf16>, vector<256x128xf32> -> vector<256x128xf32>
    %c0_78 = arith.constant 0 : index
    %c0_79 = arith.constant 0 : index
    %59 = vector.load %arg5[%c0_78, %c0_79] : memref<1x128xf32, #tpu.memory_space<vmem>>, vector<1x128xf32>
    %60 = vector.broadcast %59 : vector<1x128xf32> to vector<256x128xf32>
    %61 = arith.addf %58, %60 : vector<256x128xf32>
    %cst_80 = arith.constant 5.000000e-01 : f32
    %62 = vector.broadcast %cst_80 : f32 to vector<256x128xf32>
    %63 = arith.mulf %62, %61 : vector<256x128xf32>
    %cst_81 = arith.constant 4.471500e-02 : f32
    %64 = vector.broadcast %cst_81 : f32 to vector<256x128xf32>
    %65 = arith.mulf %64, %61 : vector<256x128xf32>
    %66 = arith.mulf %65, %61 : vector<256x128xf32>
    %67 = arith.mulf %66, %61 : vector<256x128xf32>
    %68 = arith.addf %61, %67 : vector<256x128xf32>
    %cst_82 = arith.constant 0.797884583 : f32
    %69 = vector.broadcast %cst_82 : f32 to vector<256x128xf32>
    %70 = arith.mulf %69, %68 : vector<256x128xf32>
    %71 = math.tanh %70 : vector<256x128xf32>
    %cst_83 = arith.constant 1.000000e+00 : f32
    %72 = vector.broadcast %cst_83 : f32 to vector<256x128xf32>
    %73 = arith.addf %72, %71 : vector<256x128xf32>
    %74 = arith.mulf %63, %73 : vector<256x128xf32>
    %75 = vector.shape_cast %74 : vector<256x128xf32> to vector<1x16x16x128xf32>
    %c0_84 = arith.constant 0 : index
    %c0_85 = arith.constant 0 : index
    %c0_86 = arith.constant 0 : index
    %c0_87 = arith.constant 0 : index
    %76 = vector.load %arg9[%c0_84, %c0_85, %c0_86, %c0_87] : memref<1x16x16x128xf32, #tpu.memory_space<vmem>>, vector<1x16x16x128xf32>
    tpu.vector_store %arg9[%c0_84, %c0_85, %c0_86, %c0_87], %75 {strides = array<i32>} : memref<1x16x16x128xf32, #tpu.memory_space<vmem>>, vector<1x16x16x128xf32>,
    %c0_88 = arith.constant 0 : index
    %c0_89 = arith.constant 0 : index
    %c0_90 = arith.constant 0 : index
    %c0_91 = arith.constant 0 : index
    %77 = tpu.strided_load %arg9[%c0_88, %c0_89, %c0_90, %c0_91] {strides = array<i32: 1, 2, 1, 1>} : memref<1x16x16x128xf32, #tpu.memory_space<vmem>>, vector<1x8x16x128xf32>
    %c0_92 = arith.constant 0 : index
    %c1_93 = arith.constant 1 : index
    %c0_94 = arith.constant 0 : index
    %c0_95 = arith.constant 0 : index
    %78 = tpu.strided_load %arg9[%c0_92, %c1_93, %c0_94, %c0_95] {strides = array<i32: 1, 2, 1, 1>} : memref<1x16x16x128xf32, #tpu.memory_space<vmem>>, vector<1x8x16x128xf32>
    %79 = arith.maximumf %77, %78 : vector<1x8x16x128xf32>
    %c0_96 = arith.constant 0 : index
    %c0_97 = arith.constant 0 : index
    %c0_98 = arith.constant 0 : index
    %c0_99 = arith.constant 0 : index
    %80 = vector.load %arg9[%c0_96, %c0_97, %c0_98, %c0_99] : memref<1x16x16x128xf32, #tpu.memory_space<vmem>>, vector<1x8x16x128xf32>
    tpu.vector_store %arg9[%c0_96, %c0_97, %c0_98, %c0_99], %79 {strides = array<i32>} : memref<1x16x16x128xf32, #tpu.memory_space<vmem>>, vector<1x8x16x128xf32>,
    %c0_100 = arith.constant 0 : index
    %c0_101 = arith.constant 0 : index
    %c0_102 = arith.constant 0 : index
    %c0_103 = arith.constant 0 : index
    %81 = tpu.strided_load %arg9[%c0_100, %c0_101, %c0_102, %c0_103] {strides = array<i32: 1, 1, 2, 1>} : memref<1x16x16x128xf32, #tpu.memory_space<vmem>>, vector<1x8x8x128xf32>
    %c0_104 = arith.constant 0 : index
    %c0_105 = arith.constant 0 : index
    %c1_106 = arith.constant 1 : index
    %c0_107 = arith.constant 0 : index
    %82 = tpu.strided_load %arg9[%c0_104, %c0_105, %c1_106, %c0_107] {strides = array<i32: 1, 1, 2, 1>} : memref<1x16x16x128xf32, #tpu.memory_space<vmem>>, vector<1x8x8x128xf32>
    %83 = arith.maximumf %81, %82 : vector<1x8x8x128xf32>
    %c0_108 = arith.constant 0 : index
    %c0_109 = arith.constant 0 : index
    %c0_110 = arith.constant 0 : index
    %c0_111 = arith.constant 0 : index
    %84 = vector.load %arg6[%c0_108, %c0_109, %c0_110, %c0_111] : memref<1x8x8x128xf32, #tpu.memory_space<vmem>>, vector<1x8x8x128xf32>
    tpu.vector_store %arg6[%c0_108, %c0_109, %c0_110, %c0_111], %83 {strides = array<i32>} : memref<1x8x8x128xf32, #tpu.memory_space<vmem>>, vector<1x8x8x128xf32>,
    return
  }
  func.func @transform_0(%arg0: i32) -> (i32, i32, i32, i32) {
    %c0_i32 = arith.constant 0 : i32
    %c0_i32_0 = arith.constant 0 : i32
    %c0_i32_1 = arith.constant 0 : i32
    %c0_i32_2 = arith.constant 0 : i32
    return %arg0, %c0_i32, %c0_i32_0, %c0_i32_1 : i32, i32, i32, i32
  }
  func.func @transform_1(%arg0: i32) -> (i32, i32) {
    %c0_i32 = arith.constant 0 : i32
    %c0_i32_0 = arith.constant 0 : i32
    %c0_i32_1 = arith.constant 0 : i32
    return %c0_i32, %c0_i32_0 : i32, i32
  }
  func.func @transform_2(%arg0: i32) -> (i32, i32) {
    %c0_i32 = arith.constant 0 : i32
    %c0_i32_0 = arith.constant 0 : i32
    %c0_i32_1 = arith.constant 0 : i32
    return %c0_i32, %c0_i32_0 : i32, i32
  }
  func.func @transform_3(%arg0: i32) -> (i32, i32) {
    %c0_i32 = arith.constant 0 : i32
    %c0_i32_0 = arith.constant 0 : i32
    %c0_i32_1 = arith.constant 0 : i32
    return %c0_i32, %c0_i32_0 : i32, i32
  }
  func.func @transform_4(%arg0: i32) -> (i32, i32) {
    %c0_i32 = arith.constant 0 : i32
    %c0_i32_0 = arith.constant 0 : i32
    %c0_i32_1 = arith.constant 0 : i32
    return %c0_i32, %c0_i32_0 : i32, i32
  }
  func.func @transform_5(%arg0: i32) -> (i32, i32, i32, i32) {
    %c0_i32 = arith.constant 0 : i32
    %c0_i32_0 = arith.constant 0 : i32
    %c0_i32_1 = arith.constant 0 : i32
    %c0_i32_2 = arith.constant 0 : i32
    return %arg0, %c0_i32, %c0_i32_0, %c0_i32_1 : i32, i32, i32, i32
  }
}

</mosaic_0001>

<bundles_post_ra>
// kernel: unet_down_forward.1
= control target key start
LH: loop header
LB: loop body
LE: loop exit
PB: predicated region body
PF: predicated region fallthrough
CT: control target
= control target key end

     0   :  { %10 = vsyncpa [#allocation6], 0  ;;  %s7410_s0 = inlined_call_operand.vmem [shape: bf16[2,16,16,72], index: 0, kind: input, shape index: {}]   ;;  %s7411_s1 = inlined_call_operand.vmem [shape: bf16[72,128], index: 1, kind: input, shape index: {}]   ;;  %s7412_s2 = inlined_call_operand.vmem [shape: f32[1,128], index: 2, kind: input, shape index: {}]   ;;  %s7413_s3 = inlined_call_operand.vmem [shape: bf16[1152,128], index: 3, kind: input, shape index: {}]   ;;  %s7414_s4 = inlined_call_operand.vmem [shape: f32[1,128], index: 4, kind: input, shape index: {}]   ;;  %s7415_s5 = inlined_call_operand.hbm [shape: f32[2,8,8,128], index: 5, kind: output, shape index: {}]  }
   0x1   :  { %12 = vsyncpa [#allocation6 + $0x1], 0  ;;  %s5778_s18 = smov 0   ;;  %s5780_s19 = smov 0  }
   0x2   :  { %s5782_s20 = smov 0   ;;  %s5784_s21 = smov 0  }
   0x3 LB: > { %s5799_s22 = sadd.s32 4294967295, %s5742_s21   ;;  %s4705_s23 = sadd.s32 4294967294, %s5742_s21   ;;  %s5742_s21 = sphi %s5784_s21, %s7436_s21   ;;  %s5738_s20 = sphi %s5782_s20, %s7435_s20   ;;  %s5734_s19 = sphi %s5780_s19, %s7434_s19   ;;  %s5730_s18 = sphi %s5778_s18, %s7433_s18  }
   0x4   : > { %s5803_s24 = sadd.s32 1, %s5742_s21   ;;  %s135_s25 = sadd.s32 1, %s5738_s20 }
   0x5   : > { %s132_s26 = ssub.s32 %s5742_s21, %s5803_s24  ;;  %p145_p0 = scmp.ne.s32.totalorder %s5738_s20, %s5734_s19 }
   0x6   : > { %p133_p1 = scmp.eq.s32.totalorder %s132_s26, 0  ;;  %p146_p2 = scmp.eq.s32.totalorder %s5799_s22, 1 }
   0x7   : > { %p151_p3 = scmp.ne.s32.totalorder %s5734_s19, %s5730_s18  ;;  %p152_p4 = scmp.eq.s32.totalorder %s4705_s23, 1 }
   0x8   : > { %s5814_s27 = scalar_select %p133_p1, %s5738_s20, %s135_s25  }
   0x9   : > { %p5816_p5 = por %p146_p2, %p145_p0  ;;  %p5820_p6 = por %p152_p4, %p151_p3 }
   0xa   : > { %p4708_p7 = scmp.ge.s32.totalorder %s5742_s21, 1  ;;  %p190_p8 = scmp.lt.s32.totalorder %s5742_s21, 3 }
   0xc   : > { %p191_p9 = pnand %p4708_p7, %p190_p8 }
   0xe   : > { %194 = sbr.rel (%p191_p9) target bundleno = 900 (0x384), region = 40 }
  0x15   : > { %v5456_v0 = vld [vmem:[%s7411_s1] sm:$0xff]   ;;  %v5457_v1 = vld [vmem:[%s7411_s1 + $0x8] sm:$0xff]   ;;  %p218_p10 = scmp.lt.s32.totalorder %s5799_s22, 1  ;;  %v5458_v2 = vld [vmem:[%s7411_s1 + $0x10] sm:$0xff]   ;;  %vm379_vm0 = vcmask 588800   ;;  %vm428_vm1 = vcmask 1043456  }
  0x16   : > { %5323 = vmatprep.subr.bf16.mxu0 %v5456_v0  ;;  %v5459_v4 = vld [vmem:[%s7411_s1 + $0x18] sm:$0xff]   ;;  %v5460_v5 = vld [vmem:[%s7411_s1 + $0x20] ss:$0 sps:$4 sm:$0xff]   ;;  %v5479_v24 = vld [vmem:[%s7413_s3 + $0x48] sm:$0xff]   ;;  %vm881_vm2 = vcmask 1047559   ;;  %v7423_v36 = vmov 0 }
  0x17   : > { %5324 = vmatpush3.bf16.msra.mxu0 %v5456_v0  ;;  %s219_s9 = scalar_select %p218_p10, %s5799_s22, 1  ;;  %v430_v6 = vsel %vm428_vm1, %v5460_v5, 0  ;;  %v5477_v22 = vld [vmem:[%s7413_s3 + $0x40] sm:$0xff]   ;;  %v5480_v25 = vld [vmem:[%s7413_s3 + $0x8] sm:$0xff]   ;;  %v5481_v26 = vld [vmem:[%s7413_s3 + $0x50] sm:$0xff]   ;;  %v5744_v47 = vmov 0  }
  0x18   : > { %5325 = vmatprep.subr.bf16.mxu0 %v5457_v1  ;;  %v5478_v23 = vld [vmem:[%s7413_s3] sm:$0xff]   ;;  %4851 = vmatprep.subr.bf16.mxu1 %v5477_v22  ;;  %v5482_v27 = vld [vmem:[%s7413_s3 + $0x10] sm:$0xff]   ;;  %v5483_v28 = vld [vmem:[%s7413_s3 + $0x58] sm:$0xff]   ;;  %vm882_vm3 = vsmask.f32 7966  ;;  %887 = vst [vmem:[#allocation2 + $0x8] sm:$0xff] %v5744_v47 }
  0x19   : > { %s4828_s12 = sshll.u32 %s219_s9, 7  ;;  %4852 = vmatpush3.bf16.msra.mxu1 %v5478_v23  ;;  %v5484_v29 = vld [vmem:[%s7413_s3 + $0xc0] sm:$0xff]   ;;  %v5485_v30 = vld [vmem:[%s7413_s3 + $0x18] sm:$0xff]   ;;  %v5488_v33 = vld [vmem:[%s7413_s3 + $0xc8] sm:$0xff]   ;;  %3424 = vmatprep.mubr.bf16.mxu1 %v5744_v47  ;;  %v1070_v54 = vrot.slane %v5744_v47, 7  ;;  %vm888_vm6 = vcmask 1040384  }
  0x1a   : > { %s5840_s15 = scalar_lea.vmem %s7410_s0, %s4828_s12  ;;  %4853 = vmatprep.subr.bf16.mxu1 %v5479_v24  ;;  %v5486_v31 = vld [vmem:[%s7413_s3 + $0x80] sm:$0xff]   ;;  %v5490_v35 = vld [vmem:[%s7413_s3 + $0x88] sm:$0xff]   ;;  %vm5922_vm4 = vmand %vm881_vm2, %vm882_vm3  ;;  %vm889_vm5 = vsmask.f32 256  ;;  %v7426_v63 = vmov 0  ;;  %s215_s12 = sand.u32 1, %s5734_s19  }
  0x1b   : > { %5326 = vmatpush3.bf16.msra.mxu0 %v5457_v1  ;;  %v5461_v3 = vld [vmem:[%s5840_s15] sm:$0xff]   ;;  %v5462_v7 = vld [vmem:[%s5840_s15 + $0x8] sm:$0xff]   ;;  %v5463_v8 = vld [vmem:[%s5840_s15 + $0x10] sm:$0xff]   ;;  %v7424_v36 = vsel %vm5922_vm4, 4294967295, %v7423_v36  ;;  %vm1351_vm8 = vsmask.f32 7424 }
  0x1c   : > { %5327 = vmatprep.subr.bf16.mxu0 %v5458_v2  ;;  %5333 = vmatprep.mubr.msk.bf16.mxu0 %vm379_vm0, %v5461_v3  ;;  %v5464_v9 = vld [vmem:[%s5840_s15 + $0x18] sm:$0xff]   ;;  %v5465_v10 = vld [vmem:[%s5840_s15 + $0x20] sm:$0xff]   ;;  %v5466_v11 = vld [vmem:[%s5840_s15 + $0x28] sm:$0xff]   ;;  %7425 = vst [vmem:[#allocation8_spill] sm:$0xff] %v7424_v36  ;;  %s7303_s13 = sshll.u32 %s215_s12, 6  ;;  %s7369_s26 = scalar_lea.sflag [#allocation6], %s215_s12 }
  0x1d   : > { %v5467_v12 = vld [vmem:[%s5840_s15 + $0x30] sm:$0xff]   ;;  %v5468_v13 = vld [vmem:[%s5840_s15 + $0x38] sm:$0xff]   ;;  %v5469_v14 = vld [vmem:[%s5840_s15 + $0x40] sm:$0xff]   ;;  %4854 = vmatpush3.bf16.msra.mxu1 %v5480_v25  ;;  %s7331_s14 = scalar_lea.vmem [#allocation5], %s7303_s13 }
  0x1e   : > { %v5470_v15 = vld [vmem:[%s5840_s15 + $0x48] sm:$0xff]   ;;  %v5471_v16 = vld [vmem:[%s5840_s15 + $0x50] sm:$0xff]   ;;  %v5472_v17 = vld [vmem:[%s5840_s15 + $0x58] sm:$0xff]   ;;  %4855 = vmatprep.subr.bf16.mxu1 %v5481_v26  ;;  %s4643_s16 = sshll.u32 %s7331_s14, 4  ;;  %s7364_s16 = int_to_ptr.vmem [resolvable:$true] %s4643_s16 }
  0x1f   : > { %5328 = vmatpush3.bf16.msra.mxu0 %v5458_v2  ;;  %v5473_v18 = vld [vmem:[%s5840_s15 + $0x60] sm:$0xff]   ;;  %v5474_v19 = vld [vmem:[%s5840_s15 + $0x68] sm:$0xff]   ;;  %v5475_v20 = vld [vmem:[%s5840_s15 + $0x70] sm:$0xff]   ;;  %s5680_s30 = scalar_lea.vmem %s7364_s16, 1024 }
  0x20   : > { %5329 = vmatprep.subr.bf16.mxu0 %v5459_v4  ;;  %v5476_v21 = vld [vmem:[%s5840_s15 + $0x78] sm:$0xff]   ;;  %v5487_v32 = vld [vmem:[%s7413_s3 + $0x60] sm:$0xff]   ;;  %v5491_v38 = vld [vmem:[%s7413_s3 + $0x68] sm:$0xff]   ;;  %s4829_s15 = sshll.u32 %s5799_s22, 10  ;;  %p5681_p11 = scmp.ne.s32.totalorder %s7364_s16, %s5680_s30 }
  0x21   : > { %4856 = vmatpush3.bf16.msra.mxu1 %v5482_v27  ;;  %v5489_v34 = vld [vmem:[%s7413_s3 + $0x20] sm:$0xff]   ;;  %v5492_v39 = vld [vmem:[%s7413_s3 + $0xd0] sm:$0xff]   ;;  %v5493_v41 = vld [vmem:[%s7413_s3 + $0x28] sm:$0xff]   ;;  %s7362_s25 = scalar_lea.hbm %s7415_s5, %s4829_s15  ;;  %s5745_s22 = smov [#allocation5]  }
  0x22   : > { %4857 = vmatprep.subr.bf16.mxu1 %v5483_v28  ;;  %v884_v37 = vld [vmem:[#allocation2] sm:$0x80]  ;;  %v5494_v42 = vld [vmem:[%s7413_s3 + $0x90] sm:$0xff]   ;;  %v5496_v44 = vld [vmem:[%s7413_s3 + $0xd8] sm:$0xff]   ;;  %p5682_p12 = pnand %p5681_p11, %p5816_p5  ;;  %s5684_s6 = sshll.u32 %s5745_s22, 4  ;;  %s5685_s6 = int_to_ptr.vmem [resolvable:$false] %s5684_s6 }
  0x23   : > { %5330 = vmatpush3.bf16.msra.mxu0 %v5459_v4  ;;  %v885_v40 = vsel %vm5922_vm4, 0, %v884_v37  ;;  %v5495_v43 = vld [vmem:[%s7413_s3 + $0x70] sm:$0xff]   ;;  %v5498_v46 = vld [vmem:[%s7413_s3 + $0x98] sm:$0xff]   ;;  %v5500_v49 = vld [vmem:[%s7413_s3 + $0xe0] sm:$0xff]   ;;  %s5686_s7 = scalar_lea.vmem %s5685_s6, 2048  ;;  %p5687_p0 = scmp.lt.s32.totalorder %s7364_s16, %s5685_s6 }
  0x24   : > { %5413 = vmatprep.subr.msk.bf16.mxu0 %vm428_vm1, %v5460_v5  ;;  %886 = vst [vmem:[#allocation2] sm:$0x80] %v885_v40  ;;  %v5497_v45 = vld [vmem:[%s7413_s3 + $0x30] sm:$0xff]   ;;  %v5499_v48 = vld [vmem:[%s7413_s3 + $0x78] sm:$0xff]   ;;  %v5502_v52 = vld [vmem:[%s7413_s3 + $0xa0] sm:$0xff]   ;;  %p5683_p13 = pneg %p5682_p12  ;;  %p5688_p1 = scmp.lt.s32.totalorder %s5686_s7, %s5680_s30 }
  0x25   : > { %4858 = vmatpush3.bf16.msra.mxu1 %v5485_v30  ;;  %v5501_v51 = vld [vmem:[%s7413_s3 + $0x38] sm:$0xff]   ;;  %v5503_v56 = vld [vmem:[%s7413_s3 + $0xe8] sm:$0xff]   ;;  %v906_v61 = vld [vmem:[#allocation2 + $0x30] sm:$0x80] }
  0x26   : > { %4859 = vmatprep.subr.bf16.mxu1 %v5487_v32  ;;  %v5504_v57 = vld [vmem:[%s7413_s3 + $0xa8] sm:$0xff]   ;;  %v903_v58 = vld [vmem:[#allocation2 + $0x18] sm:$0x80]  ;;  %v5507_v62 = vld [vmem:[%s7413_s3 + $0xf0] sm:$0xff]   ;;  %v907_v0 = vsel %vm5922_vm4, 0, %v906_v61  ;;  %p5689_p2 = por %p5688_p1, %p5687_p0 }
  0x27   : > { %5332 = vmatpush3.bf16.msra.mxu0 %v430_v6  ;;  %v904_v60 = vsel %vm5922_vm4, 0, %v903_v58  ;;  %vm5977_vm7 = vmand %vm888_vm6, %vm889_vm5  ;;  %v5508_v1 = vld [vmem:[%s7413_s3 + $0xb0] sm:$0xff]   ;;  %908 = vst [vmem:[#allocation2 + $0x30] sm:$0x80] %v907_v0  ;;  %v5509_v4 = vld [vmem:[%s7413_s3 + $0xf8] sm:$0xff]  }
  0x28   : > { %4963 = vmatprep.subr.bf16.mxu0 %v5484_v29  ;;  %905 = vst [vmem:[#allocation2 + $0x18] sm:$0x80] %v904_v60  ;;  %v7427_v63 = vsel %vm5977_vm7, 4294967295, %v7426_v63  ;;  %v891_v2 = vld [vmem:[#allocation2 + $0x10] sm:$0x1]  ;;  %v5510_v5 = vld [vmem:[%s7413_s3 + $0xb8] sm:$0xff]   ;;  %p5690_p3 = pnand %p5689_p2, %p5683_p13 }
  0x29   : > { %4860 = vmatpush3.bf16.msra.mxu1 %v5489_v34  ;;  %7428 = vst [vmem:[#allocation9_spill] sm:$0xff] %v7427_v63  ;;  %v892_v3 = vsel %vm5977_vm7, 0, %v891_v2  ;;  %v951_v6 = vld [vmem:[#allocation2 + $0x28] sm:$0x1]  ;;  %v918_v24 = vld [vmem:[#allocation2 + $0x90] sm:$0x80] }
  0x2a   : > { %5334 = vmatmul.mubr.msk.bf16.vlgmr.msra.gmra.mrb[0].mxu0 %vm379_vm0, %v5462_v7  ;;  %4861 = vmatprep.subr.bf16.mxu1 %v5491_v38  ;;  %893 = vst [vmem:[#allocation2 + $0x10] sm:$0x1] %v892_v3  ;;  %v952_v7 = vsel %vm5977_vm7, 0, %v951_v6  ;;  %v5511_v23 = vld [vmem:[%s7413_s3 + $0x148] sm:$0xff]   ;;  %v919_v25 = vsel %vm5922_vm4, 0, %v918_v24  ;;  %v5516_v60 = vld [vmem:[%s7413_s3 + $0x118] sm:$0xff]  }
  0x2b   : > { %5337 = vmatprep.mubr.msk.bf16.mxu0 %vm379_vm0, %v5463_v8  ;;  %4964 = vmatpush3.bf16.msra.mxu0 %v5486_v31  ;;  %v1031_v50 = vld [vmem:[#allocation2] sm:$0x80]  ;;  %953 = vst [vmem:[#allocation2 + $0x28] sm:$0x1] %v952_v7  ;;  %v5996_v8 = vrot.slane %v5744_v47, 1  ;;  %v5512_v29 = vld [vmem:[%s7413_s3 + $0x108] sm:$0xff]  }
  0x2c   : > { %4965 = vmatprep.subr.bf16.mxu0 %v5488_v33  ;;  %v1064_v53 = vshrl.u32 %v1031_v50, 16  ;;  %v963_v26 = vld [vmem:[#allocation2 + $0x88] sm:$0x1]  ;;  %920 = vst [vmem:[#allocation2 + $0x90] sm:$0x80] %v919_v25  ;;  %v5513_v33 = vld [vmem:[%s7413_s3 + $0x150] sm:$0xff]  }
  0x2d   : > { %4862 = vmatpush3.bf16.msra.mxu1 %v5493_v41  ;;  %v964_v27 = vsel %vm5977_vm7, 0, %v963_v26  ;;  %v966_v28 = vld [vmem:[#allocation2 + $0xa0] sm:$0x1]  ;;  %v921_v31 = vld [vmem:[#allocation2 + $0xa8] sm:$0x80]  ;;  %v5514_v41 = vld [vmem:[%s7413_s3 + $0x110] sm:$0xff]  }
  0x2e   : > { %4863 = vmatprep.subr.bf16.mxu1 %v5495_v43  ;;  %v1066_v55 = vrot.slane %v1064_v53, 7  ;;  %965 = vst [vmem:[#allocation2 + $0x88] sm:$0x1] %v964_v27  ;;  %v967_v30 = vsel %vm5977_vm7, 0, %v966_v28  ;;  %v922_v32 = vsel %vm5922_vm4, 0, %v921_v31  ;;  %v5515_v50 = vld [vmem:[%s7413_s3 + $0x158] sm:$0xff]  }
  0x2f   : > { %4966 = vmatpush3.bf16.msra.mxu0 %v5490_v35  ;;  %968 = vst [vmem:[#allocation2 + $0xa0] sm:$0x1] %v967_v30  ;;  %923 = vst [vmem:[#allocation2 + $0xa8] sm:$0x80] %v922_v32  ;;  %v924_v34 = vld [vmem:[#allocation2 + $0xc0] sm:$0x80] }
  0x30   : > { %4967 = vmatprep.subr.bf16.mxu0 %v5492_v39  ;;  %v1074_v59 = vsel %vm889_vm5, %v1066_v55, %v1070_v54  ;;  %v972_v35 = vld [vmem:[#allocation2 + $0xd0] sm:$0x1]  ;;  %v925_v37 = vsel %vm5922_vm4, 0, %v924_v34  ;;  %v969_v38 = vld [vmem:[#allocation2 + $0xb8] sm:$0x1] }
  0x31   : > { %4864 = vmatpush3.bf16.msra.mxu1 %v5497_v45  ;;  %v973_v39 = vsel %vm5977_vm7, 0, %v972_v35  ;;  %926 = vst [vmem:[#allocation2 + $0xc0] sm:$0x80] %v925_v37  ;;  %v970_v40 = vsel %vm5977_vm7, 0, %v969_v38  ;;  %v978_v43 = vld [vmem:[#allocation2 + $0x100] sm:$0x1] }
  0x32   : > { %5338 = vmatmul.mubr.msk.bf16.gmra.mrb[4].mxu0 %vm379_vm0, %v5464_v9  ;;  %4865 = vmatprep.subr.bf16.mxu1 %v5499_v48  ;;  %v954_v9 = vld [vmem:[#allocation2 + $0x40] sm:$0x1]  ;;  %974 = vst [vmem:[#allocation2 + $0xd0] sm:$0x1] %v973_v39  ;;  %971 = vst [vmem:[#allocation2 + $0xb8] sm:$0x1] %v970_v40 }
  0x33   : > { %5341 = vmatprep.mubr.msk.bf16.mxu0 %vm379_vm0, %v5465_v10  ;;  %4968 = vmatpush3.bf16.msra.mxu0 %v5494_v42  ;;  %v909_v10 = vld [vmem:[#allocation2 + $0x48] sm:$0x80]  ;;  %v930_v42 = vld [vmem:[#allocation2 + $0xf0] sm:$0x80]  ;;  %v975_v47 = vld [vmem:[#allocation2 + $0xe8] sm:$0x1] }
  0x34   : > { %4969 = vmatprep.subr.bf16.mxu0 %v5496_v44  ;;  %v927_v44 = vld [vmem:[#allocation2 + $0xd8] sm:$0x80]  ;;  %v979_v48 = vsel %vm5977_vm7, 0, %v978_v43  ;;  %v1578_v53 = vld [vmem:[#allocation2 + $0x30] sm:$0x80]  ;;  %v5523_v40 = vld [vmem:[%s7413_s3 + $0x168] sm:$0xff]  }
  0x35   : > { %4866 = vmatpush3.bf16.msra.mxu1 %v5501_v51  ;;  %v928_v45 = vsel %vm5922_vm4, 0, %v927_v44  ;;  %980 = vst [vmem:[#allocation2 + $0x100] sm:$0x1] %v979_v48  ;;  %v1033_v51 = vld [vmem:[#allocation2 + $0x18] sm:$0x80]  ;;  %v1621_v2 = vshrl.u32 %v1578_v53, 16 }
  0x36   : > { %929 = vst [vmem:[#allocation2 + $0xd8] sm:$0x80] %v928_v45  ;;  %v1320_v54 = vld [vmem:[#allocation2 + $0x10] sm:$0x1]  ;;  %v1035_v55 = vld [vmem:[#allocation2 + $0x30] sm:$0x80] }
  0x37   : > { %4970 = vmatpush3.bf16.msra.mxu0 %v5498_v46  ;;  %v931_v46 = vsel %vm5922_vm4, 0, %v930_v42  ;;  %v1360_v6 = vshll.u32 %v1320_v54, 16  ;;  %v1088_v7 = vshrl.u32 %v1035_v55, 16  ;;  %v1043_v44 = vld [vmem:[#allocation2 + $0x90] sm:$0x80] }
  0x38   : > { %4971 = vmatprep.subr.bf16.mxu0 %v5500_v49  ;;  %3425 = vmatmul.mubr.bf16.vlgmr.msra.gmra.mrb[0].mxu1 %v1074_v59  ;;  %932 = vst [vmem:[#allocation2 + $0xf0] sm:$0x80] %v931_v46  ;;  %v976_v49 = vsel %vm5977_vm7, 0, %v975_v47  ;;  %v1330_v45 = vld [vmem:[#allocation2 + $0x88] sm:$0x1] }
  0x39   : > { %977 = vst [vmem:[#allocation2 + $0xe8] sm:$0x1] %v976_v49  ;;  %v1362_v25 = vrot.slane %v1360_v6, 1  ;;  %v6078_v26 = vrot.slane %v1088_v7, 7 }
  0x3a   : > { %5342 = vmatmul.mubr.msk.bf16.gmra.mrb[8].mxu0 %vm379_vm0, %v5466_v11  ;;  %v955_v11 = vsel %vm5977_vm7, 0, %v954_v9 }
  0x3b   : > { %5345 = vmatprep.mubr.msk.bf16.mxu0 %vm379_vm0, %v5467_v12  ;;  %4972 = vmatpush3.bf16.msra.mxu0 %v5502_v52  ;;  %v910_v12 = vsel %vm5922_vm4, 0, %v909_v10  ;;  %956 = vst [vmem:[#allocation2 + $0x40] sm:$0x1] %v955_v11  ;;  %v1576_v52 = vld [vmem:[#allocation2 + $0x18] sm:$0x80]  ;;  %v5520_v10 = vld [vmem:[%s7413_s3 + $0x120] sm:$0xff]   ;;  %v6105_v48 = vsel %vm1351_vm8, %v5996_v8, %v1362_v25 }
  0x3c   : > { %4973 = vmatprep.subr.bf16.mxu0 %v5503_v56  ;;  %911 = vst [vmem:[#allocation2 + $0x48] sm:$0x80] %v910_v12  ;;  %v1322_v56 = vld [vmem:[#allocation2 + $0x28] sm:$0x1]  ;;  %v933_v11 = vld [vmem:[#allocation2 + $0x108] sm:$0x80] }
  0x3d   : > { %v1372_v9 = vshll.u32 %v1322_v56, 16  ;;  %v5524_v56 = vld [vmem:[%s7413_s3 + $0x128] sm:$0xff]  }
  0x3f   : > { %4974 = vmatpush3.bf16.msra.mxu0 %v5504_v57  ;;  %v1076_v57 = vshrl.u32 %v1033_v51, 16  ;;  %v6080_v27 = vrot.slane %v1372_v9, 1  ;;  %v981_v51 = vld [vmem:[#allocation2 + $0x118] sm:$0x1]  ;;  %v984_v9 = vld [vmem:[#allocation2 + $0x130] sm:$0x1] }
  0x40   : > { %4975 = vmatprep.subr.bf16.mxu0 %v5507_v62 }
  0x42   : > { %5346 = vmatmul.mubr.msk.bf16.gmra.mrb[12].mxu0 %vm379_vm0, %v5468_v13  ;;  %v912_v13 = vld [vmem:[#allocation2 + $0x60] sm:$0x80]  ;;  %v1324_v59 = vld [vmem:[#allocation2 + $0x40] sm:$0x1] }
  0x43   : > { %5349 = vmatprep.mubr.msk.bf16.mxu0 %vm379_vm0, %v5469_v14  ;;  %4976 = vmatpush3.bf16.msra.mxu0 %v5508_v1  ;;  %v913_v14 = vsel %vm5922_vm4, 0, %v912_v13  ;;  %v1580_v58 = vld [vmem:[#allocation2 + $0x48] sm:$0x80]  ;;  %v1609_v1 = vshrl.u32 %v1576_v52, 16 }
  0x44   : > { %4977 = vmatprep.subr.bf16.mxu0 %v5509_v4  ;;  %914 = vst [vmem:[#allocation2 + $0x60] sm:$0x80] %v913_v14  ;;  %v1037_v61 = vld [vmem:[#allocation2 + $0x48] sm:$0x80]  ;;  %v5517_v4 = vld [vmem:[%s7413_s3 + $0x1c0] sm:$0xff]   ;;  %v1633_v12 = vshrl.u32 %v1580_v58, 16 }
  0x45   : > { %v1100_v13 = vshrl.u32 %v1037_v61, 16  ;;  %v1384_v14 = vshll.u32 %v1324_v59, 16  ;;  %v6076_v24 = vrot.slane %v1609_v1, 7  ;;  %v1136_v59 = vshrl.u32 %v1043_v44, 16 }
  0x46   : > { %v982_v61 = vsel %vm5977_vm7, 0, %v981_v51 }
  0x47   : > { %4978 = vmatpush3.bf16.msra.mxu0 %v5510_v5  ;;  %v5519_v5 = vld [vmem:[%s7413_s3 + $0x160] sm:$0xff]   ;;  %v6084_v30 = vrot.slane %v1100_v13, 7  ;;  %v6086_v31 = vrot.slane %v1384_v14, 1  ;;  %983 = vst [vmem:[#allocation2 + $0x118] sm:$0x1] %v982_v61  ;;  %v985_v14 = vsel %vm5977_vm7, 0, %v984_v9 }
  0x48   : > { %5187 = vmatprep.subr.bf16.mxu0 %v5517_v4  ;;  %v6136_v13 = vld [vmem:[#allocation2 + $0xa0] sm:$0x1]  ;;  %986 = vst [vmem:[#allocation2 + $0x130] sm:$0x1] %v985_v14 }
  0x4a   : > { %5350 = vmatmul.mubr.msk.bf16.gmra.mrb[16].mxu0 %vm379_vm0, %v5470_v15  ;;  %v5505_v15 = vld [vmem:[%s7413_s3 + $0x140] sm:$0xff]  }
  0x4b   : > { %5353 = vmatprep.mubr.msk.bf16.mxu0 %vm379_vm0, %v5471_v16  ;;  %5075 = vmatprep.subr.bf16.mxu1 %v5505_v15  ;;  %v957_v16 = vld [vmem:[#allocation2 + $0x58] sm:$0x1]  ;;  %v1582_v62 = vld [vmem:[#allocation2 + $0x60] sm:$0x80]  ;;  %v934_v15 = vsel %vm5922_vm4, 0, %v933_v11 }
  0x4c   : > { %v1039_v0 = vld [vmem:[#allocation2 + $0x60] sm:$0x80]  ;;  %935 = vst [vmem:[#allocation2 + $0x108] sm:$0x80] %v934_v15 }
  0x52   : > { %5354 = vmatmul.mubr.msk.bf16.gmra.mrb[20].mxu0 %vm379_vm0, %v5472_v17  ;;  %v915_v17 = vld [vmem:[#allocation2 + $0x78] sm:$0x80] }
  0x53   : > { %5357 = vmatprep.mubr.msk.bf16.mxu0 %vm379_vm0, %v5473_v18  ;;  %v5506_v18 = vld [vmem:[%s7413_s3 + $0x100] sm:$0xff]  }
  0x54   : > { %5076 = vmatpush3.bf16.msra.mxu1 %v5506_v18  ;;  %v1112_v18 = vshrl.u32 %v1039_v0, 16 }
  0x55   : > { %5077 = vmatprep.subr.bf16.mxu1 %v5511_v23 }
  0x56   : > { %v6090_v37 = vrot.slane %v1112_v18, 7 }
  0x58   : > { %5078 = vmatpush3.bf16.msra.mxu1 %v5512_v29  ;;  %v6082_v29 = vrot.slane %v1633_v12, 7 }
  0x59   : > { %5079 = vmatprep.subr.bf16.mxu1 %v5513_v33  ;;  %v1586_v33 = vld [vmem:[#allocation2 + $0x90] sm:$0x80] }
  0x5a   : > { %5358 = vmatmul.mubr.msk.bf16.gmra.mrb[24].mxu0 %vm379_vm0, %v5474_v19  ;;  %v958_v19 = vsel %vm5977_vm7, 0, %v957_v16  ;;  %v6070_v16 = vld [vmem:[%s7412_s2] ss:$0 sm:$0xff]  ;;  %v1669_v49 = vshrl.u32 %v1586_v33, 16 }
  0x5b   : > { %5361 = vmatprep.mubr.msk.bf16.mxu0 %vm379_vm0, %v5475_v20  ;;  %v916_v20 = vsel %vm5922_vm4, 0, %v915_v17  ;;  %959 = vst [vmem:[#allocation2 + $0x58] sm:$0x1] %v958_v19  ;;  %v1645_v17 = vshrl.u32 %v1582_v62, 16 }
  0x5c   : > { %917 = vst [vmem:[#allocation2 + $0x78] sm:$0x80] %v916_v20  ;;  %5080 = vmatpush3.bf16.msra.mxu1 %v5514_v41  ;;  %v6132_v7 = vrot.slane %v1669_v49, 7 }
  0x5d   : > { %5081 = vmatprep.subr.bf16.mxu1 %v5515_v50  ;;  %v6088_v35 = vrot.slane %v1645_v17, 7  ;;  %v936_v50 = vld [vmem:[#allocation2 + $0x120] sm:$0x80] }
  0x5e   : > { %v937_v8 = vsel %vm5922_vm4, 0, %v936_v50 }
  0x5f   : > { %938 = vst [vmem:[#allocation2 + $0x120] sm:$0x80] %v937_v8 }
  0x60   : > { %5082 = vmatpush3.bf16.msra.mxu1 %v5516_v60  ;;  %v1588_v60 = vld [vmem:[#allocation2 + $0xa8] sm:$0x80] }
  0x61   : > { %5083 = vmatprep.subr.bf16.mxu1 %v5519_v5  ;;  %v1681_v12 = vshrl.u32 %v1588_v60, 16 }
  0x62   : > { %5362 = vmatmul.mubr.msk.bf16.gmra.mrb[28].mxu0 %vm379_vm0, %v5476_v21  ;;  %v960_v21 = vld [vmem:[#allocation2 + $0x70] sm:$0x1]  ;;  %v1326_v3 = vld [vmem:[#allocation2 + $0x58] sm:$0x1] }
  0x63   : > { %v961_v22 = vsel %vm5977_vm7, 0, %v960_v21  ;;  %v1396_v19 = vshll.u32 %v1326_v3, 16  ;;  %v1584_v20 = vld [vmem:[#allocation2 + $0x78] sm:$0x80]  ;;  %v6072_v21 = vrot.slane %v1076_v57, 7  ;;  %v6154_v50 = vrot.slane %v1681_v12, 7 }
  0x64   : > { %962 = vst [vmem:[#allocation2 + $0x70] sm:$0x1] %v961_v22  ;;  %v6074_v22 = vrot.slane %v1621_v2, 7  ;;  %5084 = vmatpush3.bf16.msra.mxu1 %v5520_v10  ;;  %v1041_v28 = vld [vmem:[#allocation2 + $0x78] sm:$0x80]  ;;  %v1657_v32 = vshrl.u32 %v1584_v20, 16 }
  0x65   : > { %v6092_v38 = vrot.slane %v1396_v19, 1  ;;  %v1124_v43 = vshrl.u32 %v1041_v28, 16  ;;  %5085 = vmatprep.subr.bf16.mxu1 %v5523_v40  ;;  %v1420_v2 = vshll.u32 %v1330_v45, 16  ;;  %v1045_v3 = vld [vmem:[#allocation2 + $0xa8] sm:$0x80]  ;;  %v6142_v19 = vrot.slane %v1136_v59, 7 }
  0x66   : > { %v6111_v55 = vrot.slane %v1657_v32, 7  ;;  %v1148_v20 = vshrl.u32 %v1045_v3, 16 }
  0x67   : > { %v6130_v6 = vrot.slane %v1124_v43, 7  ;;  %v6147_v33 = vrot.slane %v1420_v2, 1 }
  0x68   : > { %5086 = vmatpush3.bf16.msra.mxu1 %v5524_v56  ;;  %v6157_v56 = vrot.slane %v1148_v20, 7 }
  0x6b   : > { %v1328_v23 = vld [vmem:[#allocation2 + $0x70] sm:$0x1] }
  0x6c   : > { %v1408_v39 = vshll.u32 %v1328_v23, 16 }
  0x6e   : > { %v6126_v1 = vrot.slane %v1408_v39, 1 }
  0xfd   : > { %v5335_v34 = vpop.f32.mrb[0].mxu0 }
  0xfe   : > { %v6098_v41 = vadd.f32 %v5335_v34, %v6070_v16  ;;  %v466_v42 = vpop.f32.mrb[1].mxu0 }
  0xff   : > { %v6101_v46 = vadd.f32 %v6070_v16, %v466_v42  ;;  %v5336_v47 = vpop.f32.mrb[2].mxu0 }
 0x100   : > { %v627_v52 = vmul.f32 0.044715, %v6098_v41  ;;  %v6109_v53 = vadd.f32 %v5336_v47, %v6070_v16  ;;  %v469_v54 = vpop.f32.mrb[3].mxu0 }
 0x101   : > { %v625_v57 = vmul.f32 0.044715, %v6101_v46  ;;  %v6120_v58 = vadd.f32 %v6070_v16, %v469_v54 }
 0x102   : > { %v659_v62 = vmul.f32 %v627_v52, %v6098_v41  ;;  %v628_v0 = vmul.f32 0.044715, %v6109_v53 }
 0x103   : > { %v657_v4 = vmul.f32 %v625_v57, %v6101_v46  ;;  %v626_v5 = vmul.f32 0.044715, %v6120_v58 }
 0x104   : > { %v691_v10 = vmul.f32 %v659_v62, %v6098_v41  ;;  %v660_v11 = vmul.f32 %v628_v0, %v6109_v53  ;;  %v595_v0 = vmul.f32 0.5, %v6098_v41 }
 0x105   : > { %v689_v15 = vmul.f32 %v657_v4, %v6101_v46  ;;  %v658_v17 = vmul.f32 %v626_v5, %v6120_v58  ;;  %v5339_v18 = vpop.f32.mrb[4].mxu0  ;;  %v593_v4 = vmul.f32 0.5, %v6101_v46 }
 0x106   : > { %v723_v23 = vadd.f32 %v691_v10, %v6098_v41  ;;  %v692_v25 = vmul.f32 %v660_v11, %v6109_v53  ;;  %v491_v28 = vadd.f32 %v5339_v18, %v6070_v16  ;;  %v482_v32 = vpop.f32.mrb[5].mxu0  ;;  %v596_v11 = vmul.f32 0.5, %v6109_v53  ;;  %v5527_v41 = vld [vmem:[%s7413_s3 + $0x170] sm:$0xff]  }
 0x107   : > { %v721_v34 = vadd.f32 %v689_v15, %v6101_v46  ;;  %v690_v39 = vmul.f32 %v658_v17, %v6120_v58  ;;  %v483_v40 = vadd.f32 %v6070_v16, %v482_v32  ;;  %v5340_v42 = vpop.f32.mrb[6].mxu0  ;;  %v594_v18 = vmul.f32 0.5, %v6120_v58  ;;  %5087 = vmatprep.subr.bf16.mxu1 %v5527_v41 }
 0x108   : > { %v755_v44 = vmul.f32 0.7978846, %v723_v23  ;;  %v724_v45 = vadd.f32 %v692_v25, %v6109_v53  ;;  %v631_v47 = vmul.f32 0.044715, %v491_v28  ;;  %v485_v49 = vpop.f32.mrb[7].mxu0  ;;  %v494_v59 = vadd.f32 %v5340_v42, %v6070_v16 }
 0x109   : > { %v753_v51 = vmul.f32 0.7978846, %v721_v34  ;;  %v722_v52 = vadd.f32 %v690_v39, %v6120_v58  ;;  %v629_v54 = vmul.f32 0.044715, %v483_v40  ;;  %v486_v62 = vadd.f32 %v6070_v16, %v485_v49  ;;  %v5528_v58 = vld [vmem:[%s7413_s3 + $0x130] sm:$0xff]  }
 0x10a   : > { %5549 = vtanh.f32 %v755_v44  ;;  %v756_v8 = vmul.f32 0.7978846, %v724_v45  ;;  %v663_v57 = vmul.f32 %v631_v47, %v491_v28  ;;  %v632_v3 = vmul.f32 0.044715, %v494_v59  ;;  %5088 = vmatpush3.bf16.msra.mxu1 %v5528_v58 }
 0x10b   : > { %5551 = vtanh.f32 %v753_v51  ;;  %v754_v60 = vmul.f32 0.7978846, %v722_v52  ;;  %v661_v61 = vmul.f32 %v629_v54, %v483_v40  ;;  %v630_v9 = vmul.f32 0.044715, %v486_v62 }
 0x10c   : > { %5553 = vtanh.f32 %v756_v8  ;;  %v695_v2 = vmul.f32 %v663_v57, %v491_v28  ;;  %v664_v14 = vmul.f32 %v632_v3, %v494_v59  ;;  %v6172_v32 = vmul.f32 0.5, %v491_v28 }
 0x10d   : > { %5555 = vtanh.f32 %v754_v60  ;;  %v693_v5 = vmul.f32 %v661_v61, %v483_v40  ;;  %v5343_v10 = vpop.f32.mrb[8].mxu0  ;;  %v662_v46 = vmul.f32 %v630_v9, %v486_v62  ;;  %v6175_v44 = vmul.f32 0.5, %v483_v40 }
 0x10e   : > { %v727_v12 = vadd.f32 %v695_v2, %v491_v28  ;;  %v6165_v15 = vadd.f32 %v5343_v10, %v6070_v16  ;;  %v498_v17 = vpop.f32.mrb[9].mxu0  ;;  %v696_v34 = vmul.f32 %v664_v14, %v494_v59  ;;  %v6182_v54 = vmul.f32 0.5, %v494_v59 }
 0x10f   : > { %v725_v20 = vadd.f32 %v693_v5, %v483_v40  ;;  %v499_v23 = vadd.f32 %v6070_v16, %v498_v17  ;;  %v5344_v25 = vpop.f32.mrb[10].mxu0  ;;  %v694_v47 = vmul.f32 %v662_v46, %v486_v62  ;;  %v6184_v61 = vmul.f32 0.5, %v486_v62 }
 0x110   : > { %v759_v53 = vmul.f32 0.7978846, %v727_v12  ;;  %v635_v39 = vmul.f32 0.044715, %v6165_v15  ;;  %v501_v42 = vpop.f32.mrb[11].mxu0  ;;  %v728_v51 = vadd.f32 %v696_v34, %v494_v59  ;;  %v510_v52 = vadd.f32 %v5344_v25, %v6070_v16 }
 0x111   : > { %v757_v45 = vmul.f32 0.7978846, %v725_v20  ;;  %v633_v49 = vmul.f32 0.044715, %v499_v23  ;;  %v726_v8 = vadd.f32 %v694_v47, %v486_v62  ;;  %v502_v14 = vadd.f32 %v6070_v16, %v501_v42 }
 0x112   : > { %5557 = vtanh.f32 %v759_v53  ;;  %v667_v28 = vmul.f32 %v635_v39, %v6165_v15  ;;  %v760_v60 = vmul.f32 0.7978846, %v728_v51  ;;  %v636_v3 = vmul.f32 0.044715, %v510_v52 }
 0x113   : > { %5559 = vtanh.f32 %v757_v45  ;;  %v665_v57 = vmul.f32 %v633_v49, %v499_v23  ;;  %v758_v10 = vmul.f32 0.7978846, %v726_v8 }
 0x114   : > { %v5550_v40 = vpop.eup %5549  ;;  %v699_v2 = vmul.f32 %v667_v28, %v6165_v15  ;;  %5561 = vtanh.f32 %v760_v60  ;;  %v668_v46 = vmul.f32 %v636_v3, %v510_v52 }
 0x115   : > { %v5552_v5 = vpop.eup %5551  ;;  %v819_v9 = vadd.f32 1.0, %v5550_v40  ;;  %v697_v12 = vmul.f32 %v665_v57, %v499_v23  ;;  %v5347_v17 = vpop.f32.mrb[12].mxu0  ;;  %5563 = vtanh.f32 %v758_v10  ;;  %v634_v57 = vmul.f32 0.044715, %v502_v14 }
 0x116   : > { %v5554_v41 = vpop.eup %5553  ;;  %v817_v59 = vadd.f32 1.0, %v5552_v5  ;;  %v731_v20 = vadd.f32 %v699_v2, %v6165_v15  ;;  %v514_v25 = vpop.f32.mrb[13].mxu0  ;;  %v700_v51 = vmul.f32 %v668_v46, %v510_v52  ;;  %v523_v40 = vadd.f32 %v5347_v17, %v6070_v16 }
 0x117   : > { %v5556_v53 = vpop.eup %5555  ;;  %v851_v62 = vmul.f32 %v819_v9, %v595_v0  ;;  %v820_v34 = vadd.f32 1.0, %v5554_v41  ;;  %v729_v39 = vadd.f32 %v697_v12, %v499_v23  ;;  %v5348_v45 = vpop.f32.mrb[14].mxu0  ;;  %v515_v3 = vadd.f32 %v6070_v16, %v514_v25 }
 0x118   : > { %v849_v47 = vmul.f32 %v817_v59, %v593_v4  ;;  %v818_v49 = vadd.f32 1.0, %v5556_v53  ;;  %v763_v58 = vmul.f32 0.7978846, %v731_v20  ;;  %v517_v28 = vpop.f32.mrb[15].mxu0  ;;  %v732_v2 = vadd.f32 %v700_v51, %v510_v52 }
 0x119   : > { %v852_v42 = vmul.f32 %v820_v34, %v596_v11  ;;  %v761_v8 = vmul.f32 0.7978846, %v729_v39  ;;  %v6194_v5 = vmul.f32 0.5, %v6165_v15  ;;  %v6196_v4 = vmul.f32 0.5, %v499_v23  ;;  %v5531_v34 = vld [vmem:[%s7413_s3 + $0x178] sm:$0xff]  }
 0x11a   : > { %v850_v60 = vmul.f32 %v818_v49, %v594_v18  ;;  %5565 = vtanh.f32 %v763_v58  ;;  %v666_v9 = vmul.f32 %v634_v57, %v502_v14  ;;  %v764_v11 = vmul.f32 0.7978846, %v732_v2  ;;  %5089 = vmatprep.subr.bf16.mxu1 %v5531_v34 }
 0x11b   : > { %v6191_v0 = vpack.c.bf16 %v852_v42, %v851_v62  ;;  %5567 = vtanh.f32 %v761_v8  ;;  %v639_v41 = vmul.f32 0.044715, %v523_v40  ;;  %v637_v20 = vmul.f32 0.044715, %v515_v3 }
 0x11c   : > { %v5558_v10 = vpop.eup %5557  ;;  %v6198_v12 = vpack.c.bf16 %v850_v60, %v849_v47  ;;  %v698_v59 = vmul.f32 %v666_v9, %v502_v14  ;;  %v526_v46 = vadd.f32 %v5348_v45, %v6070_v16  ;;  %v6203_v15 = vmul.f32 0.5, %v510_v52  ;;  %v5532_v60 = vld [vmem:[%s7413_s3 + $0x138] sm:$0xff]  }
 0x11d   : > { %v5560_v17 = vpop.eup %5559  ;;  %1016 = vst [vmem:[#allocation2 + $0x38] sm:$0xff] %v6191_v0  ;;  %v823_v18 = vadd.f32 1.0, %v5558_v10  ;;  %v5351_v25 = vpop.f32.mrb[16].mxu0  ;;  %5569 = vtanh.f32 %v764_v11  ;;  %v671_v23 = vmul.f32 %v639_v41, %v523_v40  ;;  %v518_v53 = vadd.f32 %v6070_v16, %v517_v28  ;;  %5090 = vmatpush3.bf16.msra.mxu1 %v5532_v60 }
 0x11e   : > { %1015 = vst [vmem:[#allocation2 + $0x20] sm:$0xff] %v6198_v12  ;;  %v530_v62 = vpop.f32.mrb[17].mxu0  ;;  %3432 = vmatprep.mubr.bf16.mxu1 %v6198_v12  ;;  %v6210_v39 = vmul.f32 0.5, %v502_v14  ;;  %v730_v47 = vadd.f32 %v698_v59, %v502_v14  ;;  %v6212_v45 = vmul.f32 0.5, %v523_v40  ;;  %v669_v49 = vmul.f32 %v637_v20, %v515_v3  ;;  %v5562_v52 = vpop.eup %5561 }
 0x11f   : > { %v5352_v58 = vpop.f32.mrb[18].mxu0  ;;  %v855_v51 = vmul.f32 %v823_v18, %v6172_v32  ;;  %v821_v42 = vadd.f32 1.0, %v5560_v17  ;;  %v703_v8 = vmul.f32 %v671_v23, %v523_v40  ;;  %v640_v28 = vmul.f32 0.044715, %v526_v46  ;;  %v5564_v2 = vpop.eup %5563 }
 0x120   : > { %v533_v57 = vpop.f32.mrb[19].mxu0  ;;  %v824_v9 = vadd.f32 1.0, %v5562_v52  ;;  %v762_v10 = vmul.f32 0.7978846, %v730_v47  ;;  %v701_v14 = vmul.f32 %v669_v49, %v515_v3  ;;  %v638_v11 = vmul.f32 0.044715, %v518_v53 }
 0x121   : > { %v822_v41 = vadd.f32 1.0, %v5564_v2  ;;  %v735_v59 = vadd.f32 %v703_v8, %v523_v40  ;;  %v672_v20 = vmul.f32 %v640_v28, %v526_v46  ;;  %v539_v43 = vadd.f32 %v5351_v25, %v6070_v16 }
 0x122   : > { %v856_v32 = vmul.f32 %v824_v9, %v6182_v54  ;;  %5571 = vtanh.f32 %v762_v10  ;;  %v733_v17 = vadd.f32 %v701_v14, %v515_v3  ;;  %v670_v18 = vmul.f32 %v638_v11, %v518_v53 }
 0x123   : > { %v853_v34 = vmul.f32 %v821_v42, %v6175_v44  ;;  %v854_v63 = vmul.f32 %v822_v41, %v6184_v61  ;;  %v767_v52 = vmul.f32 0.7978846, %v735_v59  ;;  %v704_v47 = vmul.f32 %v672_v20, %v526_v46 }
 0x124   : > { %v5566_v23 = vpop.eup %5565  ;;  %v6222_v49 = vpack.c.bf16 %v856_v32, %v855_v51  ;;  %v6224_v2 = vmul.f32 0.5, %v515_v3  ;;  %v765_v40 = vmul.f32 0.7978846, %v733_v17  ;;  %v702_v8 = vmul.f32 %v670_v18, %v518_v53 }
 0x125   : > { %v6226_v25 = vpop.f32.mrb[20].mxu0  ;;  %v5568_v28 = vpop.eup %5567  ;;  %v6228_v54 = vpack.c.bf16 %v854_v63, %v853_v34  ;;  %v827_v60 = vadd.f32 1.0, %v5566_v23  ;;  %5573 = vtanh.f32 %v767_v52  ;;  %v736_v9 = vadd.f32 %v704_v47, %v526_v46 }
 0x126   : > { %v6230_v10 = vpop.f32.mrb[21].mxu0  ;;  %1018 = vst [vmem:[#allocation2 + $0x68] sm:$0xff] %v6222_v49  ;;  %5575 = vtanh.f32 %v765_v40  ;;  %v6233_v44 = vmul.f32 0.5, %v526_v46  ;;  %v734_v61 = vadd.f32 %v702_v8, %v518_v53  ;;  %v643_v3 = vmul.f32 0.044715, %v539_v43 }
 0x127   : > { %v6235_v51 = vpop.f32.mrb[22].mxu0  ;;  %v5570_v42 = vpop.eup %5569  ;;  %1017 = vst [vmem:[#allocation2 + $0x50] sm:$0xff] %v6228_v54  ;;  %v768_v14 = vmul.f32 0.7978846, %v736_v9  ;;  %v6238_v63 = vmul.f32 0.5, %v518_v53  ;;  %v531_v11 = vadd.f32 %v6070_v16, %v530_v62  ;;  %v6242_v41 = vadd.f32 %v5352_v58, %v6070_v16 }
 0x128   : > { %v6244_v59 = vpop.f32.mrb[23].mxu0  ;;  %v828_v20 = vadd.f32 1.0, %v5570_v42  ;;  %v766_v46 = vmul.f32 0.7978846, %v734_v61  ;;  %v675_v32 = vmul.f32 %v643_v3, %v539_v43  ;;  %v6247_v17 = vadd.f32 %v6070_v16, %v533_v57 }
 0x129   : > { %v859_v18 = vmul.f32 %v827_v60, %v6194_v5  ;;  %v825_v23 = vadd.f32 1.0, %v5568_v28  ;;  %5577 = vtanh.f32 %v768_v14  ;;  %v641_v34 = vmul.f32 0.044715, %v531_v11 }
 0x12a   : > { %v860_v53 = vmul.f32 %v828_v20, %v6203_v15  ;;  %5579 = vtanh.f32 %v766_v46  ;;  %v707_v62 = vmul.f32 %v675_v32, %v539_v43  ;;  %v644_v58 = vmul.f32 0.044715, %v6242_v41  ;;  %v5537_v46 = vld [vmem:[%s7413_s3 + $0x200] sm:$0xff]  }
 0x12b   : > { %v6252_v52 = vmul.f32 0.5, %v539_v43  ;;  %v673_v47 = vmul.f32 %v641_v34, %v531_v11  ;;  %v642_v40 = vmul.f32 0.044715, %v6247_v17  ;;  %v7418_v8 = vshrl.u32 %v6198_v12, 16  ;;  %5365 = vmatprep.subr.bf16.mxu1 %v5537_v46 }
 0x12c   : > { %v5572_v57 = vpop.eup %5571  ;;  %v1004_v9 = vpack.c.bf16 %v860_v53, %v859_v18  ;;  %v739_v61 = vadd.f32 %v707_v62, %v539_v43  ;;  %v676_v5 = vmul.f32 %v644_v58, %v6242_v41  ;;  %v1083_v28 = vshll.u32 %v6198_v12, 16 }
 0x12d   : > { %v6258_v60 = vpop.f32.mrb[24].mxu0  ;;  %v826_v15 = vadd.f32 1.0, %v5572_v57  ;;  %v705_v3 = vmul.f32 %v673_v47, %v531_v11  ;;  %v674_v42 = vmul.f32 %v642_v40, %v6247_v17  ;;  %v1082_v14 = vrot.slane %v7418_v8, 7 }
 0x12e   : > { %v6263_v20 = vpop.f32.mrb[25].mxu0  ;;  %v857_v43 = vmul.f32 %v825_v23, %v6196_v4  ;;  %1020 = vst [vmem:[#allocation2 + $0x98] sm:$0xff] %v1004_v9  ;;  %v771_v32 = vmul.f32 0.7978846, %v739_v61  ;;  %v708_v18 = vmul.f32 %v676_v5, %v6242_v41  ;;  %v1625_v34 = vshrl.u32 %v6191_v0, 16 }
 0x12f   : > { %v6271_v53 = vpop.f32.mrb[26].mxu0  ;;  %v5574_v62 = vpop.eup %5573  ;;  %v858_v58 = vmul.f32 %v826_v15, %v6210_v39  ;;  %v737_v47 = vadd.f32 %v705_v3, %v531_v11  ;;  %v706_v40 = vmul.f32 %v674_v42, %v6247_v17  ;;  %v1085_v57 = vor.u32 %v1083_v28, %v1082_v14  ;;  %v5518_v3 = vld [vmem:[%s7413_s3 + $0x180] sm:$0xff]  }
 0x130   : > { %v6277_v8 = vpop.f32.mrb[27].mxu0  ;;  %v5576_v4 = vpop.eup %5575  ;;  %5581 = vtanh.f32 %v771_v32  ;;  %v6279_v23 = vmul.f32 0.5, %v531_v11  ;;  %v740_v9 = vadd.f32 %v708_v18, %v6242_v41  ;;  %v1627_v61 = vrot.slane %v1625_v34, 7 }
 0x131   : > { %v6282_v5 = vpack.c.bf16 %v858_v58, %v857_v43  ;;  %v769_v36 = vmul.f32 0.7978846, %v737_v47  ;;  %v738_v39 = vadd.f32 %v706_v40, %v6247_v17  ;;  %v1628_v15 = vshll.u32 %v6191_v0, 16  ;;  %v5521_v43 = vld [vmem:[%s7413_s3 + $0x1c8] sm:$0xff]  }
 0x132   : > { %v831_v42 = vadd.f32 1.0, %v5574_v62  ;;  %v772_v14 = vmul.f32 0.7978846, %v740_v9  ;;  %v1086_v11 = vsel %vm889_vm5, %v6072_v21, %v1085_v57  ;;  %v1619_v46 = vsel %vm889_vm5, %v6076_v24, %v1085_v57 }
 0x133   : > { %v5578_v32 = vpop.eup %5577  ;;  %1019 = vst [vmem:[#allocation2 + $0x80] sm:$0xff] %v6282_v5  ;;  %v829_v18 = vadd.f32 1.0, %v5576_v4  ;;  %5583 = vtanh.f32 %v769_v36  ;;  %v770_v34 = vmul.f32 0.7978846, %v738_v39  ;;  %3433 = vmatmul.mubr.bf16.gmra.mrb[4].mxu1 %v1086_v11  ;;  %3585 = vmatprep.mubr.bf16.mxu0 %v1619_v46  ;;  %v1630_v62 = vor.u32 %v1628_v15, %v1627_v61 }
 0x134   : > { %v5580_v58 = vpop.eup %5579  ;;  %v832_v47 = vadd.f32 1.0, %v5578_v32  ;;  %5585 = vtanh.f32 %v772_v14  ;;  %3440 = vmatprep.mubr.bf16.mxu1 %v6191_v0  ;;  %3586 = vmatmul.mubr.bf16.vlgmr.msra.gmra.mrb[32].mxu0 %v6105_v48  ;;  %v555_v21 = vadd.f32 %v6226_v25, %v6070_v16  ;;  %v6303_v24 = vadd.f32 %v6070_v16, %v6230_v10  ;;  %v5522_v48 = vld [vmem:[%s7413_s3 + $0x188] sm:$0xff]   ;;  %v5526_v32 = vld [vmem:[%s7413_s3 + $0x190] sm:$0xff]  }
 0x135   : > { %v6305_v40 = vpop.f32.mrb[28].mxu0  ;;  %v830_v36 = vadd.f32 1.0, %v5580_v58  ;;  %5587 = vtanh.f32 %v770_v34  ;;  %v1631_v57 = vsel %vm889_vm5, %v6074_v22, %v1630_v62  ;;  %v6311_v4 = vadd.f32 %v6235_v51, %v6070_v16  ;;  %5188 = vmatpush3.bf16.msra.mxu0 %v5518_v3  ;;  %v5525_v51 = vld [vmem:[%s7413_s3 + $0x1d0] sm:$0xff]  }
 0x136   : > { %v6313_v0 = vpop.f32.mrb[29].mxu0  ;;  %v863_v25 = vmul.f32 %v831_v42, %v6212_v45  ;;  %v864_v10 = vmul.f32 %v832_v47, %v6233_v44  ;;  %v6321_v9 = vmul.f32 0.5, %v6242_v41  ;;  %3593 = vmatprep.mubr.bf16.mxu0 %v1631_v57  ;;  %v647_v22 = vmul.f32 0.044715, %v555_v21  ;;  %5189 = vmatprep.subr.bf16.mxu0 %v5521_v43 }
 0x137   : > { %v6323_v61 = vpop.f32.mrb[30].mxu0  ;;  %v861_v39 = vmul.f32 %v829_v18, %v6224_v2  ;;  %v862_v15 = vmul.f32 %v830_v36, %v6238_v63  ;;  %v645_v45 = vmul.f32 0.044715, %v6303_v24  ;;  %v648_v44 = vmul.f32 0.044715, %v6311_v4 }
 0x138   : > { %v6332_v3 = vpop.f32.mrb[31].mxu0  ;;  %v1006_v41 = vpack.c.bf16 %v864_v10, %v863_v25  ;;  %v610_v42 = vmul.f32 0.5, %v6247_v17  ;;  %v679_v14 = vmul.f32 %v647_v22, %v555_v21  ;;  %v6337_v11 = vadd.f32 %v6070_v16, %v6244_v59 }
 0x139   : > { %v1005_v46 = vpack.c.bf16 %v862_v15, %v861_v39  ;;  %v677_v43 = vmul.f32 %v645_v45, %v6303_v24  ;;  %v680_v2 = vmul.f32 %v648_v44, %v6311_v4  ;;  %v1369_v63 = vrot.slane %v1083_v28, 1  ;;  %5190 = vmatpush3.bf16.msra.mxu0 %v5522_v48  ;;  %v5529_v28 = vld [vmem:[%s7413_s3 + $0x1d8] sm:$0xff]  }
 0x13a   : > { %v5582_v18 = vpop.eup %5581  ;;  %1022 = vst [vmem:[#allocation2 + $0xc8] sm:$0xff] %v1006_v41  ;;  %v711_v17 = vmul.f32 %v679_v14, %v555_v21  ;;  %v1098_v59 = vsel %vm889_vm5, %v6078_v26, %v1630_v62  ;;  %v646_v34 = vmul.f32 0.044715, %v6337_v11  ;;  %v1637_v58 = vshrl.u32 %v6228_v54, 16  ;;  %5191 = vmatprep.subr.bf16.mxu0 %v5525_v51 }
 0x13b   : > { %1021 = vst [vmem:[#allocation2 + $0xb0] sm:$0xff] %v1005_v46  ;;  %v835_v47 = vadd.f32 1.0, %v5582_v18  ;;  %v709_v36 = vmul.f32 %v677_v43, %v6303_v24  ;;  %v712_v57 = vmul.f32 %v680_v2, %v6311_v4  ;;  %3441 = vmatmul.mubr.bf16.gmra.mrb[8].mxu1 %v1098_v59  ;;  %v7429_v48 = vshrl.u32 %v6198_v12, 16  ;;  %v5530_v12 = vld [vmem:[%s7413_s3 + $0x198] sm:$0xff]   ;;  %v5533_v43 = vld [vmem:[%s7413_s3 + $0x1e0] sm:$0xff]  }
 0x13c   : > { %v743_v26 = vadd.f32 %v711_v17, %v555_v21  ;;  %v678_v62 = vmul.f32 %v646_v34, %v6337_v11  ;;  %3448 = vmatprep.mubr.bf16.mxu1 %v6228_v54  ;;  %v1639_v10 = vrot.slane %v1637_v58, 7  ;;  %v1640_v22 = vshll.u32 %v6228_v54, 16  ;;  %v1323_v17 = vld [vmem:[#allocation2 + $0x38] sm:$0xff] }
 0x13d   : > { %v1370_v25 = vor.u32 %v1369_v63, %v7429_v48  ;;  %v5584_v51 = vpop.eup %5583  ;;  %v6360_v39 = vmul.f32 0.5, %v555_v21  ;;  %v741_v15 = vadd.f32 %v709_v36, %v6303_v24  ;;  %v744_v45 = vadd.f32 %v712_v57, %v6311_v4  ;;  %5192 = vmatpush3.bf16.msra.mxu0 %v5526_v32 }
 0x13e   : > { %v5586_v41 = vpop.eup %5585  ;;  %v833_v14 = vadd.f32 1.0, %v5584_v51  ;;  %v775_v46 = vmul.f32 0.7978846, %v743_v26  ;;  %v710_v54 = vmul.f32 %v678_v62, %v6337_v11  ;;  %v1642_v21 = vor.u32 %v1640_v22, %v1639_v10  ;;  %5193 = vmatprep.subr.bf16.mxu0 %v5529_v28  ;;  %v6392_v62 = vld [vmem:[#allocation2 + $0x68] sm:$0xff] }
 0x13f   : > { %v1375_v44 = vsel %vm1351_vm8, %v1370_v25, %v6080_v27  ;;  %v5588_v2 = vpop.eup %5587  ;;  %v867_v27 = vmul.f32 %v835_v47, %v6252_v52  ;;  %v836_v63 = vadd.f32 1.0, %v5586_v41  ;;  %v773_v32 = vmul.f32 0.7978846, %v741_v15  ;;  %v5534_v52 = vld [vmem:[%s7413_s3 + $0x1a0] sm:$0xff]  }
 0x140   : > { %3594 = vmatmul.mubr.bf16.gmra.mrb[36].mxu0 %v1375_v44  ;;  %v776_v18 = vmul.f32 0.7978846, %v744_v45  ;;  %v865_v59 = vmul.f32 %v833_v14, %v6279_v23  ;;  %v834_v34 = vadd.f32 1.0, %v5588_v2  ;;  %5589 = vtanh.f32 %v775_v46 }
 0x141   : > { %v742_v58 = vadd.f32 %v710_v54, %v6337_v11  ;;  %v868_v36 = vmul.f32 %v836_v63, %v6321_v9  ;;  %5591 = vtanh.f32 %v773_v32  ;;  %v1643_v28 = vsel %vm889_vm5, %v6082_v29, %v1642_v21  ;;  %5194 = vmatpush3.bf16.msra.mxu0 %v5530_v12  ;;  %v5535_v9 = vld [vmem:[%s7413_s3 + $0x1e8] sm:$0xff]  }
 0x142   : > { %v1110_v57 = vsel %vm889_vm5, %v6084_v30, %v1642_v21  ;;  %v866_v47 = vmul.f32 %v834_v34, %v610_v42  ;;  %5593 = vtanh.f32 %v776_v18  ;;  %3601 = vmatprep.mubr.bf16.mxu0 %v1643_v28  ;;  %v1379_v48 = vshll.u32 %v1323_v17, 16  ;;  %5195 = vmatprep.subr.bf16.mxu0 %v5533_v43  ;;  %v1325_v21 = vld [vmem:[#allocation2 + $0x50] sm:$0xff] }
 0x143   : > { %v774_v23 = vmul.f32 0.7978846, %v742_v58  ;;  %v1008_v25 = vpack.c.bf16 %v868_v36, %v867_v27  ;;  %3449 = vmatmul.mubr.bf16.gmra.mrb[12].mxu1 %v1110_v57  ;;  %v1377_v29 = vshrl.u32 %v1323_v17, 16  ;;  %v1649_v30 = vshrl.u32 %v6222_v49, 16 }
 0x144   : > { %v6390_v26 = vadd.f32 %v6258_v60, %v6070_v16  ;;  %v6394_v42 = vpack.c.bf16 %v866_v47, %v865_v59  ;;  %3456 = vmatprep.mubr.bf16.mxu1 %v6222_v49  ;;  %v1381_v10 = vrot.slane %v1379_v48, 1  ;;  %v6399_v22 = vadd.f32 %v6070_v16, %v6263_v20 }
 0x145   : > { %5595 = vtanh.f32 %v774_v23  ;;  %1024 = vst [vmem:[#allocation2 + $0xf8] sm:$0xff] %v1008_v25  ;;  %v1651_v51 = vrot.slane %v1649_v30, 7  ;;  %v1652_v15 = vshll.u32 %v6222_v49, 16  ;;  %v6405_v60 = vadd.f32 %v6271_v53, %v6070_v16  ;;  %5196 = vmatpush3.bf16.msra.mxu0 %v5534_v52  ;;  %v5536_v49 = vld [vmem:[%s7413_s3 + $0x1a8] sm:$0xff]  }
 0x146   : > { %v651_v45 = vmul.f32 0.044715, %v6390_v26  ;;  %1023 = vst [vmem:[#allocation2 + $0xe0] sm:$0xff] %v6394_v42  ;;  %v613_v44 = vmul.f32 0.5, %v6303_v24  ;;  %v1382_v12 = vor.u32 %v1381_v10, %v1377_v29  ;;  %v649_v41 = vmul.f32 0.044715, %v6399_v22  ;;  %5197 = vmatprep.subr.bf16.mxu0 %v5535_v9 }
 0x147   : > { %v1116_v20 = vshrl.u32 %v6392_v62, 16  ;;  %v616_v14 = vmul.f32 0.5, %v6311_v4  ;;  %v1654_v46 = vor.u32 %v1652_v15, %v1651_v51  ;;  %v652_v54 = vmul.f32 0.044715, %v6405_v60  ;;  %v5538_v24 = vld [vmem:[%s7413_s3 + $0x1f0] sm:$0xff]  }
 0x148   : > { %v683_v53 = vmul.f32 %v651_v45, %v6390_v26  ;;  %v1387_v43 = vsel %vm1351_vm8, %v1382_v12, %v6086_v31  ;;  %v681_v2 = vmul.f32 %v649_v41, %v6399_v22  ;;  %v1119_v4 = vshll.u32 %v6392_v62, 16 }
 0x149   : > { %v1118_v27 = vrot.slane %v1116_v20, 7  ;;  %3602 = vmatmul.mubr.bf16.gmra.mrb[40].mxu0 %v1387_v43  ;;  %v1655_v63 = vsel %vm889_vm5, %v6088_v35, %v1654_v46  ;;  %v684_v18 = vmul.f32 %v652_v54, %v6405_v60  ;;  %v6432_v17 = vadd.f32 %v6070_v16, %v6277_v8  ;;  %v5539_v35 = vld [vmem:[%s7413_s3 + $0x1b0] sm:$0xff]  }
 0x14a   : > { %v715_v32 = vmul.f32 %v683_v53, %v6390_v26  ;;  %v5590_v31 = vpop.eup %5589  ;;  %v614_v59 = vmul.f32 0.5, %v6337_v11  ;;  %3609 = vmatprep.mubr.bf16.mxu0 %v1655_v63  ;;  %v713_v34 = vmul.f32 %v681_v2, %v6399_v22  ;;  %v1391_v36 = vshll.u32 %v1325_v21, 16  ;;  %5198 = vmatpush3.bf16.msra.mxu0 %v5536_v49  ;;  %v5540_v11 = vld [vmem:[%s7413_s3 + $0x1f8] sm:$0xff]  }
 0x14b   : > { %v1121_v58 = vor.u32 %v1119_v4, %v1118_v27  ;;  %v5592_v28 = vpop.eup %5591  ;;  %v839_v57 = vadd.f32 1.0, %v5590_v31  ;;  %v716_v16 = vmul.f32 %v684_v18, %v6405_v60  ;;  %v1389_v8 = vshrl.u32 %v1325_v21, 16  ;;  %5199 = vmatprep.subr.bf16.mxu0 %v5538_v24  ;;  %v6457_v24 = vld [vmem:[#allocation2 + $0x98] sm:$0xff] }
 0x14c   : > { %v747_v52 = vadd.f32 %v715_v32, %v6390_v26  ;;  %v5594_v47 = vpop.eup %5593  ;;  %v837_v23 = vadd.f32 1.0, %v5592_v28  ;;  %v745_v48 = vadd.f32 %v713_v34, %v6399_v22  ;;  %v650_v25 = vmul.f32 0.044715, %v6432_v17 }
 0x14d   : > { %v1122_v9 = vsel %vm889_vm5, %v6090_v37, %v1121_v58  ;;  %v871_v29 = vmul.f32 %v839_v57, %v6360_v39  ;;  %v840_v30 = vadd.f32 1.0, %v5594_v47  ;;  %v748_v51 = vadd.f32 %v716_v16, %v6405_v60  ;;  %v5541_v37 = vld [vmem:[%s7413_s3 + $0x1b8] sm:$0xff]  }
 0x14e   : > { %v779_v10 = vmul.f32 0.7978846, %v747_v52  ;;  %3457 = vmatmul.mubr.bf16.gmra.mrb[16].mxu1 %v1122_v9  ;;  %v869_v45 = vmul.f32 %v837_v23, %v613_v44  ;;  %v777_v12 = vmul.f32 0.7978846, %v745_v48  ;;  %v682_v41 = vmul.f32 %v650_v25, %v6432_v17  ;;  %5200 = vmatpush3.bf16.msra.mxu0 %v5539_v35 }
 0x14f   : > { %v5596_v15 = vpop.eup %5595  ;;  %3464 = vmatprep.mubr.bf16.mxu1 %v6282_v5  ;;  %v1393_v49 = vrot.slane %v1391_v36, 1  ;;  %v872_v46 = vmul.f32 %v840_v30, %v616_v14  ;;  %v780_v53 = vmul.f32 0.7978846, %v748_v51  ;;  %5201 = vmatprep.subr.bf16.mxu0 %v5540_v11  ;;  %v1661_v21 = vshrl.u32 %v6282_v5, 16 }
 0x150   : > { %v838_v39 = vadd.f32 1.0, %v5596_v15  ;;  %5597 = vtanh.f32 %v779_v10  ;;  %v714_v54 = vmul.f32 %v682_v41, %v6432_v17  ;;  %v1664_v27 = vshll.u32 %v6282_v5, 16  ;;  %v5677_v5 = vld [vmem:[%s7412_s2] ss:$0 sm:$0xff] }
 0x151   : > { %5599 = vtanh.f32 %v777_v12  ;;  %v1394_v44 = vor.u32 %v1393_v49, %v1389_v8  ;;  %v1010_v43 = vpack.c.bf16 %v872_v46, %v871_v29  ;;  %v1663_v32 = vrot.slane %v1661_v21, 7 }
 0x152   : > { %v870_v2 = vmul.f32 %v838_v39, %v614_v59  ;;  %5601 = vtanh.f32 %v780_v53  ;;  %v746_v63 = vadd.f32 %v714_v54, %v6432_v17  ;;  %v1405_v18 = vrot.slane %v1119_v4, 1  ;;  %5202 = vmatpush3.bf16.msra.mxu0 %v5541_v37 }
 0x153   : > { %v1399_v14 = vsel %vm1351_vm8, %v1394_v44, %v6092_v38  ;;  %1026 = vst [vmem:[#allocation2 + $0x128] sm:$0xff] %v1010_v43  ;;  %v619_v34 = vmul.f32 0.5, %v6390_v26  ;;  %v1673_v58 = vshrl.u32 %v6457_v24, 16  ;;  %v6471_v59 = vadd.f32 %v5677_v5, %v6305_v40 }
 0x154   : > { %v6463_v31 = vpack.c.bf16 %v870_v2, %v869_v45  ;;  %3610 = vmatmul.mubr.bf16.gmra.mrb[44].mxu0 %v1399_v14  ;;  %v778_v36 = vmul.f32 0.7978846, %v746_v63  ;;  %v1666_v38 = vor.u32 %v1664_v27, %v1663_v32  ;;  %v1406_v4 = vor.u32 %v1405_v18, %v1116_v20  ;;  %v1329_v20 = vld [vmem:[#allocation2 + $0x80] sm:$0xff]  ;;  %v6514_v45 = vld [vmem:[#allocation2 + $0xb0] sm:$0xff]  ;;  %v6523_v32 = vld [vmem:[#allocation2 + $0xc8] sm:$0xff] }
 0x155   : > { %v6476_v35 = vadd.f32 %v5677_v5, %v6313_v0  ;;  %v1675_v26 = vrot.slane %v1673_v58, 7  ;;  %v1676_v28 = vshll.u32 %v6457_v24, 16  ;;  %v655_v57 = vmul.f32 0.044715, %v6471_v59 }
 0x156   : > { %1025 = vst [vmem:[#allocation2 + $0x110] sm:$0xff] %v6463_v31  ;;  %v6484_v40 = vadd.f32 %v5677_v5, %v6323_v61  ;;  %v617_v52 = vmul.f32 0.5, %v6399_v22  ;;  %5603 = vtanh.f32 %v778_v36  ;;  %v1667_v62 = vsel %vm889_vm5, %v6111_v55, %v1666_v38 }
 0x157   : > { %v1134_v0 = vsel %vm889_vm5, %v6130_v6, %v1666_v38  ;;  %v620_v16 = vmul.f32 0.5, %v6405_v60  ;;  %3617 = vmatprep.mubr.bf16.mxu0 %v1667_v62  ;;  %v1678_v8 = vor.u32 %v1676_v28, %v1675_v26  ;;  %v687_v61 = vmul.f32 %v655_v57, %v6471_v59 }
 0x158   : > { %3465 = vmatmul.mubr.bf16.gmra.mrb[20].mxu1 %v1134_v0  ;;  %v653_v11 = vmul.f32 0.044715, %v6476_v35  ;;  %v618_v22 = vmul.f32 0.5, %v6432_v17  ;;  %v1411_v55 = vsel %vm1351_vm8, %v1406_v4, %v6126_v1  ;;  %v656_v6 = vmul.f32 0.044715, %v6484_v40 }
 0x159   : > { %3472 = vmatprep.mubr.bf16.mxu1 %v6457_v24  ;;  %v6502_v60 = vadd.f32 %v5677_v5, %v6332_v3  ;;  %v1679_v23 = vsel %vm889_vm5, %v6132_v7, %v1678_v8  ;;  %v719_v48 = vmul.f32 %v687_v61, %v6471_v59  ;;  %v1413_v25 = vshrl.u32 %v1329_v20, 16  ;;  %v1590_v4 = vld [vmem:[#allocation2 + $0xc0] sm:$0x80]  ;;  %v1049_v24 = vld [vmem:[#allocation2 + $0xd8] sm:$0x80] }
 0x15a   : > { %v5598_v47 = vpop.eup %5597  ;;  %v685_v9 = vmul.f32 %v653_v11, %v6476_v35  ;;  %v688_v30 = vmul.f32 %v656_v6, %v6484_v40  ;;  %v1146_v1 = vsel %vm889_vm5, %v6142_v19, %v1678_v8  ;;  %v1415_v12 = vshll.u32 %v1329_v20, 16 }
 0x15b   : > { %v5600_v17 = vpop.eup %5599  ;;  %v843_v29 = vadd.f32 1.0, %v5598_v47  ;;  %v654_v10 = vmul.f32 0.044715, %v6502_v60  ;;  %v751_v15 = vadd.f32 %v719_v48, %v6471_v59  ;;  %v1685_v2 = vshrl.u32 %v6514_v45, 16 }
 0x15c   : > { %v5602_v3 = vpop.eup %5601  ;;  %v841_v51 = vadd.f32 1.0, %v5600_v17  ;;  %3618 = vmatmul.mubr.bf16.gmra.mrb[48].mxu0 %v1411_v55  ;;  %v717_v7 = vmul.f32 %v685_v9, %v6476_v35  ;;  %v720_v37 = vmul.f32 %v688_v30, %v6484_v40  ;;  %v1417_v54 = vrot.slane %v1415_v12, 1  ;;  %v6541_v55 = vld [vmem:[#allocation2 + $0xe0] sm:$0xff] }
 0x15d   : > { %v875_v41 = vmul.f32 %v843_v29, %v619_v34  ;;  %v844_v49 = vadd.f32 1.0, %v5602_v3  ;;  %3625 = vmatprep.mubr.bf16.mxu0 %v1679_v23  ;;  %v686_v46 = vmul.f32 %v654_v10, %v6502_v60  ;;  %v783_v39 = vmul.f32 0.7978846, %v751_v15  ;;  %v1334_v23 = vld [vmem:[#allocation2 + $0xb8] sm:$0x1] }
 0x15e   : > { %v873_v19 = vmul.f32 %v841_v51, %v617_v52  ;;  %v749_v53 = vadd.f32 %v717_v7, %v6476_v35  ;;  %v752_v21 = vadd.f32 %v720_v37, %v6484_v40  ;;  %v1418_v63 = vor.u32 %v1417_v54, %v1413_v25  ;;  %v1592_v29 = vld [vmem:[#allocation2 + $0xd8] sm:$0x80] }
 0x15f   : > { %v876_v44 = vmul.f32 %v844_v49, %v620_v16  ;;  %v718_v43 = vmul.f32 %v686_v46, %v6502_v60  ;;  %5605 = vtanh.f32 %v783_v39  ;;  %v1688_v14 = vshll.u32 %v6514_v45, 16  ;;  %v1047_v16 = vld [vmem:[#allocation2 + $0xc0] sm:$0x80]  ;;  %v6562_v46 = vld [vmem:[#allocation2 + $0xf8] sm:$0xff] }
 0x160   : > { %v781_v27 = vmul.f32 0.7978846, %v749_v53  ;;  %3473 = vmatmul.mubr.bf16.gmra.mrb[24].mxu1 %v1146_v1  ;;  %v5604_v18 = vpop.eup %5603  ;;  %v784_v5 = vmul.f32 0.7978846, %v752_v21  ;;  %v1687_v38 = vrot.slane %v1685_v2, 7  ;;  %v1423_v57 = vsel %vm1351_vm8, %v1418_v63, %v6147_v33 }
 0x161   : > { %v6525_v34 = vpack.c.bf16 %v876_v44, %v875_v41  ;;  %v750_v36 = vadd.f32 %v718_v43, %v6502_v60  ;;  %3480 = vmatprep.mubr.bf16.mxu1 %v6514_v45  ;;  %v842_v26 = vadd.f32 1.0, %v5604_v18  ;;  %v1429_v52 = vrot.slane %v1676_v28, 1  ;;  %v939_v18 = vld [vmem:[#allocation2 + $0x138] sm:$0x80] }
 0x162   : > { %5607 = vtanh.f32 %v781_v27  ;;  %v1690_v0 = vor.u32 %v1688_v14, %v1687_v38  ;;  %v1697_v20 = vshrl.u32 %v6523_v32, 16  ;;  %v1693_v61 = vshrl.u32 %v1590_v4, 16 }
 0x163   : > { %1028 = vst [vmem:[#allocation2 + $0x158] sm:$0xff] %v6525_v34  ;;  %5609 = vtanh.f32 %v784_v5  ;;  %v782_v62 = vmul.f32 0.7978846, %v750_v36  ;;  %v874_v8 = vmul.f32 %v842_v26, %v618_v22  ;;  %v1700_v6 = vshll.u32 %v6523_v32, 16  ;;  %v1336_v26 = vld [vmem:[#allocation2 + $0xd0] sm:$0x1] }
 0x164   : > { %3626 = vmatmul.mubr.bf16.gmra.mrb[52].mxu0 %v1423_v57  ;;  %v1691_v11 = vsel %vm889_vm5, %v6154_v50, %v1690_v0  ;;  %v1699_v33 = vrot.slane %v1697_v20, 7  ;;  %v1160_v47 = vshrl.u32 %v1047_v16, 16  ;;  %v1158_v22 = vsel %vm889_vm5, %v6157_v56, %v1690_v0 }
 0x165   : > { %5611 = vtanh.f32 %v782_v62  ;;  %v6543_v28 = vpack.c.bf16 %v874_v8, %v873_v19  ;;  %3633 = vmatprep.mubr.bf16.mxu0 %v1691_v11  ;;  %v1430_v48 = vor.u32 %v1673_v58, %v1429_v52  ;;  %v7430_v50 = vshll.u32 %v6136_v13, 16  ;;  %v5545_v62 = vld [vmem:[%s7413_s3 + $0x220] sm:$0xff]  }
 0x166   : > { %v1695_v25 = vrot.slane %v1693_v61, 7  ;;  %v1702_v17 = vor.u32 %v1700_v6, %v1699_v33  ;;  %v1709_v30 = vshrl.u32 %v6541_v55, 16  ;;  %v1444_v1 = vshll.u32 %v1334_v23, 16  ;;  %v942_v61 = vld [vmem:[#allocation2 + $0x150] sm:$0x80] }
 0x167   : > { %v1434_v9 = vrot.slane %v7430_v50, 1  ;;  %1027 = vst [vmem:[#allocation2 + $0x140] sm:$0xff] %v6543_v28  ;;  %v623_v56 = vmul.f32 0.5, %v6471_v59  ;;  %v1162_v3 = vrot.slane %v1160_v47, 7  ;;  %v1441_v51 = vrot.slane %v1688_v14, 1 }
 0x168   : > { %3481 = vmatmul.mubr.bf16.gmra.mrb[28].mxu1 %v1158_v22  ;;  %v1705_v15 = vshrl.u32 %v1592_v29, 16  ;;  %v621_v12 = vmul.f32 0.5, %v6476_v35  ;;  %v624_v41 = vmul.f32 0.5, %v6484_v40  ;;  %v1703_v49 = vsel %vm889_vm5, %v1695_v25, %v1702_v17  ;;  %v1051_v23 = vld [vmem:[#allocation2 + $0xf0] sm:$0x80] }
 0x169   : > { %3488 = vmatprep.mubr.bf16.mxu1 %v6523_v32  ;;  %v5606_v10 = vpop.eup %5605  ;;  %v1435_v13 = vsel %vm1351_vm8, %v1430_v48, %v1434_v9  ;;  %v1711_v37 = vrot.slane %v1709_v30, 7  ;;  %v1446_v39 = vrot.slane %v1444_v1, 1  ;;  %v1172_v53 = vshrl.u32 %v1049_v24, 16  ;;  %v987_v22 = vld [vmem:[#allocation2 + $0x148] sm:$0x1] }
 0x16a   : > { %v847_v58 = vadd.f32 1.0, %v5606_v10  ;;  %v622_v21 = vmul.f32 0.5, %v6502_v60  ;;  %v1712_v35 = vshll.u32 %v6541_v55, 16  ;;  %v1170_v43 = vsel %vm889_vm5, %v1162_v3, %v1702_v17  ;;  %v1594_v60 = vld [vmem:[#allocation2 + $0xf0] sm:$0x80] }
 0x16b   : > { %v1442_v27 = vor.u32 %v1685_v2, %v1441_v51  ;;  %v1707_v63 = vrot.slane %v1705_v15, 7  ;;  %v1721_v14 = vshrl.u32 %v6562_v46, 16  ;;  %v940_v45 = vsel %vm5922_vm4, 0, %v939_v18  ;;  %v945_v50 = vld [vmem:[#allocation2 + $0x168] sm:$0x80] }
 0x16c   : > { %v5608_v7 = vpop.eup %5607  ;;  %3634 = vmatmul.mubr.bf16.gmra.mrb[56].mxu0 %v1435_v13  ;;  %v879_v54 = vmul.f32 %v847_v58, %v623_v56  ;;  %v1714_v4 = vor.u32 %v1712_v35, %v1711_v37  ;;  %v1174_v0 = vrot.slane %v1172_v53, 7  ;;  %v1453_v16 = vrot.slane %v1700_v6, 1  ;;  %941 = vst [vmem:[#allocation2 + $0x138] sm:$0x80] %v940_v45  ;;  %v990_v1 = vld [vmem:[#allocation2 + $0x160] sm:$0x1] }
 0x16d   : > { %v5610_v59 = vpop.eup %5609  ;;  %v845_v19 = vadd.f32 1.0, %v5608_v7  ;;  %3641 = vmatprep.mubr.bf16.mxu0 %v1703_v49  ;;  %v1447_v2 = vsel %vm1351_vm8, %v1442_v27, %v1446_v39  ;;  %v1456_v8 = vshll.u32 %v1336_v26, 16  ;;  %v1717_v33 = vshrl.u32 %v1594_v60, 16  ;;  %v1338_v3 = vld [vmem:[#allocation2 + $0xe8] sm:$0x1] }
 0x16e   : > { %v848_v44 = vadd.f32 1.0, %v5610_v59  ;;  %v1723_v47 = vrot.slane %v1721_v14, 7  ;;  %v1724_v6 = vshll.u32 %v6562_v46, 16  ;;  %v943_v48 = vsel %vm5922_vm4, 0, %v942_v61  ;;  %v1596_v51 = vld [vmem:[#allocation2 + $0x108] sm:$0x80] }
 0x16f   : > { %v5612_v40 = vpop.eup %5611  ;;  %v877_v5 = vmul.f32 %v845_v19, %v621_v12  ;;  %v1182_v9 = vsel %vm889_vm5, %v1174_v0, %v1714_v4  ;;  %v1454_v25 = vor.u32 %v1697_v20, %v1453_v16  ;;  %v1458_v17 = vrot.slane %v1456_v8, 1  ;;  %944 = vst [vmem:[#allocation2 + $0x150] sm:$0x80] %v943_v48  ;;  %v948_v15 = vld [vmem:[#allocation2 + $0x180] sm:$0x80]  ;;  %v6619_v61 = vld [vmem:[#allocation2 + $0x110] sm:$0xff] }
 0x170   : > { %v880_v36 = vmul.f32 %v848_v44, %v624_v41  ;;  %v846_v38 = vadd.f32 1.0, %v5612_v40  ;;  %3489 = vmatmul.mubr.bf16.gmra.mrb[32].mxu1 %v1170_v43  ;;  %v1184_v29 = vshrl.u32 %v1051_v23, 16  ;;  %v1719_v10 = vrot.slane %v1717_v33, 7  ;;  %v1053_v53 = vld [vmem:[#allocation2 + $0x108] sm:$0x80]  ;;  %v6604_v40 = vpop.f32.mrb[0].mxu1 }
 0x171   : > { %3496 = vmatprep.mubr.bf16.mxu1 %v6394_v42  ;;  %v1715_v42 = vsel %vm889_vm5, %v1707_v63, %v1714_v4  ;;  %v1726_v56 = vor.u32 %v1724_v6, %v1723_v47  ;;  %v1733_v24 = vshrl.u32 %v6463_v31, 16  ;;  %v988_v13 = vsel %vm5977_vm7, 0, %v987_v22  ;;  %v1340_v18 = vld [vmem:[#allocation2 + $0x100] sm:$0x1]  ;;  %v6612_v26 = vpop.f32.mrb[1].mxu1 }
 0x172   : > { %v6571_v57 = vpack.c.bf16 %v880_v36, %v879_v54  ;;  %v878_v52 = vmul.f32 %v846_v38, %v622_v21  ;;  %989 = vst [vmem:[#allocation2 + $0x148] sm:$0x1] %v988_v13  ;;  %v946_v32 = vsel %vm5922_vm4, 0, %v945_v50  ;;  %v991_v20 = vsel %vm5977_vm7, 0, %v990_v1  ;;  %v6600_v54 = vld [vmem:[#allocation2 + $0x128] sm:$0xff] }
 0x173   : > { %947 = vst [vmem:[#allocation2 + $0x168] sm:$0x80] %v946_v32  ;;  %v1459_v7 = vsel %vm1351_vm8, %v1454_v25, %v1458_v17  ;;  %v1186_v12 = vrot.slane %v1184_v29, 7  ;;  %v1465_v41 = vrot.slane %v1712_v35, 1  ;;  %v1468_v49 = vshll.u32 %v1338_v3, 16 }
 0x174   : > { %1030 = vst [vmem:[#allocation2 + $0x188] sm:$0xff] %v6571_v57  ;;  %v6577_v11 = vpack.c.bf16 %v878_v52, %v877_v5  ;;  %3642 = vmatmul.mubr.bf16.gmra.mrb[60].mxu0 %v1447_v2  ;;  %992 = vst [vmem:[#allocation2 + $0x160] sm:$0x1] %v991_v20  ;;  %v1727_v37 = vsel %vm889_vm5, %v1719_v10, %v1726_v56  ;;  %v1729_v59 = vshrl.u32 %v1596_v51, 16  ;;  %v1735_v19 = vrot.slane %v1733_v24, 7 }
 0x175   : > { %3649 = vmatprep.mubr.bf16.mxu0 %v1715_v42  ;;  %v1736_v39 = vshll.u32 %v6463_v31, 16  ;;  %v949_v44 = vsel %vm5922_vm4, 0, %v948_v15  ;;  %v993_v21 = vld [vmem:[#allocation2 + $0x178] sm:$0x1]  ;;  %v1194_v35 = vsel %vm889_vm5, %v1186_v12, %v1726_v56  ;;  %v1466_v43 = vor.u32 %v1709_v30, %v1465_v41  ;;  %v1598_v60 = vld [vmem:[#allocation2 + $0x120] sm:$0x80] }
 0x176   : > { %1029 = vst [vmem:[#allocation2 + $0x170] sm:$0xff] %v6577_v11  ;;  %950 = vst [vmem:[#allocation2 + $0x180] sm:$0x80] %v949_v44  ;;  %v1470_v27 = vrot.slane %v1468_v49, 1  ;;  %v1196_v63 = vshrl.u32 %v1053_v53, 16  ;;  %v1731_v5 = vrot.slane %v1729_v59, 7 }
 0x177   : > { %v1738_v36 = vor.u32 %v1736_v39, %v1735_v19  ;;  %v1745_v38 = vshrl.u32 %v6600_v54, 16  ;;  %v994_v4 = vsel %vm5977_vm7, 0, %v993_v21  ;;  %v1480_v52 = vshll.u32 %v1340_v18, 16  ;;  %v1055_v8 = vld [vmem:[#allocation2 + $0x120] sm:$0x80]  ;;  %v6621_v42 = vpop.f32.mrb[2].mxu1 }
 0x178   : > { %3497 = vmatmul.mubr.bf16.gmra.mrb[36].mxu1 %v1182_v9  ;;  %995 = vst [vmem:[#allocation2 + $0x178] sm:$0x1] %v994_v4  ;;  %v1471_v55 = vsel %vm1351_vm8, %v1466_v43, %v1470_v27  ;;  %v1198_v30 = vrot.slane %v1196_v63, 7  ;;  %v1477_v45 = vrot.slane %v1724_v6, 1  ;;  %v1741_v0 = vshrl.u32 %v1598_v60, 16  ;;  %v6646_v19 = vld [vmem:[#allocation2 + $0x158] sm:$0xff] }
 0x179   : > { %3504 = vmatprep.mubr.bf16.mxu1 %v6562_v46  ;;  %v1739_v2 = vsel %vm889_vm5, %v1731_v5, %v1738_v36  ;;  %v1747_v16 = vrot.slane %v1745_v38, 7  ;;  %v1482_v33 = vrot.slane %v1480_v52, 1  ;;  %v1748_v47 = vshll.u32 %v6600_v54, 16  ;;  %v1342_v25 = vld [vmem:[#allocation2 + $0x118] sm:$0x1] }
 0x17a   : > { %v1206_v23 = vsel %vm889_vm5, %v1198_v30, %v1738_v36  ;;  %v1478_v22 = vor.u32 %v1721_v14, %v1477_v45  ;;  %v1208_v6 = vshrl.u32 %v1055_v8, 16  ;;  %v1487_v48 = vshll.u32 %v6619_v61, 16  ;;  %v1600_v29 = vld [vmem:[#allocation2 + $0x138] sm:$0x80]  ;;  %v1344_v41 = vld [vmem:[#allocation2 + $0x130] sm:$0x1] }
 0x17b   : > { %v1743_v50 = vrot.slane %v1741_v0, 7  ;;  %v1750_v9 = vor.u32 %v1748_v47, %v1747_v16  ;;  %v1757_v17 = vshrl.u32 %v6543_v28, 16  ;;  %v1492_v46 = vshll.u32 %v1342_v25, 16  ;;  %v1057_v13 = vld [vmem:[#allocation2 + $0x138] sm:$0x80]  ;;  %v6659_v45 = vld [vmem:[#allocation2 + $0x20] sm:$0xff] }
 0x17c   : > { %3650 = vmatmul.mubr.bf16.gmra.mrb[64].mxu0 %v1459_v7  ;;  %v1483_v1 = vsel %vm1351_vm8, %v1478_v22, %v1482_v33  ;;  %v1210_v10 = vrot.slane %v1208_v6, 7  ;;  %v1489_v56 = vrot.slane %v1487_v48, 1  ;;  %v1753_v3 = vshrl.u32 %v1600_v29, 16  ;;  %v1602_v39 = vld [vmem:[#allocation2 + $0x150] sm:$0x80] }
 0x17d   : > { %3657 = vmatprep.mubr.bf16.mxu0 %v1727_v37  ;;  %v1751_v14 = vsel %vm889_vm5, %v1743_v50, %v1750_v9  ;;  %v1759_v24 = vrot.slane %v1757_v17, 7  ;;  %v1485_v51 = vshrl.u32 %v6619_v61, 16  ;;  %v1760_v32 = vshll.u32 %v6543_v28, 16  ;;  %v1059_v36 = vld [vmem:[#allocation2 + $0x150] sm:$0x80] }
 0x17e   : > { %v1218_v20 = vsel %vm889_vm5, %v1210_v10, %v1750_v9  ;;  %v1494_v7 = vrot.slane %v1492_v46, 1  ;;  %v1220_v12 = vshrl.u32 %v1057_v13, 16  ;;  %v1755_v49 = vrot.slane %v1753_v3, 7  ;;  %v1346_v16 = vld [vmem:[#allocation2 + $0x148] sm:$0x1] }
 0x17f   : > { %v6643_v15 = vor.u32 %v1489_v56, %v1485_v51  ;;  %v1762_v37 = vor.u32 %v1760_v32, %v1759_v24  ;;  %v1769_v59 = vshrl.u32 %v6525_v34, 16  ;;  %v1501_v53 = vrot.slane %v1748_v47, 1  ;;  %v1865_v47 = vld [vmem:[#allocation2 + $0x28] sm:$0x1]  ;;  %v1887_v58 = vld [vmem:[#allocation2 + $0x130] sm:$0x1] }
 0x180   : > { %3505 = vmatmul.mubr.bf16.gmra.mrb[40].mxu1 %v1194_v35  ;;  %v1504_v44 = vshll.u32 %v1344_v41, 16  ;;  %v1222_v35 = vrot.slane %v1220_v12, 7  ;;  %v1236_v43 = vshrl.u32 %v6646_v19, 16  ;;  %v1765_v63 = vshrl.u32 %v1602_v39, 16  ;;  %v1348_v12 = vld [vmem:[#allocation2 + $0x160] sm:$0x1] }
 0x181   : > { %3512 = vmatprep.mubr.bf16.mxu1 %v6463_v31  ;;  %v6623_v31 = vpop.f32.mrb[3].mxu1  ;;  %v1495_v21 = vsel %vm1351_vm8, %v6643_v15, %v1494_v7  ;;  %v1763_v27 = vsel %vm889_vm5, %v1755_v49, %v1762_v37  ;;  %v1771_v18 = vrot.slane %v1769_v59, 7  ;;  %v1772_v5 = vshll.u32 %v6525_v34, 16  ;;  %v6676_v59 = vld [vmem:[#allocation2 + $0x38] sm:$0xff] }
 0x182   : > { %v1502_v4 = vor.u32 %v1745_v38, %v1501_v53  ;;  %v1506_v60 = vrot.slane %v1504_v44, 1  ;;  %v1230_v52 = vsel %vm889_vm5, %v1222_v35, %v1762_v37  ;;  %v1238_v30 = vrot.slane %v1236_v43, 7  ;;  %v1604_v38 = vld [vmem:[#allocation2 + $0x168] sm:$0x80]  ;;  %v1606_v37 = vld [vmem:[#allocation2 + $0x180] sm:$0x80] }
 0x183   : > { %v1774_v0 = vor.u32 %v1772_v5, %v1771_v18  ;;  %v1781_v8 = vshrl.u32 %v6577_v11, 16  ;;  %v1513_v50 = vrot.slane %v1760_v32, 1  ;;  %v1516_v9 = vshll.u32 %v1346_v16, 16  ;;  %v996_v16 = vld [vmem:[#allocation2 + $0x190] sm:$0x1] }
 0x184   : > { %3658 = vmatmul.mubr.bf16.gmra.mrb[68].mxu0 %v1471_v55  ;;  %v1232_v55 = vshrl.u32 %v1059_v36, 16  ;;  %v1507_v33 = vsel %vm1351_vm8, %v1502_v4, %v1506_v60  ;;  %v1777_v29 = vshrl.u32 %v1604_v38, 16  ;;  %v1904_v10 = vshll.u32 %v1865_v47, 16 }
 0x185   : > { %3665 = vmatprep.mubr.bf16.mxu0 %v1739_v2  ;;  %v1767_v2 = vrot.slane %v1765_v63, 7  ;;  %v1784_v56 = vshll.u32 %v6577_v11, 16  ;;  %v1514_v24 = vor.u32 %v1757_v17, %v1513_v50  ;;  %v1518_v13 = vrot.slane %v1516_v9, 1  ;;  %v1867_v63 = vld [vmem:[#allocation2 + $0x40] sm:$0x1]  ;;  %v5542_v9 = vld [vmem:[%s7413_s3 + $0x208] sm:$0xff]  }
 0x186   : > { %v1234_v22 = vrot.slane %v1232_v55, 7  ;;  %v1897_v41 = vshrl.u32 %v6659_v45, 16  ;;  %v1906_v49 = vrot.slane %v1904_v10, 1  ;;  %v6680_v39 = vadd.f32 %v6612_v26, %v6604_v40 }
 0x187   : > { %v1775_v25 = vsel %vm889_vm5, %v1767_v2, %v1774_v0  ;;  %v1796_v44 = vshll.u32 %v6571_v57, 16  ;;  %v2268_v18 = vrot.slane %v1485_v51, 7  ;;  %v1789_v36 = vshrl.u32 %v1606_v37, 16  ;;  %v6702_v0 = vld [vmem:[#allocation2 + $0x50] sm:$0xff] }
 0x188   : > { %3513 = vmatmul.mubr.bf16.gmra.mrb[44].mxu1 %v1206_v23  ;;  %v1899_v23 = vshll.u32 %v6659_v45, 16  ;;  %v1911_v40 = vshll.u32 %v6676_v59, 16  ;;  %v6690_v26 = vadd.f32 %v6623_v31, %v6621_v42  ;;  %v1916_v4 = vshll.u32 %v1867_v63, 16  ;;  %v1350_v42 = vld [vmem:[#allocation2 + $0x178] sm:$0x1] }
 0x189   : > { %3520 = vmatprep.mubr.bf16.mxu1 %v6600_v54  ;;  %v1239_v54 = vshll.u32 %v6646_v19, 16  ;;  %v1537_v38 = vrot.slane %v1784_v56, 1  ;;  %v997_v50 = vsel %vm5977_vm7, 0, %v996_v16 }
 0x18a   : > { %v1901_v46 = vrot.slane %v1899_v23, 1  ;;  %v1913_v31 = vrot.slane %v1911_v40, 1  ;;  %v1918_v23 = vrot.slane %v1916_v4, 1  ;;  %998 = vst [vmem:[#allocation2 + $0x190] sm:$0x1] %v997_v50  ;;  %v5548_v50 = vld [vmem:[%s7413_s3 + $0x238] sm:$0xff]  }
 0x18b   : > { %v1241_v6 = vor.u32 %v1239_v54, %v1238_v30  ;;  %v1791_v30 = vrot.slane %v1789_v36, 7  ;;  %v1873_v4 = vld [vmem:[#allocation2 + $0x88] sm:$0x1] }
 0x18c   : > { %3666 = vmatmul.mubr.bf16.gmra.mrb[72].mxu0 %v1483_v1  ;;  %v1783_v1 = vrot.slane %v1781_v8, 7  ;;  %v1902_v17 = vor.u32 %v1901_v46, %v1897_v41  ;;  %v5678_v46 = vld [vmem:[%s7413_s3 + $0x200] sm:$0xff]   ;;  %v5544_v41 = vld [vmem:[%s7413_s3 + $0x218] sm:$0xff]  }
 0x18d   : > { %3673 = vmatprep.mubr.bf16.mxu0 %v1751_v14  ;;  %v1793_v14 = vshrl.u32 %v6571_v57, 16  ;;  %v1242_v3 = vsel %vm889_vm5, %v1234_v22, %v1241_v6  ;;  %v6694_v57 = vor.u32 %v2268_v18, %v1487_v48  ;;  %v1909_v48 = vshrl.u32 %v6676_v59, 16  ;;  %v1869_v6 = vld [vmem:[#allocation2 + $0x58] sm:$0x1] }
 0x18e   : > { %v1786_v7 = vor.u32 %v1784_v56, %v1783_v1  ;;  %v1907_v55 = vsel %vm1351_vm8, %v1902_v17, %v1906_v49  ;;  %v1923_v22 = vshll.u32 %v6702_v0, 16  ;;  %v1928_v10 = vshll.u32 %v1869_v6, 16  ;;  %v2121_v56 = vld [vmem:[#allocation2 + $0x30] sm:$0x80]  ;;  %v1875_v6 = vld [vmem:[#allocation2 + $0xa0] sm:$0x1] }
 0x18f   : > { %v1795_v53 = vrot.slane %v1793_v14, 7  ;;  %v6708_v47 = vor.u32 %v1913_v31, %v1909_v48  ;;  %v6724_v14 = vld [vmem:[#allocation2 + $0x68] sm:$0xff]  ;;  %v2125_v31 = vld [vmem:[#allocation2 + $0x60] sm:$0x80] }
 0x190   : > { %3521 = vmatmul.mubr.bf16.gmra.mrb[48].mxu1 %v1218_v20  ;;  %v1779_v20 = vrot.slane %v1777_v29, 7 }
 0x191   : > { %3528 = vmatprep.mubr.bf16.mxu1 %v6543_v28  ;;  %v1525_v28 = vrot.slane %v1239_v54, 1  ;;  %v1798_v2 = vor.u32 %v1796_v44, %v1795_v53  ;;  %v1919_v1 = vsel %vm1351_vm8, %v6708_v47, %v1918_v23 }
 0x192   : > { %v1787_v5 = vsel %vm889_vm5, %v1779_v20, %v1786_v7  ;;  %v1935_v20 = vshll.u32 %v6724_v14, 16 }
 0x193   : > { %v6699_v51 = vor.u32 %v1525_v28, %v1236_v43  ;;  %v1540_v43 = vshll.u32 %v1350_v42, 16  ;;  %v1952_v42 = vshll.u32 %v1873_v4, 16 }
 0x194   : > { %3674 = vmatmul.mubr.bf16.gmra.mrb[76].mxu0 %v1495_v21  ;;  %v1519_v21 = vsel %vm1351_vm8, %v1514_v24, %v1518_v13  ;;  %v2160_v24 = vrot.slane %v1909_v48, 7  ;;  %v1937_v53 = vrot.slane %v1935_v20, 1  ;;  %v1874_v48 = vld [vmem:[#allocation2 + $0x98] sm:$0xff] }
 0x195   : > { %3681 = vmatprep.mubr.bf16.mxu0 %v1763_v27  ;;  %v1528_v27 = vshll.u32 %v1348_v12, 16  ;;  %v1542_v29 = vrot.slane %v1540_v43, 1  ;;  %v895_v12 = vld [vmem:[#allocation2 + $0x198] sm:$0x80]  ;;  %v2178_v43 = vshrl.u32 %v2125_v31, 16  ;;  %v1954_v23 = vrot.slane %v1952_v42, 1 }
 0x196   : > { %v896_v49 = vsel %vm5922_vm4, 0, %v895_v12  ;;  %v2163_v28 = vor.u32 %v2160_v24, %v1911_v40 }
 0x197   : > { %897 = vst [vmem:[#allocation2 + $0x198] sm:$0x80] %v896_v49 }
 0x198   : > { %3529 = vmatmul.mubr.bf16.gmra.mrb[52].mxu1 %v1230_v52  ;;  %v1530_v52 = vrot.slane %v1528_v27, 1  ;;  %v1933_v27 = vshrl.u32 %v6724_v14, 16 }
 0x199   : > { %3536 = vmatprep.mubr.bf16.mxu1 %v6525_v34  ;;  %v1061_v34 = vld [vmem:[#allocation2 + $0x168] sm:$0x80] }
 0x19a   : > { %v1244_v32 = vshrl.u32 %v1061_v34, 16  ;;  %v1531_v54 = vsel %vm1351_vm8, %v6699_v51, %v1530_v52  ;;  %v1925_v34 = vrot.slane %v1923_v22, 1 }
 0x19c   : > { %3682 = vmatmul.mubr.bf16.gmra.mrb[80].mxu0 %v1507_v33  ;;  %v1246_v35 = vrot.slane %v1244_v32, 7  ;;  %v1799_v33 = vsel %vm889_vm5, %v1791_v30, %v1798_v2  ;;  %v1930_v32 = vrot.slane %v1928_v10, 1  ;;  %v2127_v10 = vld [vmem:[#allocation2 + $0x78] sm:$0x80] }
 0x19d   : > { %3689 = vmatprep.mubr.bf16.mxu0 %v1775_v25  ;;  %v1538_v25 = vor.u32 %v1781_v8, %v1537_v38 }
 0x19e   : > { %v1254_v60 = vsel %vm889_vm5, %v1246_v35, %v1786_v7  ;;  %v1871_v7 = vld [vmem:[#allocation2 + $0x70] sm:$0x1]  ;;  %v6743_v35 = vld [vmem:[#allocation2 + $0x80] sm:$0xff] }
 0x19f   : > { %v1543_v8 = vsel %vm1351_vm8, %v1538_v25, %v1542_v29  ;;  %v1940_v44 = vshll.u32 %v1871_v7, 16  ;;  %v1947_v40 = vshll.u32 %v6743_v35, 16  ;;  %v1945_v16 = vshrl.u32 %v6743_v35, 16 }
 0x1a0   : > { %3537 = vmatmul.mubr.bf16.gmra.mrb[56].mxu1 %v1242_v3  ;;  %v2154_v3 = vshrl.u32 %v2121_v56, 16  ;;  %v1876_v56 = vld [vmem:[#allocation2 + $0xb0] sm:$0xff] }
 0x1a1   : > { %3544 = vmatprep.mubr.bf16.mxu1 %v6577_v11  ;;  %v1921_v11 = vshrl.u32 %v6702_v0, 16  ;;  %v1942_v36 = vrot.slane %v1940_v44, 1  ;;  %v1949_v2 = vrot.slane %v1947_v40, 1 }
 0x1a2   : > { %v2156_v37 = vrot.slane %v2154_v3, 7 }
 0x1a3   : > { %v6731_v13 = vor.u32 %v1925_v34, %v1921_v11  ;;  %v2172_v18 = vrot.slane %v1921_v11, 7  ;;  %v1964_v34 = vshll.u32 %v1875_v6, 16  ;;  %v2133_v6 = vld [vmem:[#allocation2 + $0xc0] sm:$0x80] }
 0x1a4   : > { %3690 = vmatmul.mubr.bf16.gmra.mrb[84].mxu0 %v1519_v21  ;;  %v2123_v21 = vld [vmem:[#allocation2 + $0x48] sm:$0x80]  ;;  %v2164_v63 = vsel %vm889_vm5, %v2156_v37, %v2163_v28  ;;  %v2129_v37 = vld [vmem:[#allocation2 + $0x90] sm:$0x80] }
 0x1a5   : > { %3697 = vmatprep.mubr.bf16.mxu0 %v1787_v5  ;;  %v1931_v17 = vsel %vm1351_vm8, %v6731_v13, %v1930_v32  ;;  %v6750_v5 = vor.u32 %v1937_v53, %v1933_v27  ;;  %v1966_v24 = vrot.slane %v1964_v34, 1  ;;  %v1877_v32 = vld [vmem:[#allocation2 + $0xb8] sm:$0x1]  ;;  %v1878_v28 = vld [vmem:[#allocation2 + $0xc8] sm:$0xff]  ;;  %v2202_v44 = vshrl.u32 %v2129_v37, 16 }
 0x1a6   : > { %v1976_v49 = vshll.u32 %v1877_v32, 16  ;;  %v2135_v32 = vld [vmem:[#allocation2 + $0xd8] sm:$0x80] }
 0x1a7   : > { %v1943_v30 = vsel %vm1351_vm8, %v6750_v5, %v1942_v36 }
 0x1a8   : > { %3545 = vmatmul.mubr.bf16.gmra.mrb[60].mxu1 %v1254_v60  ;;  %v5546_v60 = vld [vmem:[%s7413_s3 + $0x228] sm:$0xff]  }
 0x1a9   : > { %3746 = vmatprep.mubr.bf16.mxu1 %v1907_v55  ;;  %v2175_v55 = vor.u32 %v2172_v18, %v1923_v22  ;;  %v1959_v22 = vshll.u32 %v1874_v48, 16 }
 0x1ac   : > { %3698 = vmatmul.mubr.bf16.gmra.mrb[88].mxu0 %v1531_v54  ;;  %v5547_v54 = vld [vmem:[%s7413_s3 + $0x230] sm:$0xff]  }
 0x1ad   : > { %3705 = vmatprep.mubr.bf16.mxu0 %v1799_v33  ;;  %v6765_v33 = vor.u32 %v1949_v2, %v1945_v16 }
 0x1af   : > { %v1955_v29 = vsel %vm1351_vm8, %v6765_v33, %v1954_v23 }
 0x1b0   : > { %3747 = vmatmul.mubr.bf16.vlgmr.msra.gmra.mrb[64].mxu1 %v6659_v45  ;;  %v5543_v45 = vld [vmem:[%s7413_s3 + $0x210] sm:$0xff]  }
 0x1b1   : > { %5366 = vmatpush3.bf16.msra.mxu1 %v5678_v46  ;;  %3754 = vmatprep.mubr.bf16.mxu1 %v1919_v1  ;;  %v1961_v1 = vrot.slane %v1959_v22, 1  ;;  %v1957_v46 = vshrl.u32 %v1874_v48, 16 }
 0x1b2   : > { %5367 = vmatprep.subr.bf16.mxu1 %v5542_v9 }
 0x1b3   : > { %v6775_v3 = vor.u32 %v1961_v1, %v1957_v46 }
 0x1b4   : > { %3706 = vmatmul.mubr.bf16.gmra.mrb[92].mxu0 %v1543_v8  ;;  %v2196_v8 = vrot.slane %v1945_v16, 7 }
 0x1b5   : > { %3907 = vmatprep.mubr.bf16.mxu0 %v6676_v59  ;;  %5368 = vmatpush3.bf16.msra.mxu1 %v5542_v9  ;;  %v2180_v9 = vrot.slane %v2178_v43, 7  ;;  %v1967_v12 = vsel %vm1351_vm8, %v6775_v3, %v1966_v24 }
 0x1b6   : > { %5369 = vmatprep.subr.bf16.mxu1 %v5543_v45  ;;  %v2199_v7 = vor.u32 %v2196_v8, %v1947_v40 }
 0x1b8   : > { %3755 = vmatmul.mubr.bf16.gmra.mrb[68].mxu1 %v6676_v59  ;;  %v2166_v59 = vshrl.u32 %v2123_v21, 16  ;;  %v2208_v21 = vrot.slane %v1957_v46, 7 }
 0x1b9   : > { %3762 = vmatprep.mubr.bf16.mxu1 %v1931_v17  ;;  %5370 = vmatpush3.bf16.msra.mxu1 %v5543_v45  ;;  %v2190_v45 = vshrl.u32 %v2127_v10, 16  ;;  %v1969_v17 = vshrl.u32 %v1876_v56, 16 }
 0x1ba   : > { %5371 = vmatprep.subr.bf16.mxu1 %v5544_v41  ;;  %v2168_v52 = vrot.slane %v2166_v59, 7  ;;  %v2204_v59 = vrot.slane %v2202_v44, 7  ;;  %v2211_v18 = vor.u32 %v2208_v21, %v1959_v22 }
 0x1bb   : > { %v2220_v42 = vrot.slane %v1969_v17, 7 }
 0x1bc   : > { %3908 = vmatmul.mubr.bf16.vlgmr.msra.gmra.mrb[96].mxu0 %v2164_v63  ;;  %v2176_v38 = vsel %vm889_vm5, %v2168_v52, %v2175_v55  ;;  %v1983_v63 = vshll.u32 %v1878_v28, 16  ;;  %v1880_v52 = vld [vmem:[#allocation2 + $0xe0] sm:$0xff]  ;;  %v1981_v55 = vshrl.u32 %v1878_v28, 16 }
 0x1bd   : > { %3915 = vmatprep.mubr.bf16.mxu0 %v6702_v0  ;;  %5372 = vmatpush3.bf16.msra.mxu1 %v5544_v41 }
 0x1be   : > { %5373 = vmatprep.subr.bf16.mxu1 %v5545_v62  ;;  %v1985_v40 = vrot.slane %v1983_v63, 1  ;;  %v2232_v1 = vrot.slane %v1981_v55, 7 }
 0x1c0   : > { %3763 = vmatmul.mubr.bf16.gmra.mrb[72].mxu1 %v6702_v0  ;;  %v2184_v0 = vrot.slane %v1933_v27, 7  ;;  %v6787_v31 = vor.u32 %v1985_v40, %v1981_v55 }
 0x1c1   : > { %3770 = vmatprep.mubr.bf16.mxu1 %v1943_v30  ;;  %5374 = vmatpush3.bf16.msra.mxu1 %v5545_v62  ;;  %v1978_v62 = vrot.slane %v1976_v49, 1  ;;  %v2212_v30 = vsel %vm889_vm5, %v2204_v59, %v2211_v18  ;;  %v1886_v59 = vld [vmem:[#allocation2 + $0x128] sm:$0xff] }
 0x1c2   : > { %5375 = vmatprep.subr.bf16.mxu1 %v5546_v60  ;;  %v2187_v25 = vor.u32 %v2184_v0, %v1935_v20  ;;  %v2192_v20 = vrot.slane %v2190_v45, 7  ;;  %v2235_v45 = vor.u32 %v2232_v1, %v1983_v63 }
 0x1c4   : > { %3916 = vmatmul.mubr.bf16.gmra.mrb[100].mxu0 %v2176_v38  ;;  %v2188_v11 = vsel %vm889_vm5, %v2180_v9, %v2187_v25  ;;  %v2200_v53 = vsel %vm889_vm5, %v2192_v20, %v2199_v7  ;;  %v1993_v9 = vshrl.u32 %v1880_v52, 16 }
 0x1c5   : > { %3923 = vmatprep.mubr.bf16.mxu0 %v6724_v14  ;;  %5376 = vmatpush3.bf16.msra.mxu1 %v5546_v60  ;;  %v2131_v60 = vld [vmem:[#allocation2 + $0xa8] sm:$0x80] }
 0x1c6   : > { %5377 = vmatprep.subr.bf16.mxu1 %v5547_v54  ;;  %v2214_v2 = vshrl.u32 %v2131_v60, 16  ;;  %v2031_v60 = vshll.u32 %v1886_v59, 16 }
 0x1c8   : > { %3771 = vmatmul.mubr.bf16.gmra.mrb[76].mxu1 %v6724_v14  ;;  %v1971_v14 = vshll.u32 %v1876_v56, 16  ;;  %v2216_v38 = vrot.slane %v2214_v2, 7  ;;  %v2033_v2 = vrot.slane %v2031_v60, 1 }
 0x1c9   : > { %3778 = vmatprep.mubr.bf16.mxu1 %v1955_v29  ;;  %5378 = vmatpush3.bf16.msra.mxu1 %v5547_v54  ;;  %v1995_v54 = vshll.u32 %v1880_v52, 16  ;;  %v2226_v29 = vshrl.u32 %v2133_v6, 16  ;;  %v1889_v6 = vld [vmem:[#allocation2 + $0x148] sm:$0x1] }
 0x1ca   : > { %5379 = vmatprep.subr.bf16.mxu1 %v5548_v50  ;;  %v1973_v41 = vrot.slane %v1971_v14, 1  ;;  %v2223_v43 = vor.u32 %v2220_v42, %v1971_v14  ;;  %v2036_v42 = vshll.u32 %v1887_v58, 16 }
 0x1cb   : > { %v1997_v23 = vrot.slane %v1995_v54, 1 }
 0x1cc   : > { %3924 = vmatmul.mubr.bf16.gmra.mrb[104].mxu0 %v2188_v11  ;;  %v6782_v27 = vor.u32 %v1973_v41, %v1969_v17  ;;  %v2224_v25 = vsel %vm889_vm5, %v2216_v38, %v2223_v43  ;;  %v2228_v11 = vrot.slane %v2226_v29, 7  ;;  %v2244_v41 = vrot.slane %v1993_v9, 7  ;;  %v1885_v17 = vld [vmem:[#allocation2 + $0x118] sm:$0x1]  ;;  %v2141_v29 = vld [vmem:[#allocation2 + $0x120] sm:$0x80] }
 0x1cd   : > { %3931 = vmatprep.mubr.bf16.mxu0 %v6743_v35  ;;  %5380 = vmatpush3.bf16.msra.mxu1 %v5548_v50  ;;  %v1882_v50 = vld [vmem:[#allocation2 + $0xf8] sm:$0xff]  ;;  %v6792_v34 = vor.u32 %v1997_v23, %v1993_v9  ;;  %v2024_v63 = vshll.u32 %v1885_v17, 16  ;;  %v2038_v23 = vrot.slane %v2036_v42, 1 }
 0x1ce   : > { %v1979_v36 = vsel %vm1351_vm8, %v6782_v27, %v1978_v62  ;;  %v2007_v46 = vshll.u32 %v1882_v50, 16  ;;  %v2005_v20 = vshrl.u32 %v1882_v50, 16  ;;  %v2236_v7 = vsel %vm889_vm5, %v2228_v11, %v2235_v45 }
 0x1cf   : > { %v2247_v21 = vor.u32 %v2244_v41, %v1995_v54  ;;  %v6806_v54 = vld [vmem:[#allocation2 + $0x140] sm:$0xff]  ;;  %v2143_v41 = vld [vmem:[#allocation2 + $0x138] sm:$0x80] }
 0x1d0   : > { %3779 = vmatmul.mubr.bf16.gmra.mrb[80].mxu1 %v6743_v35  ;;  %v1879_v35 = vld [vmem:[#allocation2 + $0xd0] sm:$0x1]  ;;  %v2009_v24 = vrot.slane %v2007_v46, 1  ;;  %v2256_v40 = vrot.slane %v2005_v20, 7  ;;  %v2041_v1 = vshrl.u32 %v6806_v54, 16 }
 0x1d1   : > { %3786 = vmatprep.mubr.bf16.mxu1 %v1967_v12  ;;  %v1988_v4 = vshll.u32 %v1879_v35, 16  ;;  %v2238_v12 = vshrl.u32 %v2135_v32, 16  ;;  %v2137_v35 = vld [vmem:[#allocation2 + $0xf0] sm:$0x80] }
 0x1d2   : > { %v6797_v49 = vor.u32 %v2009_v24, %v2005_v20 }
 0x1d3   : > { %v1990_v16 = vrot.slane %v1988_v4, 1  ;;  %v2240_v44 = vrot.slane %v2238_v12, 7  ;;  %v2026_v4 = vrot.slane %v2024_v63, 1 }
 0x1d4   : > { %3932 = vmatmul.mubr.bf16.gmra.mrb[108].mxu0 %v2200_v53  ;;  %v899_v53 = vld [vmem:[#allocation2 + $0x1a8] sm:$0x1] }
 0x1d5   : > { %3939 = vmatprep.mubr.bf16.mxu0 %v1874_v48  ;;  %v1991_v0 = vsel %vm1351_vm8, %v6787_v31, %v1990_v16  ;;  %v2248_v18 = vsel %vm889_vm5, %v2240_v44, %v2247_v21  ;;  %v2139_v16 = vld [vmem:[#allocation2 + $0x108] sm:$0x80] }
 0x1d6   : > { %v2262_v43 = vshrl.u32 %v2139_v16, 16 }
 0x1d8   : > { %3787 = vmatmul.mubr.bf16.gmra.mrb[84].mxu1 %v1874_v48  ;;  %v1881_v48 = vld [vmem:[#allocation2 + $0xe8] sm:$0x1] }
 0x1d9   : > { %3794 = vmatprep.mubr.bf16.mxu1 %v1979_v36  ;;  %v2000_v22 = vshll.u32 %v1881_v48, 16  ;;  %v2250_v36 = vshrl.u32 %v2137_v35, 16  ;;  %v2029_v48 = vshrl.u32 %v1886_v59, 16 }
 0x1db   : > { %v2002_v10 = vrot.slane %v2000_v22, 1  ;;  %v2252_v55 = vrot.slane %v2250_v36, 7  ;;  %v2043_v22 = vshll.u32 %v6806_v54, 16 }
 0x1dc   : > { %3940 = vmatmul.mubr.bf16.gmra.mrb[112].mxu0 %v2212_v30  ;;  %v2259_v30 = vor.u32 %v2256_v40, %v2007_v46  ;;  %v2274_v46 = vshrl.u32 %v2141_v29, 16  ;;  %v2286_v40 = vshrl.u32 %v2143_v41, 16 }
 0x1dd   : > { %3947 = vmatprep.mubr.bf16.mxu0 %v1876_v56  ;;  %v2003_v8 = vsel %vm1351_vm8, %v6792_v34, %v2002_v10  ;;  %v2045_v9 = vrot.slane %v2043_v22, 1 }
 0x1de   : > { %v2260_v38 = vsel %vm889_vm5, %v2252_v55, %v2259_v30  ;;  %v2276_v24 = vrot.slane %v2274_v46, 7  ;;  %v1893_v30 = vld [vmem:[#allocation2 + $0x178] sm:$0x1] }
 0x1df   : > { %v6819_v11 = vor.u32 %v2045_v9, %v2041_v1 }
 0x1e0   : > { %3795 = vmatmul.mubr.bf16.gmra.mrb[88].mxu1 %v1876_v56  ;;  %v1883_v56 = vld [vmem:[#allocation2 + $0x100] sm:$0x1] }
 0x1e1   : > { %3802 = vmatprep.mubr.bf16.mxu1 %v1991_v0  ;;  %v2012_v14 = vshll.u32 %v1883_v56, 16  ;;  %v6809_v0 = vor.u32 %v2033_v2, %v2029_v48  ;;  %v2280_v56 = vrot.slane %v2029_v48, 7  ;;  %v2288_v2 = vrot.slane %v2286_v40, 7 }
 0x1e2   : > { %v2072_v48 = vshll.u32 %v1893_v30, 16 }
 0x1e3   : > { %v2014_v37 = vrot.slane %v2012_v14, 1  ;;  %v2283_v14 = vor.u32 %v2280_v56, %v2031_v60 }
 0x1e4   : > { %3948 = vmatmul.mubr.bf16.gmra.mrb[116].mxu0 %v2224_v25  ;;  %v2048_v25 = vshll.u32 %v1889_v6, 16 }
 0x1e5   : > { %3955 = vmatprep.mubr.bf16.mxu0 %v1878_v28  ;;  %v2015_v62 = vsel %vm1351_vm8, %v6797_v49, %v2014_v37 }
 0x1e6   : > { %v2050_v45 = vrot.slane %v2048_v25, 1  ;;  %v6849_v25 = vld [vmem:[#allocation2 + $0x188] sm:$0xff] }
 0x1e8   : > { %3803 = vmatmul.mubr.bf16.gmra.mrb[92].mxu1 %v1878_v28  ;;  %v900_v28 = vsel %vm5977_vm7, 0, %v899_v53 }
 0x1e9   : > { %3810 = vmatprep.mubr.bf16.mxu1 %v2003_v8  ;;  %901 = vst [vmem:[#allocation2 + $0x1a8] sm:$0x1] %v900_v28  ;;  %v6824_v8 = vld [vmem:[%s7414_s4] ss:$0 sm:$0xff]  ;;  %v6828_v28 = vld [vmem:[#allocation2 + $0x170] sm:$0xff] }
 0x1ea   : > { %v3427_v44 = vadd.f32 %v6680_v39, %v6824_v8  ;;  %v3430_v21 = vadd.f32 %v6690_v26, %v6824_v8  ;;  %v2067_v39 = vshll.u32 %v6828_v28, 16 }
 0x1ec   : > { %3956 = vmatmul.mubr.bf16.gmra.mrb[120].mxu0 %v2236_v7 }
 0x1ed   : > { %3963 = vmatprep.mubr.bf16.mxu0 %v1880_v52 }
 0x1f0   : > { %3811 = vmatmul.mubr.bf16.gmra.mrb[96].mxu1 %v1880_v52  ;;  %v2027_v52 = vsel %vm1351_vm8, %v6643_v15, %v2026_v4  ;;  %v2264_v15 = vrot.slane %v2262_v43, 7  ;;  %v2292_v4 = vrot.slane %v2041_v1, 7  ;;  %v2065_v1 = vshrl.u32 %v6828_v28, 16 }
 0x1f1   : > { %3818 = vmatprep.mubr.bf16.mxu1 %v2015_v62 }
 0x1f2   : > { %v2272_v10 = vsel %vm889_vm5, %v2264_v15, %v6694_v57  ;;  %v2051_v57 = vsel %vm1351_vm8, %v6819_v11, %v2050_v45  ;;  %v2295_v42 = vor.u32 %v2292_v4, %v2043_v22  ;;  %v2069_v15 = vrot.slane %v2067_v39, 1 }
 0x1f3   : > { %v2074_v45 = vrot.slane %v2072_v48, 1 }
 0x1f4   : > { %3964 = vmatmul.mubr.bf16.gmra.mrb[124].mxu0 %v2248_v18  ;;  %v2296_v46 = vsel %vm889_vm5, %v2288_v2, %v2295_v42 }
 0x1f5   : > { %3971 = vmatprep.mubr.bf16.mxu0 %v1882_v50 }
 0x1f8   : > { %3819 = vmatmul.mubr.bf16.gmra.mrb[100].mxu1 %v1882_v50  ;;  %v2039_v50 = vsel %vm1351_vm8, %v6809_v0, %v2038_v23 }
 0x1f9   : > { %3826 = vmatprep.mubr.bf16.mxu1 %v2027_v52  ;;  %v6838_v52 = vld [vmem:[#allocation2 + $0x158] sm:$0xff] }
 0x1fa   : > { %v2302_v43 = vshrl.u32 %v6838_v52, 16 }
 0x1fc   : > { %3972 = vmatmul.mubr.bf16.gmra.mrb[128].mxu0 %v2260_v38  ;;  %v2145_v38 = vld [vmem:[#allocation2 + $0x150] sm:$0x80] }
 0x1fd   : > { %3979 = vmatprep.mubr.bf16.mxu0 %v6619_v61 }
 0x200   : > { %3827 = vmatmul.mubr.bf16.gmra.mrb[104].mxu1 %v6619_v61  ;;  %v1891_v61 = vld [vmem:[#allocation2 + $0x160] sm:$0x1] }
 0x201   : > { %3834 = vmatprep.mubr.bf16.mxu1 %v2039_v50  ;;  %v2060_v12 = vshll.u32 %v1891_v61, 16 }
 0x203   : > { %v2062_v55 = vrot.slane %v2060_v12, 1  ;;  %v1895_v12 = vld [vmem:[#allocation2 + $0x190] sm:$0x1] }
 0x204   : > { %3980 = vmatmul.mubr.bf16.gmra.mrb[132].mxu0 %v2272_v10  ;;  %v2298_v10 = vshrl.u32 %v2145_v38, 16 }
 0x205   : > { %3987 = vmatprep.mubr.bf16.mxu0 %v1886_v59  ;;  %v2063_v23 = vsel %vm1351_vm8, %v6699_v51, %v2062_v55  ;;  %v2304_v51 = vrot.slane %v2302_v43, 7  ;;  %v2077_v55 = vshrl.u32 %v6849_v25, 16 }
 0x206   : > { %v4873_v32 = vpop.f32.mrb[4].mxu1 }
 0x207   : > { %v4874_v20 = vpop.f32.mrb[5].mxu1  ;;  %v4979_v7 = vpop.f32.mrb[32].mxu0 }
 0x208   : > { %3835 = vmatmul.mubr.bf16.gmra.mrb[108].mxu1 %v1886_v59  ;;  %v4875_v37 = vadd.f32 %v4874_v20, %v4873_v32  ;;  %v4876_v17 = vpop.f32.mrb[6].mxu1  ;;  %v4980_v53 = vpop.f32.mrb[33].mxu0  ;;  %v2284_v59 = vsel %vm889_vm5, %v2276_v24, %v2283_v14  ;;  %v6856_v32 = vor.u32 %v2069_v15, %v2065_v1 }
 0x209   : > { %3842 = vmatprep.mubr.bf16.mxu1 %v2051_v57  ;;  %v4981_v62 = vadd.f32 %v4980_v53, %v4979_v7  ;;  %v4877_v63 = vpop.f32.mrb[7].mxu1  ;;  %v4982_v35 = vpop.f32.mrb[34].mxu0  ;;  %v2079_v57 = vshll.u32 %v6849_v25, 16  ;;  %v2305_v7 = vshll.u32 %v6838_v52, 16 }
 0x20a   : > { %v4878_v18 = vadd.f32 %v4877_v63, %v4876_v17  ;;  %v4983_v36 = vpop.f32.mrb[35].mxu0  ;;  %v3435_v61 = vadd.f32 %v4875_v37, %v6824_v8  ;;  %v2075_v63 = vsel %vm1351_vm8, %v6856_v32, %v2074_v45 }
 0x20b   : > { %v6835_v60 = vadd.f32 %v4981_v62, %v3427_v44  ;;  %v4984_v58 = vadd.f32 %v4983_v36, %v4982_v35  ;;  %v2300_v44 = vrot.slane %v2298_v10, 7  ;;  %v2307_v37 = vor.u32 %v2305_v7, %v2304_v51  ;;  %v2147_v36 = vld [vmem:[#allocation2 + $0x168] sm:$0x80] }
 0x20c   : > { %3988 = vmatmul.mubr.bf16.gmra.mrb[136].mxu0 %v2284_v59  ;;  %v3438_v41 = vadd.f32 %v4878_v18, %v6824_v8  ;;  %v2081_v59 = vrot.slane %v2079_v57, 1  ;;  %v2084_v18 = vshll.u32 %v1895_v12, 16  ;;  %v2310_v42 = vshrl.u32 %v2147_v36, 16 }
 0x20d   : > { %3995 = vmatprep.mubr.bf16.mxu0 %v6806_v54  ;;  %v6841_v26 = vadd.f32 %v4984_v58, %v3430_v21  ;;  %v2308_v30 = vsel %vm889_vm5, %v2300_v44, %v2307_v37  ;;  %v2328_v12 = vrot.slane %v2077_v55, 7 }
 0x20e   : > { %v4879_v16 = vpop.f32.mrb[8].mxu1  ;;  %v2086_v48 = vrot.slane %v2084_v18, 1 }
 0x20f   : > { %v4880_v6 = vpop.f32.mrb[9].mxu1  ;;  %v2331_v36 = vor.u32 %v2328_v12, %v2079_v57 }
 0x210   : > { %3843 = vmatmul.mubr.bf16.gmra.mrb[112].mxu1 %v6806_v54  ;;  %v4881_v50 = vadd.f32 %v4880_v6, %v4879_v16  ;;  %v4882_v9 = vpop.f32.mrb[10].mxu1  ;;  %v6875_v16 = vor.u32 %v2081_v59, %v2077_v55  ;;  %v2414_v59 = vld [vmem:[#allocation2 + $0x70] sm:$0x1] }
 0x211   : > { %3850 = vmatprep.mubr.bf16.mxu1 %v2063_v23  ;;  %v4883_v29 = vpop.f32.mrb[11].mxu1  ;;  %v2410_v23 = vld [vmem:[#allocation2 + $0x40] sm:$0x1] }
 0x212   : > { %v4884_v56 = vadd.f32 %v4883_v29, %v4882_v9  ;;  %v3443_v15 = vadd.f32 %v4881_v50, %v6824_v8  ;;  %v2312_v29 = vrot.slane %v2310_v42, 7  ;;  %v2449_v45 = vshll.u32 %v2410_v23, 16 }
 0x213   : > { %v4985_v22 = vpop.f32.mrb[36].mxu0 }
 0x214   : > { %v4986_v54 = vpop.f32.mrb[37].mxu0  ;;  %3996 = vmatmul.mubr.bf16.gmra.mrb[140].mxu0 %v2296_v46  ;;  %v2149_v46 = vld [vmem:[#allocation2 + $0x180] sm:$0x80]  ;;  %v3446_v51 = vadd.f32 %v4884_v56, %v6824_v8  ;;  %v2451_v37 = vrot.slane %v2449_v45, 1 }
 0x215   : > { %v4987_v24 = vadd.f32 %v4986_v54, %v4985_v22  ;;  %v4988_v14 = vpop.f32.mrb[38].mxu0  ;;  %4003 = vmatprep.mubr.bf16.mxu0 %v6646_v19 }
 0x216   : > { %v4989_v20 = vpop.f32.mrb[39].mxu0  ;;  %v4885_v21 = vpop.f32.mrb[12].mxu1  ;;  %v2452_v42 = vsel %vm1351_vm8, %v6708_v47, %v2451_v37 }
 0x217   : > { %v6862_v17 = vadd.f32 %v4987_v24, %v3435_v61  ;;  %v4990_v53 = vadd.f32 %v4989_v20, %v4988_v14  ;;  %v4886_v35 = vpop.f32.mrb[13].mxu1  ;;  %v2322_v20 = vshrl.u32 %v2149_v46, 16 }
 0x218   : > { %3851 = vmatmul.mubr.bf16.gmra.mrb[116].mxu1 %v6646_v19  ;;  %v4887_v40 = vadd.f32 %v4886_v35, %v4885_v21  ;;  %v4888_v4 = vpop.f32.mrb[14].mxu1  ;;  %v2316_v19 = vrot.slane %v2065_v1, 7  ;;  %v2087_v1 = vsel %vm1351_vm8, %v6875_v16, %v2086_v48  ;;  %v2412_v21 = vld [vmem:[#allocation2 + $0x58] sm:$0x1]  ;;  %v2473_v48 = vshll.u32 %v2414_v59, 16 }
 0x219   : > { %v6866_v62 = vadd.f32 %v4990_v53, %v3438_v41  ;;  %3858 = vmatprep.mubr.bf16.mxu1 %v2075_v63  ;;  %v4889_v58 = vpop.f32.mrb[15].mxu1  ;;  %v6891_v63 = vld [vmem:[#allocation2 + $0x8] sm:$0xff]  ;;  %v2324_v18 = vrot.slane %v2322_v20, 7  ;;  %v2461_v55 = vshll.u32 %v2412_v21, 16 }
 0x21a   : > { %v4890_v2 = vadd.f32 %v4889_v58, %v4888_v4  ;;  %v2319_v10 = vor.u32 %v2316_v19, %v2067_v39  ;;  %v2338_v35 = vshrl.u32 %v6891_v63, 16  ;;  %v2151_v4 = vld [vmem:[#allocation2 + $0x198] sm:$0x80]  ;;  %v2341_v19 = vshll.u32 %v6891_v63, 16 }
 0x21b   : > { %v2463_v46 = vrot.slane %v2461_v55, 1 }
 0x21c   : > { %4004 = vmatmul.mubr.bf16.gmra.mrb[144].mxu0 %v2308_v30  ;;  %v4991_v38 = vpop.f32.mrb[40].mxu0  ;;  %v2320_v39 = vsel %vm889_vm5, %v2312_v29, %v2319_v10  ;;  %v2340_v57 = vrot.slane %v2338_v35, 7 }
 0x21d   : > { %4011 = vmatprep.mubr.bf16.mxu0 %v6828_v28  ;;  %v4992_v6 = vpop.f32.mrb[41].mxu0 }
 0x21e   : > { %v4993_v9 = vadd.f32 %v4992_v6, %v4991_v38  ;;  %v4994_v22 = vpop.f32.mrb[42].mxu0  ;;  %v3451_v38 = vadd.f32 %v4887_v40, %v6824_v8  ;;  %v2475_v40 = vrot.slane %v2473_v48, 1 }
 0x21f   : > { %v4995_v54 = vpop.f32.mrb[43].mxu0 }
 0x220   : > { %3859 = vmatmul.mubr.bf16.gmra.mrb[120].mxu1 %v6828_v28  ;;  %v6885_v61 = vadd.f32 %v4993_v9, %v3443_v15  ;;  %v4996_v24 = vadd.f32 %v4995_v54, %v4994_v22  ;;  %v2334_v15 = vshrl.u32 %v2151_v4, 16  ;;  %v2332_v22 = vsel %vm889_vm5, %v2324_v18, %v2331_v36 }
 0x221   : > { %3866 = vmatprep.mubr.bf16.mxu1 %v2087_v1  ;;  %v4891_v50 = vpop.f32.mrb[16].mxu1  ;;  %v2416_v1 = vld [vmem:[#allocation2 + $0x88] sm:$0x1]  ;;  %v2476_v21 = vsel %vm1351_vm8, %v6750_v5, %v2475_v40  ;;  %v2420_v5 = vld [vmem:[#allocation2 + $0xb8] sm:$0x1] }
 0x222   : > { %v4892_v14 = vpop.f32.mrb[17].mxu1  ;;  %v6887_v41 = vadd.f32 %v4996_v24, %v3446_v51 }
 0x223   : > { %v4893_v53 = vadd.f32 %v4892_v14, %v4891_v50  ;;  %v4894_v28 = vpop.f32.mrb[18].mxu1  ;;  %v2336_v50 = vrot.slane %v2334_v15, 7  ;;  %v2343_v14 = vor.u32 %v2341_v19, %v2340_v57 }
 0x224   : > { %4012 = vmatmul.mubr.bf16.gmra.mrb[148].mxu0 %v2320_v39  ;;  %v4895_v44 = vpop.f32.mrb[19].mxu1 }
 0x225   : > { %4019 = vmatprep.mubr.bf16.mxu0 %v6849_v25  ;;  %v4896_v56 = vadd.f32 %v4895_v44, %v4894_v28  ;;  %v2464_v28 = vsel %vm1351_vm8, %v6731_v13, %v2463_v46  ;;  %v2485_v44 = vshll.u32 %v2416_v1, 16  ;;  %v3459_v18 = vadd.f32 %v4893_v53, %v6824_v8 }
 0x227   : > { %v4997_v58 = vpop.f32.mrb[44].mxu0 }
 0x228   : > { %v4998_v30 = vpop.f32.mrb[45].mxu0  ;;  %3867 = vmatmul.mubr.bf16.gmra.mrb[124].mxu1 %v6849_v25  ;;  %v3454_v25 = vadd.f32 %v4890_v2, %v6824_v8  ;;  %v2418_v2 = vld [vmem:[#allocation2 + $0xa0] sm:$0x1] }
 0x229   : > { %v4999_v23 = vadd.f32 %v4998_v30, %v4997_v58  ;;  %v5000_v6 = vpop.f32.mrb[46].mxu0  ;;  %5381 = vmatprep.mubr.bf16.mxu1 %v2452_v42  ;;  %v2497_v59 = vshll.u32 %v2418_v2, 16  ;;  %v2344_v58 = vsel %vm889_vm5, %v2336_v50, %v2343_v14  ;;  %v3462_v30 = vadd.f32 %v4896_v56, %v6824_v8 }
 0x22a   : > { %v5001_v9 = vpop.f32.mrb[47].mxu0 }
 0x22b   : > { %v6905_v29 = vadd.f32 %v4999_v23, %v3451_v38  ;;  %v5002_v47 = vadd.f32 %v5001_v9, %v5000_v6  ;;  %v4897_v10 = vpop.f32.mrb[20].mxu1  ;;  %v2487_v38 = vrot.slane %v2485_v44, 1  ;;  %v2499_v6 = vrot.slane %v2497_v59, 1  ;;  %v2422_v9 = vld [vmem:[#allocation2 + $0xd0] sm:$0x1] }
 0x22c   : > { %4020 = vmatmul.mubr.bf16.gmra.mrb[152].mxu0 %v2332_v22  ;;  %v4898_v54 = vpop.f32.mrb[21].mxu1  ;;  %v2521_v40 = vshll.u32 %v2422_v9, 16  ;;  %v2424_v44 = vld [vmem:[#allocation2 + $0xe8] sm:$0x1] }
 0x22d   : > { %v6907_v45 = vadd.f32 %v5002_v47, %v3454_v25  ;;  %v4899_v51 = vadd.f32 %v4898_v54, %v4897_v10  ;;  %v4900_v24 = vpop.f32.mrb[22].mxu1  ;;  %4027 = vmatprep.mubr.bf16.mxu0 %v6891_v63  ;;  %v2488_v56 = vsel %vm1351_vm8, %v6765_v33, %v2487_v38  ;;  %v2509_v10 = vshll.u32 %v2420_v5, 16  ;;  %v2427_v38 = vld [vmem:[#allocation2 + $0x110] sm:$0xff] }
 0x22e   : > { %v4901_v20 = vpop.f32.mrb[23].mxu1  ;;  %v2500_v54 = vsel %vm1351_vm8, %v6775_v3, %v2499_v6 }
 0x22f   : > { %v5003_v12 = vpop.f32.mrb[48].mxu0  ;;  %v4902_v39 = vadd.f32 %v4901_v20, %v4900_v24  ;;  %v3467_v1 = vadd.f32 %v4899_v51, %v6824_v8  ;;  %v2511_v33 = vrot.slane %v2509_v10, 1  ;;  %v2428_v10 = vld [vmem:[#allocation2 + $0x118] sm:$0x1] }
 0x230   : > { %v5004_v37 = vpop.f32.mrb[49].mxu0  ;;  %5382 = vmatmul.mubr.bf16.vlgmr.msra.gmra.mrb[128].mxu1 %v2464_v28 }
 0x231   : > { %v5005_v36 = vadd.f32 %v5004_v37, %v5003_v12  ;;  %v5006_v4 = vpop.f32.mrb[50].mxu0  ;;  %5385 = vmatprep.mubr.bf16.mxu1 %v2476_v21  ;;  %v3470_v2 = vadd.f32 %v4902_v39, %v6824_v8  ;;  %v2523_v21 = vrot.slane %v2521_v40, 1  ;;  %v2512_v39 = vsel %vm1351_vm8, %v6782_v27, %v2511_v33 }
 0x232   : > { %v5007_v55 = vpop.f32.mrb[51].mxu0 }
 0x233   : > { %v6919_v42 = vadd.f32 %v5005_v36, %v3459_v18  ;;  %v5008_v13 = vadd.f32 %v5007_v55, %v5006_v4  ;;  %v4903_v48 = vpop.f32.mrb[24].mxu1  ;;  %v2426_v36 = vld [vmem:[#allocation2 + $0x100] sm:$0x1]  ;;  %v2533_v4 = vshll.u32 %v2424_v44, 16 }
 0x234   : > { %4028 = vmatmul.mubr.bf16.gmra.mrb[156].mxu0 %v2344_v58  ;;  %v4904_v23 = vpop.f32.mrb[25].mxu1 }
 0x235   : > { %v6921_v15 = vadd.f32 %v5008_v13, %v3462_v30  ;;  %v4905_v53 = vadd.f32 %v4904_v23, %v4903_v48  ;;  %v4906_v57 = vpop.f32.mrb[26].mxu1  ;;  %v2524_v13 = vsel %vm1351_vm8, %v6787_v31, %v2523_v21  ;;  %v2545_v48 = vshll.u32 %v2426_v36, 16 }
 0x236   : > { %v4907_v22 = vpop.f32.mrb[27].mxu1  ;;  %v2535_v9 = vrot.slane %v2533_v4, 1 }
 0x237   : > { %v5009_v25 = vpop.f32.mrb[52].mxu0  ;;  %v4908_v47 = vadd.f32 %v4907_v22, %v4906_v57  ;;  %v3475_v23 = vadd.f32 %v4905_v53, %v6824_v8  ;;  %v2547_v40 = vrot.slane %v2545_v48, 1  ;;  %v2430_v53 = vld [vmem:[#allocation2 + $0x130] sm:$0x1] }
 0x238   : > { %v5010_v46 = vpop.f32.mrb[53].mxu0  ;;  %5386 = vmatmul.mubr.bf16.gmra.mrb[132].mxu1 %v2488_v56  ;;  %v2569_v21 = vshll.u32 %v2430_v53, 16 }
 0x239   : > { %v5011_v24 = vadd.f32 %v5010_v46, %v5009_v25  ;;  %v5012_v50 = vpop.f32.mrb[54].mxu0  ;;  %5389 = vmatprep.mubr.bf16.mxu1 %v2500_v54  ;;  %v3478_v22 = vadd.f32 %v4908_v47, %v6824_v8  ;;  %v2552_v46 = vshll.u32 %v2427_v38, 16  ;;  %v2536_v47 = vsel %vm1351_vm8, %v6792_v34, %v2535_v9 }
 0x23a   : > { %v5013_v14 = vpop.f32.mrb[55].mxu0 }
 0x23b   : > { %v6929_v20 = vadd.f32 %v5011_v24, %v3467_v1  ;;  %v5014_v12 = vadd.f32 %v5013_v14, %v5012_v50  ;;  %v4909_v28 = vpop.f32.mrb[28].mxu1  ;;  %v2557_v14 = vshll.u32 %v2428_v10, 16  ;;  %v2554_v33 = vrot.slane %v2552_v46, 1 }
 0x23c   : > { %v4910_v37 = vpop.f32.mrb[29].mxu1 }
 0x23d   : > { %v6931_v59 = vadd.f32 %v5014_v12, %v3470_v2  ;;  %v4911_v3 = vadd.f32 %v4910_v37, %v4909_v28  ;;  %v4912_v18 = vpop.f32.mrb[30].mxu1  ;;  %v2550_v28 = vshrl.u32 %v2427_v38, 16  ;;  %v2548_v37 = vsel %vm1351_vm8, %v6797_v49, %v2547_v40 }
 0x23e   : > { %v4913_v51 = vpop.f32.mrb[31].mxu1 }
 0x23f   : > { %v5015_v58 = vpop.f32.mrb[56].mxu0  ;;  %v4914_v55 = vadd.f32 %v4913_v51, %v4912_v18  ;;  %v3483_v18 = vadd.f32 %v4911_v3, %v6824_v8  ;;  %v2555_v48 = vor.u32 %v2554_v33, %v2550_v28  ;;  %v2434_v3 = vld [vmem:[#allocation2 + $0x160] sm:$0x1] }
 0x240   : > { %v5016_v30 = vpop.f32.mrb[57].mxu0  ;;  %5390 = vmatmul.mubr.bf16.gmra.mrb[136].mxu1 %v2512_v39  ;;  %v2593_v40 = vshll.u32 %v2434_v3, 16 }
 0x241   : > { %v5017_v6 = vadd.f32 %v5016_v30, %v5015_v58  ;;  %v5018_v5 = vpop.f32.mrb[58].mxu0  ;;  %5393 = vmatprep.mubr.bf16.mxu1 %v2524_v13  ;;  %v2559_v58 = vrot.slane %v2557_v14, 1  ;;  %v3486_v39 = vadd.f32 %v4914_v55, %v6824_v8 }
 0x242   : > { %v5019_v57 = vpop.f32.mrb[59].mxu0 }
 0x243   : > { %v6939_v25 = vadd.f32 %v5017_v6, %v3475_v23  ;;  %v5020_v56 = vadd.f32 %v5019_v57, %v5018_v5  ;;  %v4915_v27 = vpop.f32.mrb[32].mxu1  ;;  %v2571_v23 = vrot.slane %v2569_v21, 1  ;;  %v2432_v6 = vld [vmem:[#allocation2 + $0x148] sm:$0x1]  ;;  %v2595_v21 = vrot.slane %v2593_v40, 1 }
 0x244   : > { %v4916_v54 = vpop.f32.mrb[33].mxu1  ;;  %v2581_v10 = vshll.u32 %v2432_v6, 16 }
 0x245   : > { %v6941_v31 = vadd.f32 %v5020_v56, %v3478_v22  ;;  %v4917_v1 = vadd.f32 %v4916_v54, %v4915_v27  ;;  %v4918_v24 = vpop.f32.mrb[34].mxu1  ;;  %v2560_v27 = vsel %vm1351_vm8, %v2555_v48, %v2559_v58  ;;  %v2572_v46 = vsel %vm1351_vm8, %v6809_v0, %v2571_v23 }
 0x246   : > { %v4919_v50 = vpop.f32.mrb[35].mxu1  ;;  %v2590_v54 = vrot.slane %v2305_v7, 1  ;;  %v2436_v7 = vld [vmem:[#allocation2 + $0x178] sm:$0x1] }
 0x247   : > { %v5021_v2 = vpop.f32.mrb[60].mxu0  ;;  %v4920_v12 = vadd.f32 %v4919_v50, %v4918_v24  ;;  %v3491_v24 = vadd.f32 %v4917_v1, %v6824_v8 }
 0x248   : > { %v5022_v44 = vpop.f32.mrb[61].mxu0  ;;  %5394 = vmatmul.mubr.bf16.gmra.mrb[140].mxu1 %v2536_v47  ;;  %v2591_v0 = vor.u32 %v2590_v54, %v2302_v43 }
 0x249   : > { %v5023_v36 = vadd.f32 %v5022_v44, %v5021_v2  ;;  %v5024_v51 = vpop.f32.mrb[62].mxu0  ;;  %5397 = vmatprep.mubr.bf16.mxu1 %v2548_v37  ;;  %v3494_v2 = vadd.f32 %v4920_v12, %v6824_v8  ;;  %v2583_v44 = vrot.slane %v2581_v10, 1 }
 0x24a   : > { %v5025_v4 = vpop.f32.mrb[63].mxu0  ;;  %v2596_v48 = vsel %vm1351_vm8, %v2591_v0, %v2595_v21 }
 0x24b   : > { %v6949_v30 = vadd.f32 %v5023_v36, %v3483_v18  ;;  %v5026_v34 = vadd.f32 %v5025_v4, %v5024_v51  ;;  %v4921_v13 = vpop.f32.mrb[36].mxu1  ;;  %v2438_v51 = vld [vmem:[#allocation2 + $0x190] sm:$0x1]  ;;  %v2584_v12 = vsel %vm1351_vm8, %v6819_v11, %v2583_v44 }
 0x24c   : > { %v4922_v38 = vpop.f32.mrb[37].mxu1  ;;  %v2617_v52 = vshll.u32 %v2438_v51, 16 }
 0x24d   : > { %v6951_v5 = vadd.f32 %v5026_v34, %v3486_v39  ;;  %v4923_v49 = vadd.f32 %v4922_v38, %v4921_v13  ;;  %v4924_v57 = vpop.f32.mrb[38].mxu1  ;;  %v2605_v34 = vshll.u32 %v2436_v7, 16 }
 0x24e   : > { %v4925_v9 = vpop.f32.mrb[39].mxu1 }
 0x24f   : > { %v5027_v22 = vpop.f32.mrb[64].mxu0  ;;  %v4926_v56 = vadd.f32 %v4925_v9, %v4924_v57  ;;  %v3499_v43 = vadd.f32 %v4923_v49, %v6824_v8  ;;  %v2440_v57 = vld [vmem:[#allocation2 + $0x1a8] sm:$0x1]  ;;  %v2607_v11 = vrot.slane %v2605_v34, 1  ;;  %v2626_v49 = vrot.slane %v2341_v19, 1 }
 0x250   : > { %v5028_v55 = vpop.f32.mrb[65].mxu0  ;;  %5398 = vmatmul.mubr.bf16.gmra.mrb[144].mxu1 %v2560_v27 }
 0x251   : > { %v5029_v53 = vadd.f32 %v5028_v55, %v5027_v22  ;;  %v5030_v50 = vpop.f32.mrb[66].mxu0  ;;  %5401 = vmatprep.mubr.bf16.mxu1 %v2572_v46  ;;  %v3502_v3 = vadd.f32 %v4926_v56, %v6824_v8  ;;  %v2619_v55 = vrot.slane %v2617_v52, 1  ;;  %v2608_v56 = vsel %vm1351_vm8, %v6856_v32, %v2607_v11 }
 0x252   : > { %v5031_v14 = vpop.f32.mrb[67].mxu0  ;;  %v2627_v19 = vor.u32 %v2626_v49, %v2338_v35 }
 0x253   : > { %v6960_v47 = vadd.f32 %v5029_v53, %v3491_v24  ;;  %v5032_v28 = vadd.f32 %v5031_v14, %v5030_v50  ;;  %v4927_v33 = vpop.f32.mrb[40].mxu1  ;;  %v2629_v24 = vshll.u32 %v2440_v57, 16 }
 0x254   : > { %v4928_v37 = vpop.f32.mrb[41].mxu1 }
 0x255   : > { %v6964_v18 = vadd.f32 %v5032_v28, %v3494_v2  ;;  %v4929_v1 = vadd.f32 %v4928_v37, %v4927_v33  ;;  %v4930_v36 = vpop.f32.mrb[42].mxu1  ;;  %v2620_v28 = vsel %vm1351_vm8, %v6875_v16, %v2619_v55  ;;  %v2631_v0 = vrot.slane %v2629_v24, 1 }
 0x256   : > { %v4931_v4 = vpop.f32.mrb[43].mxu1 }
 0x257   : > { %v5033_v58 = vpop.f32.mrb[68].mxu0  ;;  %v4932_v39 = vadd.f32 %v4931_v4, %v4930_v36  ;;  %v3507_v33 = vadd.f32 %v4929_v1, %v6824_v8  ;;  %v2632_v1 = vsel %vm1351_vm8, %v2627_v19, %v2631_v0 }
 0x258   : > { %v5034_v13 = vpop.f32.mrb[69].mxu0  ;;  %5402 = vmatmul.mubr.bf16.gmra.mrb[148].mxu1 %v2584_v12 }
 0x259   : > { %v5035_v38 = vadd.f32 %v5034_v13, %v5033_v58  ;;  %v5036_v23 = vpop.f32.mrb[70].mxu0  ;;  %5405 = vmatprep.mubr.bf16.mxu1 %v2596_v48  ;;  %v3510_v7 = vadd.f32 %v4932_v39, %v6824_v8 }
 0x25a   : > { %v5037_v6 = vpop.f32.mrb[71].mxu0 }
 0x25b   : > { %v6971_v9 = vadd.f32 %v5035_v38, %v3499_v43  ;;  %v5038_v22 = vadd.f32 %v5037_v6, %v5036_v23  ;;  %v4933_v27 = vpop.f32.mrb[44].mxu1 }
 0x25c   : > { %v4934_v10 = vpop.f32.mrb[45].mxu1 }
 0x25d   : > { %v6973_v46 = vadd.f32 %v5038_v22, %v3502_v3  ;;  %v4935_v54 = vadd.f32 %v4934_v10, %v4933_v27  ;;  %v4936_v40 = vpop.f32.mrb[46].mxu1 }
 0x25e   : > { %v4937_v53 = vpop.f32.mrb[47].mxu1 }
 0x25f   : > { %v5039_v50 = vpop.f32.mrb[72].mxu0  ;;  %v4938_v14 = vadd.f32 %v4937_v53, %v4936_v40  ;;  %v3515_v35 = vadd.f32 %v4935_v54, %v6824_v8 }
 0x260   : > { %v5040_v2 = vpop.f32.mrb[73].mxu0  ;;  %5406 = vmatmul.mubr.bf16.gmra.mrb[152].mxu1 %v2608_v56 }
 0x261   : > { %v5041_v44 = vadd.f32 %v5040_v2, %v5039_v50  ;;  %v5042_v37 = vpop.f32.mrb[74].mxu0  ;;  %5409 = vmatprep.mubr.bf16.mxu1 %v2620_v28  ;;  %v3518_v38 = vadd.f32 %v4938_v14, %v6824_v8 }
 0x262   : > { %v5043_v21 = vpop.f32.mrb[75].mxu0 }
 0x263   : > { %v6985_v36 = vadd.f32 %v5041_v44, %v3507_v33  ;;  %v5044_v32 = vadd.f32 %v5043_v21, %v5042_v37  ;;  %v4939_v51 = vpop.f32.mrb[48].mxu1 }
 0x264   : > { %v4940_v4 = vpop.f32.mrb[49].mxu1 }
 0x265   : > { %v6987_v58 = vadd.f32 %v5044_v32, %v3510_v7  ;;  %v4941_v16 = vadd.f32 %v4940_v4, %v4939_v51  ;;  %v4942_v12 = vpop.f32.mrb[50].mxu1 }
 0x266   : > { %v4943_v34 = vpop.f32.mrb[51].mxu1 }
 0x267   : > { %v5045_v13 = vpop.f32.mrb[76].mxu0  ;;  %v4944_v48 = vadd.f32 %v4943_v34, %v4942_v12  ;;  %v3523_v54 = vadd.f32 %v4941_v16, %v6824_v8 }
 0x268   : > { %v5046_v63 = vpop.f32.mrb[77].mxu0  ;;  %5410 = vmatmul.mubr.bf16.gmra.mrb[156].mxu1 %v2632_v1 }
 0x269   : > { %v5047_v52 = vadd.f32 %v5046_v63, %v5045_v13  ;;  %v5048_v39 = vpop.f32.mrb[78].mxu0  ;;  %v3526_v14 = vadd.f32 %v4944_v48, %v6824_v8 }
 0x26a   : > { %v5049_v43 = vpop.f32.mrb[79].mxu0 }
 0x26b   : > { %v6992_v23 = vadd.f32 %v5047_v52, %v3515_v35  ;;  %v5050_v6 = vadd.f32 %v5049_v43, %v5048_v39  ;;  %v4945_v57 = vpop.f32.mrb[52].mxu1 }
 0x26c   : > { %v4946_v3 = vpop.f32.mrb[53].mxu1 }
 0x26d   : > { %v6994_v22 = vadd.f32 %v5050_v6, %v3518_v38  ;;  %v4947_v27 = vadd.f32 %v4946_v3, %v4945_v57  ;;  %v4948_v11 = vpop.f32.mrb[54].mxu1 }
 0x26e   : > { %v4949_v10 = vpop.f32.mrb[55].mxu1 }
 0x26f   : > { %v5051_v55 = vpop.f32.mrb[80].mxu0  ;;  %v4950_v40 = vadd.f32 %v4949_v10, %v4948_v11  ;;  %v3531_v51 = vadd.f32 %v4947_v27, %v6824_v8 }
 0x270   : > { %v5052_v49 = vpop.f32.mrb[81].mxu0 }
 0x271   : > { %v5053_v24 = vadd.f32 %v5052_v49, %v5051_v55  ;;  %v5054_v53 = vpop.f32.mrb[82].mxu0  ;;  %v3534_v1 = vadd.f32 %v4950_v40, %v6824_v8 }
 0x272   : > { %v5055_v50 = vpop.f32.mrb[83].mxu0 }
 0x273   : > { %v6998_v56 = vadd.f32 %v5053_v24, %v3523_v54  ;;  %v5056_v2 = vadd.f32 %v5055_v50, %v5054_v53  ;;  %v4951_v28 = vpop.f32.mrb[56].mxu1 }
 0x274   : > { %v4952_v33 = vpop.f32.mrb[57].mxu1 }
 0x275   : > { %v7000_v44 = vadd.f32 %v5056_v2, %v3526_v14  ;;  %v4953_v37 = vadd.f32 %v4952_v33, %v4951_v28  ;;  %v4954_v19 = vpop.f32.mrb[58].mxu1 }
 0x276   : > { %v4955_v0 = vpop.f32.mrb[59].mxu1 }
 0x277   : > { %v5057_v21 = vpop.f32.mrb[84].mxu0  ;;  %v4956_v7 = vadd.f32 %v4955_v0, %v4954_v19  ;;  %v3539_v3 = vadd.f32 %v4953_v37, %v6824_v8 }
 0x278   : > { %v5058_v32 = vpop.f32.mrb[85].mxu0 }
 0x279   : > { %v5059_v4 = vadd.f32 %v5058_v32, %v5057_v21  ;;  %v5060_v16 = vpop.f32.mrb[86].mxu0  ;;  %v3542_v55 = vadd.f32 %v4956_v7, %v6824_v8 }
 0x27a   : > { %v5061_v12 = vpop.f32.mrb[87].mxu0 }
 0x27b   : > { %v7004_v34 = vadd.f32 %v5059_v4, %v3531_v51  ;;  %v5062_v13 = vadd.f32 %v5061_v12, %v5060_v16  ;;  %v4957_v48 = vpop.f32.mrb[60].mxu1 }
 0x27c   : > { %v4958_v63 = vpop.f32.mrb[61].mxu1 }
 0x27d   : > { %v7006_v35 = vadd.f32 %v5062_v13, %v3534_v1  ;;  %v4959_v52 = vadd.f32 %v4958_v63, %v4957_v48  ;;  %v4960_v39 = vpop.f32.mrb[62].mxu1 }
 0x27e   : > { %v4961_v43 = vpop.f32.mrb[63].mxu1 }
 0x27f   : > { %v5063_v38 = vpop.f32.mrb[88].mxu0  ;;  %v4962_v6 = vadd.f32 %v4961_v43, %v4960_v39  ;;  %v3547_v0 = vadd.f32 %v4959_v52, %v6824_v8 }
 0x280   : > { %v5064_v57 = vpop.f32.mrb[89].mxu0 }
 0x281   : > { %v5065_v27 = vadd.f32 %v5064_v57, %v5063_v38  ;;  %v5066_v11 = vpop.f32.mrb[90].mxu0  ;;  %v3550_v4 = vadd.f32 %v4962_v6, %v6824_v8 }
 0x282   : > { %v5067_v10 = vpop.f32.mrb[91].mxu0 }
 0x283   : > { %v7010_v40 = vadd.f32 %v5065_v27, %v3539_v3  ;;  %v5068_v49 = vadd.f32 %v5067_v10, %v5066_v11  ;;  %v5091_v54 = vpop.f32.mrb[64].mxu1 }
 0x284   : > { %v5092_v24 = vpop.f32.mrb[65].mxu1 }
 0x285   : > { %v7012_v53 = vadd.f32 %v5068_v49, %v3542_v55  ;;  %v5093_v50 = vadd.f32 %v5092_v24, %v5091_v54  ;;  %v5094_v14 = vpop.f32.mrb[66].mxu1 }
 0x286   : > { %v5095_v2 = vpop.f32.mrb[67].mxu1 }
 0x287   : > { %v5069_v28 = vpop.f32.mrb[92].mxu0  ;;  %v3749_v33 = vadd.f32 %v5093_v50, %v6835_v60  ;;  %v5096_v19 = vadd.f32 %v5095_v2, %v5094_v14 }
 0x288   : > { %v5070_v37 = vpop.f32.mrb[93].mxu0 }
 0x289   : > { %v5071_v21 = vadd.f32 %v5070_v37, %v5069_v28  ;;  %v5072_v32 = vpop.f32.mrb[94].mxu0  ;;  %v3752_v7 = vadd.f32 %v5096_v19, %v6841_v26 }
 0x28a   : > { %v5073_v51 = vpop.f32.mrb[95].mxu0 }
 0x28b   : > { %v7018_v16 = vadd.f32 %v5071_v21, %v3547_v0  ;;  %v5074_v12 = vadd.f32 %v5073_v51, %v5072_v32  ;;  %v5097_v1 = vpop.f32.mrb[68].mxu1 }
 0x28c   : > { %v5098_v13 = vpop.f32.mrb[69].mxu1 }
 0x28d   : > { %v7020_v48 = vadd.f32 %v5074_v12, %v3550_v4  ;;  %v5099_v63 = vadd.f32 %v5098_v13, %v5097_v1  ;;  %v5100_v60 = vpop.f32.mrb[70].mxu1 }
 0x28e   : > { %v5101_v39 = vpop.f32.mrb[71].mxu1 }
 0x28f   : > { %v3757_v43 = vadd.f32 %v5099_v63, %v6862_v17  ;;  %v5203_v52 = vpop.f32.mrb[96].mxu0  ;;  %v5102_v38 = vadd.f32 %v5101_v39, %v5100_v60 }
 0x290   : > { %v5204_v57 = vpop.f32.mrb[97].mxu0 }
 0x291   : > { %v5205_v3 = vadd.f32 %v5204_v57, %v5203_v52  ;;  %v3760_v26 = vadd.f32 %v5102_v38, %v6866_v62  ;;  %v5206_v27 = vpop.f32.mrb[98].mxu0 }
 0x292   : > { %v5207_v8 = vpop.f32.mrb[99].mxu0 }
 0x293   : > { %v5208_v6 = vadd.f32 %v5207_v8, %v5206_v27  ;;  %v5103_v11 = vpop.f32.mrb[72].mxu1  ;;  %v7024_v10 = vadd.f32 %v5205_v3, %v3749_v33 }
 0x294   : > { %v5104_v55 = vpop.f32.mrb[73].mxu1 }
 0x295   : > { %v5105_v49 = vadd.f32 %v5104_v55, %v5103_v11  ;;  %v5106_v54 = vpop.f32.mrb[74].mxu1  ;;  %v7026_v24 = vadd.f32 %v5208_v6, %v3752_v7 }
 0x296   : > { %v5107_v50 = vpop.f32.mrb[75].mxu1 }
 0x297   : > { %v3765_v17 = vadd.f32 %v5105_v49, %v6885_v61  ;;  %v5209_v14 = vpop.f32.mrb[100].mxu0  ;;  %v5108_v2 = vadd.f32 %v5107_v50, %v5106_v54 }
 0x298   : > { %v5210_v28 = vpop.f32.mrb[101].mxu0 }
 0x299   : > { %v5211_v19 = vadd.f32 %v5210_v28, %v5209_v14  ;;  %v3768_v62 = vadd.f32 %v5108_v2, %v6887_v41  ;;  %v5212_v37 = vpop.f32.mrb[102].mxu0 }
 0x29a   : > { %v5213_v0 = vpop.f32.mrb[103].mxu0 }
 0x29b   : > { %v5214_v21 = vadd.f32 %v5213_v0, %v5212_v37  ;;  %v5109_v32 = vpop.f32.mrb[76].mxu1  ;;  %v7030_v33 = vadd.f32 %v5211_v19, %v3757_v43 }
 0x29c   : > { %v5110_v51 = vpop.f32.mrb[77].mxu1 }
 0x29d   : > { %v5111_v4 = vadd.f32 %v5110_v51, %v5109_v32  ;;  %v5112_v12 = vpop.f32.mrb[78].mxu1  ;;  %v7032_v7 = vadd.f32 %v5214_v21, %v3760_v26 }
 0x29e   : > { %v5113_v1 = vpop.f32.mrb[79].mxu1 }
 0x29f   : > { %v3773_v61 = vadd.f32 %v5111_v4, %v6905_v29  ;;  %v5215_v13 = vpop.f32.mrb[104].mxu0  ;;  %v5114_v63 = vadd.f32 %v5113_v1, %v5112_v12 }
 0x2a0   : > { %v5216_v60 = vpop.f32.mrb[105].mxu0 }
 0x2a1   : > { %v5217_v39 = vadd.f32 %v5216_v60, %v5215_v13  ;;  %v3776_v41 = vadd.f32 %v5114_v63, %v6907_v45  ;;  %v5218_v52 = vpop.f32.mrb[106].mxu0 }
 0x2a2   : > { %v5219_v38 = vpop.f32.mrb[107].mxu0 }
 0x2a3   : > { %v5220_v57 = vadd.f32 %v5219_v38, %v5218_v52  ;;  %v5115_v3 = vpop.f32.mrb[80].mxu1  ;;  %v7036_v43 = vadd.f32 %v5217_v39, %v3765_v17 }
 0x2a4   : > { %v5116_v27 = vpop.f32.mrb[81].mxu1 }
 0x2a5   : > { %v5117_v8 = vadd.f32 %v5116_v27, %v5115_v3  ;;  %v5118_v6 = vpop.f32.mrb[82].mxu1  ;;  %v7038_v26 = vadd.f32 %v5220_v57, %v3768_v62 }
 0x2a6   : > { %v5119_v11 = vpop.f32.mrb[83].mxu1 }
 0x2a7   : > { %v3781_v29 = vadd.f32 %v5117_v8, %v6919_v42  ;;  %v5221_v55 = vpop.f32.mrb[108].mxu0  ;;  %v5120_v49 = vadd.f32 %v5119_v11, %v5118_v6 }
 0x2a8   : > { %v5222_v54 = vpop.f32.mrb[109].mxu0 }
 0x2a9   : > { %v5223_v50 = vadd.f32 %v5222_v54, %v5221_v55  ;;  %v3784_v45 = vadd.f32 %v5120_v49, %v6921_v15  ;;  %v5224_v14 = vpop.f32.mrb[110].mxu0 }
 0x2aa   : > { %v5225_v2 = vpop.f32.mrb[111].mxu0 }
 0x2ab   : > { %v5226_v28 = vadd.f32 %v5225_v2, %v5224_v14  ;;  %v5121_v19 = vpop.f32.mrb[84].mxu1  ;;  %v7042_v17 = vadd.f32 %v5223_v50, %v3773_v61 }
 0x2ac   : > { %v5122_v37 = vpop.f32.mrb[85].mxu1 }
 0x2ad   : > { %v5123_v0 = vadd.f32 %v5122_v37, %v5121_v19  ;;  %v5124_v21 = vpop.f32.mrb[86].mxu1  ;;  %v7044_v62 = vadd.f32 %v5226_v28, %v3776_v41 }
 0x2ae   : > { %v5125_v32 = vpop.f32.mrb[87].mxu1 }
 0x2af   : > { %v3789_v42 = vadd.f32 %v5123_v0, %v6929_v20  ;;  %v5227_v51 = vpop.f32.mrb[112].mxu0  ;;  %v5126_v4 = vadd.f32 %v5125_v32, %v5124_v21 }
 0x2b0   : > { %v5228_v12 = vpop.f32.mrb[113].mxu0 }
 0x2b1   : > { %v5229_v1 = vadd.f32 %v5228_v12, %v5227_v51  ;;  %v3792_v15 = vadd.f32 %v5126_v4, %v6931_v59  ;;  %v5230_v13 = vpop.f32.mrb[114].mxu0 }
 0x2b2   : > { %v5231_v63 = vpop.f32.mrb[115].mxu0 }
 0x2b3   : > { %v5232_v60 = vadd.f32 %v5231_v63, %v5230_v13  ;;  %v5127_v39 = vpop.f32.mrb[88].mxu1  ;;  %v7048_v61 = vadd.f32 %v5229_v1, %v3781_v29 }
 0x2b4   : > { %v5128_v52 = vpop.f32.mrb[89].mxu1 }
 0x2b5   : > { %v5129_v38 = vadd.f32 %v5128_v52, %v5127_v39  ;;  %v5130_v57 = vpop.f32.mrb[90].mxu1  ;;  %v7050_v41 = vadd.f32 %v5232_v60, %v3784_v45 }
 0x2b6   : > { %v5131_v3 = vpop.f32.mrb[91].mxu1 }
 0x2b7   : > { %v3797_v20 = vadd.f32 %v5129_v38, %v6939_v25  ;;  %v5233_v27 = vpop.f32.mrb[116].mxu0  ;;  %v5132_v8 = vadd.f32 %v5131_v3, %v5130_v57 }
 0x2b8   : > { %v5234_v6 = vpop.f32.mrb[117].mxu0 }
 0x2b9   : > { %v5235_v11 = vadd.f32 %v5234_v6, %v5233_v27  ;;  %v3800_v59 = vadd.f32 %v5132_v8, %v6941_v31  ;;  %v5236_v55 = vpop.f32.mrb[118].mxu0 }
 0x2ba   : > { %v5237_v49 = vpop.f32.mrb[119].mxu0 }
 0x2bb   : > { %v5238_v54 = vadd.f32 %v5237_v49, %v5236_v55  ;;  %v5133_v50 = vpop.f32.mrb[92].mxu1  ;;  %v7054_v29 = vadd.f32 %v5235_v11, %v3789_v42 }
 0x2bc   : > { %v5134_v14 = vpop.f32.mrb[93].mxu1 }
 0x2bd   : > { %v5135_v2 = vadd.f32 %v5134_v14, %v5133_v50  ;;  %v5136_v28 = vpop.f32.mrb[94].mxu1  ;;  %v7056_v45 = vadd.f32 %v5238_v54, %v3792_v15 }
 0x2be   : > { %v5137_v19 = vpop.f32.mrb[95].mxu1 }
 0x2bf   : > { %v3805_v25 = vadd.f32 %v5135_v2, %v6949_v30  ;;  %v5239_v37 = vpop.f32.mrb[120].mxu0  ;;  %v5138_v0 = vadd.f32 %v5137_v19, %v5136_v28 }
 0x2c0   : > { %v5240_v21 = vpop.f32.mrb[121].mxu0 }
 0x2c1   : > { %v5241_v32 = vadd.f32 %v5240_v21, %v5239_v37  ;;  %v3808_v31 = vadd.f32 %v5138_v0, %v6951_v5  ;;  %v5242_v51 = vpop.f32.mrb[122].mxu0 }
 0x2c2   : > { %v5243_v4 = vpop.f32.mrb[123].mxu0 }
 0x2c3   : > { %v5244_v12 = vadd.f32 %v5243_v4, %v5242_v51  ;;  %v5139_v1 = vpop.f32.mrb[96].mxu1  ;;  %v7060_v42 = vadd.f32 %v5241_v32, %v3797_v20 }
 0x2c4   : > { %v5140_v13 = vpop.f32.mrb[97].mxu1 }
 0x2c5   : > { %v5141_v63 = vadd.f32 %v5140_v13, %v5139_v1  ;;  %v5142_v60 = vpop.f32.mrb[98].mxu1  ;;  %v7062_v15 = vadd.f32 %v5244_v12, %v3800_v59 }
 0x2c6   : > { %v5143_v39 = vpop.f32.mrb[99].mxu1 }
 0x2c7   : > { %v3813_v30 = vadd.f32 %v5141_v63, %v6960_v47  ;;  %v5245_v52 = vpop.f32.mrb[124].mxu0  ;;  %v5144_v38 = vadd.f32 %v5143_v39, %v5142_v60 }
 0x2c8   : > { %v5246_v57 = vpop.f32.mrb[125].mxu0 }
 0x2c9   : > { %v5247_v3 = vadd.f32 %v5246_v57, %v5245_v52  ;;  %v3816_v5 = vadd.f32 %v5144_v38, %v6964_v18  ;;  %v5248_v27 = vpop.f32.mrb[126].mxu0 }
 0x2ca   : > { %v5249_v8 = vpop.f32.mrb[127].mxu0 }
 0x2cb   : > { %v5250_v6 = vadd.f32 %v5249_v8, %v5248_v27  ;;  %v5145_v11 = vpop.f32.mrb[100].mxu1  ;;  %v7066_v20 = vadd.f32 %v5247_v3, %v3805_v25 }
 0x2cc   : > { %v5146_v55 = vpop.f32.mrb[101].mxu1 }
 0x2cd   : > { %v5147_v49 = vadd.f32 %v5146_v55, %v5145_v11  ;;  %v5148_v54 = vpop.f32.mrb[102].mxu1  ;;  %v7068_v59 = vadd.f32 %v5250_v6, %v3808_v31 }
 0x2ce   : > { %v5149_v50 = vpop.f32.mrb[103].mxu1 }
 0x2cf   : > { %v3821_v47 = vadd.f32 %v5147_v49, %v6971_v9  ;;  %v5251_v14 = vpop.f32.mrb[128].mxu0  ;;  %v5150_v2 = vadd.f32 %v5149_v50, %v5148_v54 }
 0x2d0   : > { %v5252_v28 = vpop.f32.mrb[129].mxu0 }
 0x2d1   : > { %v5253_v19 = vadd.f32 %v5252_v28, %v5251_v14  ;;  %v3824_v18 = vadd.f32 %v5150_v2, %v6973_v46  ;;  %v5254_v37 = vpop.f32.mrb[130].mxu0 }
 0x2d2   : > { %v5255_v0 = vpop.f32.mrb[131].mxu0 }
 0x2d3   : > { %v5256_v21 = vadd.f32 %v5255_v0, %v5254_v37  ;;  %v5151_v32 = vpop.f32.mrb[104].mxu1  ;;  %v7072_v25 = vadd.f32 %v5253_v19, %v3813_v30 }
 0x2d4   : > { %v5152_v51 = vpop.f32.mrb[105].mxu1 }
 0x2d5   : > { %v5153_v4 = vadd.f32 %v5152_v51, %v5151_v32  ;;  %v5154_v12 = vpop.f32.mrb[106].mxu1  ;;  %v7074_v31 = vadd.f32 %v5256_v21, %v3816_v5 }
 0x2d6   : > { %v5155_v1 = vpop.f32.mrb[107].mxu1 }
 0x2d7   : > { %v3829_v9 = vadd.f32 %v5153_v4, %v6985_v36  ;;  %v5257_v13 = vpop.f32.mrb[132].mxu0  ;;  %v5156_v63 = vadd.f32 %v5155_v1, %v5154_v12 }
 0x2d8   : > { %v5258_v60 = vpop.f32.mrb[133].mxu0 }
 0x2d9   : > { %v5259_v39 = vadd.f32 %v5258_v60, %v5257_v13  ;;  %v3832_v46 = vadd.f32 %v5156_v63, %v6987_v58  ;;  %v5260_v52 = vpop.f32.mrb[134].mxu0 }
 0x2da   : > { %v5261_v38 = vpop.f32.mrb[135].mxu0 }
 0x2db   : > { %v5262_v57 = vadd.f32 %v5261_v38, %v5260_v52  ;;  %v5157_v3 = vpop.f32.mrb[108].mxu1  ;;  %v7078_v30 = vadd.f32 %v5259_v39, %v3821_v47 }
 0x2dc   : > { %v5158_v27 = vpop.f32.mrb[109].mxu1 }
 0x2dd   : > { %v5159_v8 = vadd.f32 %v5158_v27, %v5157_v3  ;;  %v5160_v6 = vpop.f32.mrb[110].mxu1  ;;  %v7080_v5 = vadd.f32 %v5262_v57, %v3824_v18 }
 0x2de   : > { %v5161_v11 = vpop.f32.mrb[111].mxu1 }
 0x2df   : > { %v3837_v36 = vadd.f32 %v5159_v8, %v6992_v23  ;;  %v5263_v55 = vpop.f32.mrb[136].mxu0  ;;  %v5162_v49 = vadd.f32 %v5161_v11, %v5160_v6 }
 0x2e0   : > { %v5264_v54 = vpop.f32.mrb[137].mxu0 }
 0x2e1   : > { %v5265_v50 = vadd.f32 %v5264_v54, %v5263_v55  ;;  %v3840_v58 = vadd.f32 %v5162_v49, %v6994_v22  ;;  %v5266_v14 = vpop.f32.mrb[138].mxu0 }
 0x2e2   : > { %v5267_v2 = vpop.f32.mrb[139].mxu0 }
 0x2e3   : > { %v5268_v28 = vadd.f32 %v5267_v2, %v5266_v14  ;;  %v5163_v19 = vpop.f32.mrb[112].mxu1  ;;  %v7084_v47 = vadd.f32 %v5265_v50, %v3829_v9 }
 0x2e4   : > { %v5164_v37 = vpop.f32.mrb[113].mxu1 }
 0x2e5   : > { %v5165_v0 = vadd.f32 %v5164_v37, %v5163_v19  ;;  %v5166_v21 = vpop.f32.mrb[114].mxu1  ;;  %v7086_v18 = vadd.f32 %v5268_v28, %v3832_v46 }
 0x2e6   : > { %v5167_v32 = vpop.f32.mrb[115].mxu1 }
 0x2e7   : > { %v3845_v23 = vadd.f32 %v5165_v0, %v6998_v56  ;;  %v5269_v51 = vpop.f32.mrb[140].mxu0  ;;  %v5168_v4 = vadd.f32 %v5167_v32, %v5166_v21 }
 0x2e8   : > { %v5270_v12 = vpop.f32.mrb[141].mxu0 }
 0x2e9   : > { %v5271_v1 = vadd.f32 %v5270_v12, %v5269_v51  ;;  %v3848_v22 = vadd.f32 %v5168_v4, %v7000_v44  ;;  %v5272_v13 = vpop.f32.mrb[142].mxu0 }
 0x2ea   : > { %v5273_v63 = vpop.f32.mrb[143].mxu0 }
 0x2eb   : > { %v5274_v60 = vadd.f32 %v5273_v63, %v5272_v13  ;;  %v5169_v39 = vpop.f32.mrb[116].mxu1  ;;  %v7090_v9 = vadd.f32 %v5271_v1, %v3837_v36 }
 0x2ec   : > { %v5170_v52 = vpop.f32.mrb[117].mxu1 }
 0x2ed   : > { %v5171_v38 = vadd.f32 %v5170_v52, %v5169_v39  ;;  %v5172_v57 = vpop.f32.mrb[118].mxu1  ;;  %v7092_v46 = vadd.f32 %v5274_v60, %v3840_v58 }
 0x2ee   : > { %v5173_v3 = vpop.f32.mrb[119].mxu1 }
 0x2ef   : > { %v3853_v56 = vadd.f32 %v5171_v38, %v7004_v34  ;;  %v5275_v27 = vpop.f32.mrb[144].mxu0  ;;  %v5174_v8 = vadd.f32 %v5173_v3, %v5172_v57 }
 0x2f0   : > { %v5276_v6 = vpop.f32.mrb[145].mxu0 }
 0x2f1   : > { %v5277_v11 = vadd.f32 %v5276_v6, %v5275_v27  ;;  %v3856_v44 = vadd.f32 %v5174_v8, %v7006_v35  ;;  %v5278_v55 = vpop.f32.mrb[146].mxu0 }
 0x2f2   : > { %v5279_v49 = vpop.f32.mrb[147].mxu0 }
 0x2f3   : > { %v5280_v54 = vadd.f32 %v5279_v49, %v5278_v55  ;;  %v5175_v50 = vpop.f32.mrb[120].mxu1  ;;  %v7096_v36 = vadd.f32 %v5277_v11, %v3845_v23 }
 0x2f4   : > { %v5176_v14 = vpop.f32.mrb[121].mxu1 }
 0x2f5   : > { %v5177_v2 = vadd.f32 %v5176_v14, %v5175_v50  ;;  %v5178_v28 = vpop.f32.mrb[122].mxu1  ;;  %v7098_v58 = vadd.f32 %v5280_v54, %v3848_v22 }
 0x2f6   : > { %v5179_v19 = vpop.f32.mrb[123].mxu1 }
 0x2f7   : > { %v3861_v34 = vadd.f32 %v5177_v2, %v7010_v40  ;;  %v5281_v37 = vpop.f32.mrb[148].mxu0  ;;  %v5180_v0 = vadd.f32 %v5179_v19, %v5178_v28 }
 0x2f8   : > { %v5282_v21 = vpop.f32.mrb[149].mxu0 }
 0x2f9   : > { %v5283_v32 = vadd.f32 %v5282_v21, %v5281_v37  ;;  %v3864_v35 = vadd.f32 %v5180_v0, %v7012_v53  ;;  %v5284_v51 = vpop.f32.mrb[150].mxu0 }
 0x2fa   : > { %v5285_v4 = vpop.f32.mrb[151].mxu0 }
 0x2fb   : > { %v5286_v12 = vadd.f32 %v5285_v4, %v5284_v51  ;;  %v5181_v1 = vpop.f32.mrb[124].mxu1  ;;  %v7102_v23 = vadd.f32 %v5283_v32, %v3853_v56 }
 0x2fc   : > { %v5182_v13 = vpop.f32.mrb[125].mxu1 }
 0x2fd   : > { %v5183_v63 = vadd.f32 %v5182_v13, %v5181_v1  ;;  %v5184_v60 = vpop.f32.mrb[126].mxu1  ;;  %v7104_v22 = vadd.f32 %v5286_v12, %v3856_v44 }
 0x2fe   : > { %v5185_v39 = vpop.f32.mrb[127].mxu1 }
 0x2ff   : > { %v3869_v40 = vadd.f32 %v5183_v63, %v7018_v16  ;;  %v5287_v52 = vpop.f32.mrb[152].mxu0  ;;  %v5186_v38 = vadd.f32 %v5185_v39, %v5184_v60 }
 0x300   : > { %v5288_v57 = vpop.f32.mrb[153].mxu0 }
 0x301   : > { %v5289_v3 = vadd.f32 %v5288_v57, %v5287_v52  ;;  %v3872_v53 = vadd.f32 %v5186_v38, %v7020_v48  ;;  %v5290_v27 = vpop.f32.mrb[154].mxu0 }
 0x302   : > { %v5291_v8 = vpop.f32.mrb[155].mxu0 }
 0x303   : > { %v5292_v6 = vadd.f32 %v5291_v8, %v5290_v27  ;;  %v5383_v11 = vpop.f32.mrb[128].mxu1  ;;  %v7108_v56 = vadd.f32 %v5289_v3, %v3861_v34 }
 0x304   : > { %v4079_v55 = vadd.f32 %v5383_v11, %v7030_v33  ;;  %v4070_v49 = vpop.f32.mrb[129].mxu1 }
 0x305   : > { %v4071_v44 = vadd.f32 %v4070_v49, %v7024_v10  ;;  %v5384_v54 = vpop.f32.mrb[130].mxu1  ;;  %v7112_v50 = vadd.f32 %v5292_v6, %v3864_v35 }
 0x306   : > { %v4231_v16 = vmul.f32 0.044715, %v4079_v55  ;;  %v4082_v14 = vadd.f32 %v5384_v54, %v7032_v7  ;;  %v4073_v2 = vpop.f32.mrb[131].mxu1 }
 0x307   : > { %v5293_v28 = vpop.f32.mrb[156].mxu0  ;;  %v4229_v48 = vmul.f32 0.044715, %v4071_v44  ;;  %v4074_v19 = vadd.f32 %v4073_v2, %v7026_v24 }
 0x308   : > { %v4263_v37 = vmul.f32 %v4231_v16, %v4079_v55  ;;  %v5294_v0 = vpop.f32.mrb[157].mxu0  ;;  %v4232_v34 = vmul.f32 0.044715, %v4082_v14 }
 0x309   : > { %v4261_v21 = vmul.f32 %v4229_v48, %v4071_v44  ;;  %v5295_v32 = vadd.f32 %v5294_v0, %v5293_v28  ;;  %v5296_v33 = vpop.f32.mrb[158].mxu0  ;;  %v4230_v51 = vmul.f32 0.044715, %v4074_v19 }
 0x30a   : > { %v4295_v4 = vmul.f32 %v4263_v37, %v4079_v55  ;;  %v4264_v10 = vmul.f32 %v4232_v34, %v4082_v14  ;;  %v5297_v12 = vpop.f32.mrb[159].mxu0 }
 0x30b   : > { %v4293_v35 = vmul.f32 %v4261_v21, %v4071_v44  ;;  %v4262_v1 = vmul.f32 %v4230_v51, %v4074_v19  ;;  %v5298_v13 = vadd.f32 %v5297_v12, %v5296_v33  ;;  %v5387_v63 = vpop.f32.mrb[132].mxu1  ;;  %v7116_v7 = vadd.f32 %v5295_v32, %v3869_v40 }
 0x30c   : > { %v4327_v60 = vadd.f32 %v4295_v4, %v4079_v55  ;;  %v4296_v39 = vmul.f32 %v4264_v10, %v4082_v14  ;;  %v4095_v24 = vadd.f32 %v5387_v63, %v7042_v17  ;;  %v4086_v52 = vpop.f32.mrb[133].mxu1  ;;  %v4199_v51 = vmul.f32 0.5, %v4079_v55 }
 0x30d   : > { %v4325_v38 = vadd.f32 %v4293_v35, %v4071_v44  ;;  %v4294_v57 = vmul.f32 %v4262_v1, %v4074_v19  ;;  %v4087_v3 = vadd.f32 %v4086_v52, %v7036_v43  ;;  %v5388_v27 = vpop.f32.mrb[134].mxu1  ;;  %v7120_v8 = vadd.f32 %v5298_v13, %v3872_v53 }
 0x30e   : > { %v4359_v6 = vmul.f32 0.7978846, %v4327_v60  ;;  %v4328_v11 = vadd.f32 %v4296_v39, %v4082_v14  ;;  %v4235_v49 = vmul.f32 0.044715, %v4095_v24  ;;  %v4089_v54 = vpop.f32.mrb[135].mxu1  ;;  %v7123_v17 = vadd.f32 %v5388_v27, %v7044_v62 }
 0x30f   : > { %v4357_v16 = vmul.f32 0.7978846, %v4325_v38  ;;  %v4326_v2 = vadd.f32 %v4294_v57, %v4074_v19  ;;  %v4233_v40 = vmul.f32 0.044715, %v4087_v3  ;;  %v7126_v43 = vadd.f32 %v4089_v54, %v7038_v26 }
 0x310   : > { %5613 = vtanh.f32 %v4359_v6  ;;  %v4360_v28 = vmul.f32 0.7978846, %v4328_v11  ;;  %v4267_v48 = vmul.f32 %v4235_v49, %v4095_v24  ;;  %v4236_v34 = vmul.f32 0.044715, %v7123_v17 }
 0x311   : > { %5615 = vtanh.f32 %v4357_v16  ;;  %v4358_v37 = vmul.f32 0.7978846, %v4326_v2  ;;  %v4265_v0 = vmul.f32 %v4233_v40, %v4087_v3  ;;  %v4234_v32 = vmul.f32 0.044715, %v7126_v43 }
 0x312   : > { %5617 = vtanh.f32 %v4360_v28  ;;  %v4299_v53 = vmul.f32 %v4267_v48, %v4095_v24  ;;  %v4268_v62 = vmul.f32 %v4236_v34, %v7123_v17  ;;  %v4197_v35 = vmul.f32 0.5, %v4071_v44 }
 0x313   : > { %5619 = vtanh.f32 %v4358_v37  ;;  %v4297_v21 = vmul.f32 %v4265_v0, %v4087_v3  ;;  %v5391_v33 = vpop.f32.mrb[136].mxu1  ;;  %v4266_v1 = vmul.f32 %v4234_v32, %v7126_v43  ;;  %v4200_v60 = vmul.f32 0.5, %v4082_v14 }
 0x314   : > { %v4331_v4 = vadd.f32 %v4299_v53, %v4095_v24  ;;  %v7132_v10 = vadd.f32 %v5391_v33, %v7054_v29  ;;  %v4102_v12 = vpop.f32.mrb[137].mxu1  ;;  %v4300_v52 = vmul.f32 %v4268_v62, %v7123_v17  ;;  %v4198_v57 = vmul.f32 0.5, %v4074_v19 }
 0x315   : > { %v4329_v26 = vadd.f32 %v4297_v21, %v4087_v3  ;;  %v7136_v13 = vadd.f32 %v4102_v12, %v7048_v61  ;;  %v5392_v63 = vpop.f32.mrb[138].mxu1  ;;  %v4298_v29 = vmul.f32 %v4266_v1, %v7126_v43  ;;  %v4203_v16 = vmul.f32 0.5, %v4095_v24 }
 0x316   : > { %v4363_v39 = vmul.f32 0.7978846, %v4331_v4  ;;  %v4239_v55 = vmul.f32 0.044715, %v7132_v10  ;;  %v4105_v38 = vpop.f32.mrb[139].mxu1  ;;  %v4332_v6 = vadd.f32 %v4300_v52, %v7123_v17  ;;  %v7145_v11 = vadd.f32 %v5392_v63, %v7056_v45 }
 0x317   : > { %v4361_v27 = vmul.f32 0.7978846, %v4329_v26  ;;  %v4237_v44 = vmul.f32 0.044715, %v7136_v13  ;;  %v4330_v14 = vadd.f32 %v4298_v29, %v7126_v43  ;;  %v7150_v19 = vadd.f32 %v4105_v38, %v7050_v41 }
 0x318   : > { %5621 = vtanh.f32 %v4363_v39  ;;  %v4271_v61 = vmul.f32 %v4239_v55, %v7132_v10  ;;  %v4364_v2 = vmul.f32 0.7978846, %v4332_v6  ;;  %v4240_v28 = vmul.f32 0.044715, %v7145_v11 }
 0x319   : > { %5623 = vtanh.f32 %v4361_v27  ;;  %v4269_v49 = vmul.f32 %v4237_v44, %v7136_v13  ;;  %v4201_v0 = vmul.f32 0.5, %v4087_v3  ;;  %v4362_v45 = vmul.f32 0.7978846, %v4330_v14 }
 0x31a   : > { %v5614_v54 = vpop.eup %5613  ;;  %v4303_v40 = vmul.f32 %v4271_v61, %v7132_v10  ;;  %5625 = vtanh.f32 %v4364_v2  ;;  %v4272_v33 = vmul.f32 %v4240_v28, %v7145_v11  ;;  %v4238_v29 = vmul.f32 0.044715, %v7150_v19 }
 0x31b   : > { %v5616_v48 = vpop.eup %5615  ;;  %v4423_v37 = vadd.f32 1.0, %v5614_v54  ;;  %v4301_v53 = vmul.f32 %v4269_v49, %v7136_v13  ;;  %v5395_v34 = vpop.f32.mrb[140].mxu1  ;;  %5627 = vtanh.f32 %v4362_v45  ;;  %v4204_v14 = vmul.f32 0.5, %v7123_v17 }
 0x31c   : > { %v5618_v21 = vpop.eup %5617  ;;  %v4421_v32 = vadd.f32 1.0, %v5616_v48  ;;  %v4335_v41 = vadd.f32 %v4303_v40, %v7132_v10  ;;  %v4118_v24 = vpop.f32.mrb[141].mxu1  ;;  %v4304_v52 = vmul.f32 %v4272_v33, %v7145_v11  ;;  %v7161_v44 = vadd.f32 %v5395_v34, %v7066_v20 }
 0x31d   : > { %v5620_v4 = vpop.eup %5619  ;;  %v4455_v62 = vmul.f32 %v4423_v37, %v4199_v51  ;;  %v4424_v12 = vadd.f32 1.0, %v5618_v21  ;;  %v4333_v26 = vadd.f32 %v4301_v53, %v7136_v13  ;;  %v5396_v1 = vpop.f32.mrb[142].mxu1  ;;  %v7168_v40 = vadd.f32 %v4118_v24, %v7060_v42 }
 0x31e   : > { %v4453_v3 = vmul.f32 %v4421_v32, %v4197_v35  ;;  %v4422_v63 = vadd.f32 1.0, %v5620_v4  ;;  %v4367_v39 = vmul.f32 0.7978846, %v4335_v41  ;;  %v4121_v55 = vpop.f32.mrb[143].mxu1  ;;  %v4336_v61 = vadd.f32 %v4304_v52, %v7145_v11 }
 0x31f   : > { %v4456_v38 = vmul.f32 %v4424_v12, %v4200_v60  ;;  %v4365_v27 = vmul.f32 0.7978846, %v4333_v26  ;;  %v4270_v35 = vmul.f32 %v4238_v29, %v7150_v19  ;;  %v4243_v49 = vmul.f32 0.044715, %v7161_v44 }
 0x320   : > { %v4550_v6 = vmax.f32 %v4453_v3, %v4455_v62  ;;  %v4454_v51 = vmul.f32 %v4422_v63, %v4198_v57  ;;  %5629 = vtanh.f32 %v4367_v39  ;;  %v4368_v2 = vmul.f32 0.7978846, %v4336_v61 }
 0x321   : > { %5631 = vtanh.f32 %v4365_v27  ;;  %v7171_v20 = vadd.f32 %v5396_v1, %v7068_v59  ;;  %v4302_v48 = vmul.f32 %v4270_v35, %v7150_v19  ;;  %v4275_v17 = vmul.f32 %v4243_v49, %v7161_v44 }
 0x322   : > { %v5622_v54 = vpop.eup %5621  ;;  %4566 = vst [vmem:[#allocation4] sm:$0xff] %v4550_v6  ;;  %v4551_v60 = vmax.f32 %v4454_v51, %v4456_v38  ;;  %v7176_v37 = vadd.f32 %v4121_v55, %v7062_v15  ;;  %v4202_v34 = vmul.f32 0.5, %v7126_v43  ;;  %5633 = vtanh.f32 %v4368_v2 }
 0x323   : > { %v5624_v57 = vpop.eup %5623  ;;  %v4427_v28 = vadd.f32 1.0, %v5622_v54  ;;  %v5399_v45 = vpop.f32.mrb[144].mxu1  ;;  %v4241_v42 = vmul.f32 0.044715, %v7168_v40  ;;  %v4207_v32 = vmul.f32 0.5, %v7132_v10  ;;  %v4334_v41 = vadd.f32 %v4302_v48, %v7150_v19 }
 0x324   : > { %4567 = vst [vmem:[#allocation4 + $0x8] sm:$0xff] %v4551_v60  ;;  %v4425_v53 = vadd.f32 1.0, %v5624_v57  ;;  %v4134_v21 = vpop.f32.mrb[145].mxu1  ;;  %v4307_v33 = vmul.f32 %v4275_v17, %v7161_v44  ;;  %v5626_v4 = vpop.eup %5625  ;;  %v4205_v62 = vmul.f32 0.5, %v7136_v13  ;;  %v4244_v43 = vmul.f32 0.044715, %v7171_v20 }
 0x325   : > { %v4459_v59 = vmul.f32 %v4427_v28, %v4203_v16  ;;  %v5400_v24 = vpop.f32.mrb[146].mxu1  ;;  %v4273_v12 = vmul.f32 %v4241_v42, %v7168_v40  ;;  %v5628_v1 = vpop.eup %5627  ;;  %v4428_v3 = vadd.f32 1.0, %v5626_v4  ;;  %v4366_v63 = vmul.f32 0.7978846, %v4334_v41 }
 0x326   : > { %v4457_v15 = vmul.f32 %v4425_v53, %v4201_v0  ;;  %v4137_v26 = vpop.f32.mrb[147].mxu1  ;;  %v4339_v16 = vadd.f32 %v4307_v33, %v7161_v44  ;;  %v4242_v10 = vmul.f32 0.044715, %v7176_v37  ;;  %v4426_v52 = vadd.f32 1.0, %v5628_v1 }
 0x327   : > { %v4305_v55 = vmul.f32 %v4273_v12, %v7168_v40  ;;  %v4276_v0 = vmul.f32 %v4244_v43, %v7171_v20  ;;  %v4460_v38 = vmul.f32 %v4428_v3, %v4204_v14  ;;  %5635 = vtanh.f32 %v4366_v63 }
 0x328   : > { %v4552_v39 = vmax.f32 %v4457_v15, %v4459_v59  ;;  %v4371_v13 = vmul.f32 0.7978846, %v4339_v16  ;;  %v4274_v27 = vmul.f32 %v4242_v10, %v7176_v37  ;;  %v4458_v6 = vmul.f32 %v4426_v52, %v4202_v34 }
 0x329   : > { %v4337_v51 = vadd.f32 %v4305_v55, %v7168_v40  ;;  %v4308_v61 = vmul.f32 %v4276_v0, %v7171_v20  ;;  %v7194_v35 = vadd.f32 %v5399_v45, %v7078_v30  ;;  %v7198_v14 = vadd.f32 %v4134_v21, %v7072_v25 }
 0x32a   : > { %v5630_v29 = vpop.eup %5629  ;;  %4568 = vst [vmem:[#allocation4 + $0x10] sm:$0xff] %v4552_v39  ;;  %5637 = vtanh.f32 %v4371_v13  ;;  %v4306_v60 = vmul.f32 %v4274_v27, %v7176_v37  ;;  %v4553_v57 = vmax.f32 %v4458_v6, %v4460_v38  ;;  %v4208_v33 = vmul.f32 0.5, %v7145_v11 }
 0x32b   : > { %v5632_v49 = vpop.eup %5631  ;;  %v4431_v54 = vadd.f32 1.0, %v5630_v29  ;;  %v5403_v2 = vpop.f32.mrb[148].mxu1  ;;  %v4369_v48 = vmul.f32 0.7978846, %v4337_v51  ;;  %v4340_v17 = vadd.f32 %v4308_v61, %v7171_v20  ;;  %v4247_v30 = vmul.f32 0.044715, %v7194_v35 }
 0x32c   : > { %v4429_v28 = vadd.f32 1.0, %v5632_v49  ;;  %v4150_v53 = vpop.f32.mrb[149].mxu1  ;;  %v4338_v42 = vadd.f32 %v4306_v60, %v7176_v37  ;;  %v5634_v59 = vpop.eup %5633  ;;  %4569 = vst [vmem:[#allocation4 + $0x18] sm:$0xff] %v4553_v57  ;;  %v4245_v43 = vmul.f32 0.044715, %v7198_v14  ;;  %v7207_v1 = vadd.f32 %v5400_v24, %v7080_v5 }
 0x32d   : > { %v4463_v34 = vmul.f32 %v4431_v54, %v4207_v32  ;;  %v5404_v45 = vpop.f32.mrb[150].mxu1  ;;  %5639 = vtanh.f32 %v4369_v48  ;;  %v4372_v25 = vmul.f32 0.7978846, %v4340_v17  ;;  %v4432_v4 = vadd.f32 1.0, %v5634_v59 }
 0x32e   : > { %v4461_v41 = vmul.f32 %v4429_v28, %v4205_v62  ;;  %v4153_v21 = vpop.f32.mrb[151].mxu1  ;;  %v4370_v15 = vmul.f32 0.7978846, %v4338_v42  ;;  %v4279_v12 = vmul.f32 %v4247_v30, %v7194_v35  ;;  %v7210_v3 = vadd.f32 %v4137_v26, %v7074_v31 }
 0x32f   : > { %5641 = vtanh.f32 %v4372_v25  ;;  %v4206_v62 = vmul.f32 0.5, %v7150_v19  ;;  %v4277_v63 = vmul.f32 %v4245_v43, %v7198_v14  ;;  %v4464_v16 = vmul.f32 %v4432_v4, %v4208_v33 }
 0x330   : > { %v4554_v32 = vmax.f32 %v4461_v41, %v4463_v34  ;;  %5643 = vtanh.f32 %v4370_v15  ;;  %v4311_v11 = vmul.f32 %v4279_v12, %v7194_v35  ;;  %v4211_v10 = vmul.f32 0.5, %v7161_v44 }
 0x331   : > { %v4248_v39 = vmul.f32 0.044715, %v7207_v1  ;;  %v4246_v52 = vmul.f32 0.044715, %v7210_v3  ;;  %v5636_v5 = vpop.eup %5635  ;;  %v4309_v31 = vmul.f32 %v4277_v63, %v7198_v14  ;;  %v7221_v19 = vadd.f32 %v5403_v2, %v7090_v9 }
 0x332   : > { %4570 = vst [vmem:[#allocation4 + $0x20] sm:$0xff] %v4554_v32  ;;  %v4343_v24 = vadd.f32 %v4311_v11, %v7194_v35  ;;  %v7224_v26 = vadd.f32 %v4150_v53, %v7084_v47  ;;  %v4430_v0 = vadd.f32 1.0, %v5636_v5  ;;  %v7229_v13 = vadd.f32 %v5404_v45, %v7092_v46 }
 0x333   : > { %v5407_v55 = vpop.f32.mrb[152].mxu1  ;;  %v4280_v38 = vmul.f32 %v4248_v39, %v7207_v1  ;;  %v4278_v44 = vmul.f32 %v4246_v52, %v7210_v3  ;;  %v4209_v6 = vmul.f32 0.5, %v7168_v40  ;;  %v4341_v9 = vadd.f32 %v4309_v31, %v7198_v14 }
 0x334   : > { %v4166_v27 = vpop.f32.mrb[153].mxu1  ;;  %v5638_v29 = vpop.eup %5637  ;;  %v4375_v51 = vmul.f32 0.7978846, %v4343_v24  ;;  %v4251_v61 = vmul.f32 0.044715, %v7221_v19  ;;  %v4462_v49 = vmul.f32 %v4430_v0, %v4206_v62  ;;  %v4212_v46 = vmul.f32 0.5, %v7171_v20 }
 0x335   : > { %v5408_v47 = vpop.f32.mrb[154].mxu1  ;;  %v4435_v54 = vadd.f32 1.0, %v5638_v29  ;;  %v4312_v60 = vmul.f32 %v4280_v38, %v7207_v1  ;;  %v4310_v2 = vmul.f32 %v4278_v44, %v7210_v3  ;;  %v4373_v28 = vmul.f32 0.7978846, %v4341_v9 }
 0x336   : > { %v7236_v57 = vpop.f32.mrb[155].mxu1  ;;  %5645 = vtanh.f32 %v4375_v51  ;;  %v4283_v40 = vmul.f32 %v4251_v61, %v7221_v19  ;;  %v4555_v17 = vmax.f32 %v4462_v49, %v4464_v16  ;;  %v4249_v59 = vmul.f32 0.044715, %v7224_v26 }
 0x337   : > { %v5640_v48 = vpop.eup %5639  ;;  %v4467_v53 = vmul.f32 %v4435_v54, %v4211_v10  ;;  %v4344_v34 = vadd.f32 %v4312_v60, %v7207_v1  ;;  %v4342_v42 = vadd.f32 %v4310_v2, %v7210_v3  ;;  %5647 = vtanh.f32 %v4373_v28 }
 0x338   : > { %v4433_v30 = vadd.f32 1.0, %v5640_v48  ;;  %v4315_v45 = vmul.f32 %v4283_v40, %v7221_v19  ;;  %4571 = vst [vmem:[#allocation4 + $0x28] sm:$0xff] %v4555_v17  ;;  %v4210_v20 = vmul.f32 0.5, %v7176_v37  ;;  %v7246_v4 = vadd.f32 %v4153_v21, %v7086_v18 }
 0x339   : > { %v5642_v41 = vpop.eup %5641  ;;  %v4376_v33 = vmul.f32 0.7978846, %v4344_v34  ;;  %v4374_v25 = vmul.f32 0.7978846, %v4342_v42  ;;  %v4281_v62 = vmul.f32 %v4249_v59, %v7224_v26  ;;  %v4215_v16 = vmul.f32 0.5, %v7194_v35 }
 0x33a   : > { %v5644_v15 = vpop.eup %5643  ;;  %v4465_v12 = vmul.f32 %v4433_v30, %v4209_v6  ;;  %v4436_v43 = vadd.f32 1.0, %v5642_v41  ;;  %v4347_v32 = vadd.f32 %v4315_v45, %v7221_v19  ;;  %v4252_v10 = vmul.f32 0.044715, %v7229_v13 }
 0x33b   : > { %v5411_v11 = vpop.f32.mrb[156].mxu1  ;;  %v4434_v63 = vadd.f32 1.0, %v5644_v15  ;;  %5649 = vtanh.f32 %v4376_v33  ;;  %v4313_v24 = vmul.f32 %v4281_v62, %v7224_v26  ;;  %v4250_v0 = vmul.f32 0.044715, %v7246_v4 }
 0x33c   : > { %v7252_v37 = vpop.f32.mrb[157].mxu1  ;;  %v4556_v39 = vmax.f32 %v4465_v12, %v4467_v53  ;;  %v4468_v52 = vmul.f32 %v4436_v43, %v4212_v46  ;;  %5651 = vtanh.f32 %v4374_v25  ;;  %v4379_v18 = vmul.f32 0.7978846, %v4347_v32 }
 0x33d   : > { %v7254_v21 = vpop.f32.mrb[158].mxu1  ;;  %v4466_v5 = vmul.f32 %v4434_v63, %v4210_v20  ;;  %v4284_v31 = vmul.f32 %v4252_v10, %v7229_v13  ;;  %v7262_v35 = vadd.f32 %v5407_v55, %v7102_v23  ;;  %v7265_v44 = vadd.f32 %v4166_v27, %v7096_v36 }
 0x33e   : > { %v7259_v38 = vpop.f32.mrb[159].mxu1  ;;  %4572 = vst [vmem:[#allocation4 + $0x30] sm:$0xff] %v4556_v39  ;;  %5653 = vtanh.f32 %v4379_v18  ;;  %v7268_v29 = vadd.f32 %v5408_v47, %v7104_v22  ;;  %v4345_v51 = vadd.f32 %v4313_v24, %v7224_v26  ;;  %v4282_v61 = vmul.f32 %v4250_v0, %v7246_v4  ;;  %v4582_v18 = vld [vmem:[#allocation4] ss:$2 sm:$0xff] }
 0x33f   : > { %v4557_v6 = vmax.f32 %v4466_v5, %v4468_v52  ;;  %v4316_v9 = vmul.f32 %v4284_v31, %v7229_v13  ;;  %v4213_v54 = vmul.f32 0.5, %v7198_v14  ;;  %v4216_v60 = vmul.f32 0.5, %v7207_v1  ;;  %v4598_v31 = vld [vmem:[#allocation4 + $0x1] ss:$2 sm:$0xff] }
 0x340   : > { %v5646_v49 = vpop.eup %5645  ;;  %v4255_v23 = vmul.f32 0.044715, %v7262_v35  ;;  %v4253_v36 = vmul.f32 0.044715, %v7265_v44  ;;  %v4377_v22 = vmul.f32 0.7978846, %v4345_v51  ;;  %v4314_v47 = vmul.f32 %v4282_v61, %v7246_v4 }
 0x341   : > { %4573 = vst [vmem:[#allocation4 + $0x38] sm:$0xff] %v4557_v6  ;;  %v4439_v55 = vadd.f32 1.0, %v5646_v49  ;;  %v4348_v27 = vadd.f32 %v4316_v9, %v7229_v13  ;;  %v5648_v2 = vpop.eup %5647  ;;  %v4214_v46 = vmul.f32 0.5, %v7210_v3  ;;  %v4256_v1 = vmul.f32 0.044715, %v7268_v29 }
 0x342   : > { %v4287_v28 = vmul.f32 %v4255_v23, %v7262_v35  ;;  %v4285_v14 = vmul.f32 %v4253_v36, %v7265_v44  ;;  %v4437_v48 = vadd.f32 1.0, %v5648_v2  ;;  %5655 = vtanh.f32 %v4377_v22  ;;  %v4584_v22 = vld [vmem:[#allocation4 + $0x10] ss:$2 sm:$0xff] }
 0x343   : > { %v4471_v40 = vmul.f32 %v4439_v55, %v4215_v16  ;;  %v4380_v17 = vmul.f32 0.7978846, %v4348_v27  ;;  %v4346_v53 = vadd.f32 %v4314_v47, %v7246_v4  ;;  %v4288_v30 = vmul.f32 %v4256_v1, %v7268_v29  ;;  %v4600_v27 = vld [vmem:[#allocation4 + $0x11] ss:$2 sm:$0xff]  ;;  %v4586_v1 = vld [vmem:[#allocation4 + $0x20] ss:$2 sm:$0xff] }
 0x344   : > { %v4319_v34 = vmul.f32 %v4287_v28, %v7262_v35  ;;  %v4317_v42 = vmul.f32 %v4285_v14, %v7265_v44  ;;  %v4469_v45 = vmul.f32 %v4437_v48, %v4213_v54  ;;  %v7289_v59 = vadd.f32 %v7236_v57, %v7098_v58 }
 0x345   : > { %v5650_v3 = vpop.eup %5649  ;;  %5657 = vtanh.f32 %v4380_v17  ;;  %v7292_v41 = vadd.f32 %v5411_v11, %v7116_v7  ;;  %v4378_v25 = vmul.f32 0.7978846, %v4346_v53  ;;  %v4219_v62 = vmul.f32 0.5, %v7221_v19  ;;  %v4602_v17 = vld [vmem:[#allocation4 + $0x21] ss:$2 sm:$0xff] }
 0x346   : > { %v5652_v20 = vpop.eup %5651  ;;  %v4440_v33 = vadd.f32 1.0, %v5650_v3  ;;  %v4351_v15 = vadd.f32 %v4319_v34, %v7262_v35  ;;  %v4349_v12 = vadd.f32 %v4317_v42, %v7265_v44  ;;  %v4558_v43 = vmax.f32 %v4469_v45, %v4471_v40 }
 0x347   : > { %v4438_v32 = vadd.f32 1.0, %v5652_v20  ;;  %v4320_v63 = vmul.f32 %v4288_v30, %v7268_v29  ;;  %5659 = vtanh.f32 %v4378_v25  ;;  %v4254_v52 = vmul.f32 0.044715, %v7289_v59 }
 0x348   : > { %v5654_v58 = vpop.eup %5653  ;;  %v4472_v57 = vmul.f32 %v4440_v33, %v4216_v60  ;;  %v4383_v7 = vmul.f32 0.7978846, %v4351_v15  ;;  %v4381_v11 = vmul.f32 0.7978846, %v4349_v12  ;;  %4574 = vst [vmem:[#allocation4 + $0x40] sm:$0xff] %v4558_v43  ;;  %v4217_v19 = vmul.f32 0.5, %v7224_v26 }
 0x349   : > { %v4470_v16 = vmul.f32 %v4438_v32, %v4214_v46  ;;  %v4443_v10 = vadd.f32 1.0, %v5654_v58  ;;  %v4352_v39 = vadd.f32 %v4320_v63, %v7268_v29  ;;  %v4259_v5 = vmul.f32 0.044715, %v7292_v41  ;;  %v4588_v48 = vld [vmem:[#allocation4 + $0x30] ss:$2 sm:$0xff] }
 0x34a   : > { %5661 = vtanh.f32 %v4383_v7  ;;  %v7309_v24 = vadd.f32 %v7252_v37, %v7108_v56  ;;  %v4220_v9 = vmul.f32 0.5, %v7229_v13  ;;  %v4286_v61 = vmul.f32 %v4254_v52, %v7289_v59  ;;  %v4604_v53 = vld [vmem:[#allocation4 + $0x31] ss:$2 sm:$0xff] }
 0x34b   : > { %v4559_v0 = vmax.f32 %v4470_v16, %v4472_v57  ;;  %v4475_v6 = vmul.f32 %v4443_v10, %v4219_v62  ;;  %5663 = vtanh.f32 %v4381_v11  ;;  %v4384_v51 = vmul.f32 0.7978846, %v4352_v39 }
 0x34c   : > { %v4291_v49 = vmul.f32 %v4259_v5, %v7292_v41  ;;  %v4257_v26 = vmul.f32 0.044715, %v7309_v24  ;;  %v5656_v54 = vpop.eup %5655  ;;  %v7317_v56 = vadd.f32 %v7254_v21, %v7120_v8  ;;  %v7321_v37 = vadd.f32 %v7259_v38, %v7112_v50 }
 0x34d   : > { %4575 = vst [vmem:[#allocation4 + $0x48] sm:$0xff] %v4559_v0  ;;  %5665 = vtanh.f32 %v4384_v51  ;;  %v4613_v60 = vmax.f32 %v4582_v18, %v4598_v31  ;;  %v4441_v13 = vadd.f32 1.0, %v5656_v54  ;;  %v4318_v23 = vmul.f32 %v4286_v61, %v7289_v59 }
 0x34e   : > { %v4323_v36 = vmul.f32 %v4291_v49, %v7292_v41  ;;  %v4289_v55 = vmul.f32 %v4257_v26, %v7309_v24  ;;  %v4218_v2 = vmul.f32 0.5, %v7246_v4  ;;  %v4223_v8 = vmul.f32 0.5, %v7262_v35 }
 0x34f   : > { %v5658_v47 = vpop.eup %5657  ;;  %v4260_v21 = vmul.f32 0.044715, %v7317_v56  ;;  %v4258_v50 = vmul.f32 0.044715, %v7321_v37  ;;  %4621 = vst [vmem:[%s7331_s14] sm:$0xff] %v4613_v60  ;;  %v4473_v38 = vmul.f32 %v4441_v13, %v4217_v19  ;;  %v4350_v28 = vadd.f32 %v4318_v23, %v7289_v59 }
 0x350   : > { %v4444_v46 = vadd.f32 1.0, %v5658_v47  ;;  %v4355_v14 = vadd.f32 %v4323_v36, %v7292_v41  ;;  %v4321_v40 = vmul.f32 %v4289_v55, %v7309_v24  ;;  %v4614_v34 = vmax.f32 %v4584_v22, %v4600_v27 }
 0x351   : > { %v4292_v4 = vmul.f32 %v4260_v21, %v7317_v56  ;;  %v4290_v35 = vmul.f32 %v4258_v50, %v7321_v37  ;;  %v5660_v42 = vpop.eup %5659  ;;  %v4560_v30 = vmax.f32 %v4473_v38, %v4475_v6  ;;  %v4382_v45 = vmul.f32 0.7978846, %v4350_v28 }
 0x352   : > { %v4476_v3 = vmul.f32 %v4444_v46, %v4220_v9  ;;  %v4387_v20 = vmul.f32 0.7978846, %v4355_v14  ;;  %v4442_v33 = vadd.f32 1.0, %v5660_v42  ;;  %v4353_v25 = vadd.f32 %v4321_v40, %v7309_v24  ;;  %4622 = vst [vmem:[%s7331_s14 + $0x8] sm:$0xff] %v4614_v34 }
 0x353   : > { %v4324_v15 = vmul.f32 %v4292_v4, %v7317_v56  ;;  %v4322_v12 = vmul.f32 %v4290_v35, %v7321_v37  ;;  %4576 = vst [vmem:[#allocation4 + $0x50] sm:$0xff] %v4560_v30  ;;  %v4221_v32 = vmul.f32 0.5, %v7265_v44  ;;  %5667 = vtanh.f32 %v4382_v45 }
 0x354   : > { %v5662_v43 = vpop.eup %5661  ;;  %v4590_v62 = vld [vmem:[#allocation4 + $0x40] ss:$2 sm:$0xff]  ;;  %v4606_v63 = vld [vmem:[#allocation4 + $0x41] ss:$2 sm:$0xff]  ;;  %v4615_v58 = vmax.f32 %v4586_v1, %v4602_v17  ;;  %v4616_v57 = vmax.f32 %v4588_v48, %v4604_v53  ;;  %v4474_v11 = vmul.f32 %v4442_v33, %v4218_v2  ;;  %5669 = vtanh.f32 %v4387_v20 }
 0x355   : > { %v5664_v7 = vpop.eup %5663  ;;  %v4447_v16 = vadd.f32 1.0, %v5662_v43  ;;  %v4385_v10 = vmul.f32 0.7978846, %v4353_v25  ;;  %v4356_v52 = vadd.f32 %v4324_v15, %v7317_v56  ;;  %v4354_v18 = vadd.f32 %v4322_v12, %v7321_v37 }
 0x356   : > { %v4445_v39 = vadd.f32 1.0, %v5664_v7  ;;  %v4617_v19 = vmax.f32 %v4590_v62, %v4606_v63  ;;  %4623 = vst [vmem:[%s7331_s14 + $0x10] sm:$0xff] %v4615_v58  ;;  %4624 = vst [vmem:[%s7331_s14 + $0x18] sm:$0xff] %v4616_v57  ;;  %v4561_v5 = vmax.f32 %v4474_v11, %v4476_v3  ;;  %v4224_v0 = vmul.f32 0.5, %v7268_v29 }
 0x357   : > { %v5666_v44 = vpop.eup %5665  ;;  %v4479_v31 = vmul.f32 %v4447_v16, %v4223_v8  ;;  %5671 = vtanh.f32 %v4385_v10  ;;  %v4388_v9 = vmul.f32 0.7978846, %v4356_v52  ;;  %v4386_v61 = vmul.f32 0.7978846, %v4354_v18 }
 0x358   : > { %v4477_v6 = vmul.f32 %v4445_v39, %v4221_v32  ;;  %v4448_v51 = vadd.f32 1.0, %v5666_v44  ;;  %4625 = vst [vmem:[%s7331_s14 + $0x20] sm:$0xff] %v4617_v19  ;;  %4577 = vst [vmem:[#allocation4 + $0x58] sm:$0xff] %v4561_v5  ;;  %v4222_v13 = vmul.f32 0.5, %v7289_v59  ;;  %v4227_v29 = vmul.f32 0.5, %v7292_v41 }
 0x359   : > { %5673 = vtanh.f32 %v4388_v9  ;;  %v4225_v21 = vmul.f32 0.5, %v7309_v24  ;;  %v4228_v59 = vmul.f32 0.5, %v7317_v56  ;;  %v4226_v40 = vmul.f32 0.5, %v7321_v37 }
 0x35a   : > { %v4562_v49 = vmax.f32 %v4477_v6, %v4479_v31  ;;  %v4480_v26 = vmul.f32 %v4448_v51, %v4224_v0  ;;  %5675 = vtanh.f32 %v4386_v61 }
 0x35c   : > { %4578 = vst [vmem:[#allocation4 + $0x60] sm:$0xff] %v4562_v49 }
 0x35d   : > { %v5668_v54 = vpop.eup %5667 }
 0x35e   : > { %v5670_v60 = vpop.eup %5669  ;;  %v4446_v23 = vadd.f32 1.0, %v5668_v54 }
 0x35f   : > { %v4451_v36 = vadd.f32 1.0, %v5670_v60  ;;  %v4592_v55 = vld [vmem:[#allocation4 + $0x50] ss:$2 sm:$0xff]  ;;  %v4608_v22 = vld [vmem:[#allocation4 + $0x51] ss:$2 sm:$0xff] }
 0x360   : > { %v4478_v47 = vmul.f32 %v4446_v23, %v4222_v13  ;;  %v4618_v2 = vmax.f32 %v4592_v55, %v4608_v22 }
 0x361   : > { %v5672_v27 = vpop.eup %5671  ;;  %v4483_v8 = vmul.f32 %v4451_v36, %v4227_v29 }
 0x362   : > { %v4449_v50 = vadd.f32 1.0, %v5672_v27  ;;  %v4563_v38 = vmax.f32 %v4478_v47, %v4480_v26  ;;  %4626 = vst [vmem:[%s7331_s14 + $0x28] sm:$0xff] %v4618_v2 }
 0x363   : > { %v5674_v46 = vpop.eup %5673 }
 0x364   : > { %v4481_v28 = vmul.f32 %v4449_v50, %v4225_v21  ;;  %v5676_v14 = vpop.eup %5675  ;;  %4579 = vst [vmem:[#allocation4 + $0x68] sm:$0xff] %v4563_v38  ;;  %v4452_v41 = vadd.f32 1.0, %v5674_v46 }
 0x365   : > { %v4450_v4 = vadd.f32 1.0, %v5676_v14 }
 0x366   : > { %v4564_v1 = vmax.f32 %v4481_v28, %v4483_v8  ;;  %v4484_v35 = vmul.f32 %v4452_v41, %v4228_v59 }
 0x367   : > { %v4482_v24 = vmul.f32 %v4450_v4, %v4226_v40 }
 0x368   : > { %4580 = vst [vmem:[#allocation4 + $0x70] sm:$0xff] %v4564_v1 }
 0x369   : > { %v4565_v48 = vmax.f32 %v4482_v24, %v4484_v35 }
 0x36b   : > { %4581 = vst [vmem:[#allocation4 + $0x78] sm:$0xff] %v4565_v48  ;;  %v4594_v17 = vld [vmem:[#allocation4 + $0x60] ss:$2 sm:$0xff]  ;;  %v4610_v53 = vld [vmem:[#allocation4 + $0x61] ss:$2 sm:$0xff] }
 0x36c   : > { %v4619_v34 = vmax.f32 %v4594_v17, %v4610_v53 }
 0x36e   : > { %4627 = vst [vmem:[%s7331_s14 + $0x30] sm:$0xff] %v4619_v34 }
 0x372   : > { %v4596_v56 = vld [vmem:[#allocation4 + $0x70] ss:$2 sm:$0xff]  ;;  %v4612_v42 = vld [vmem:[#allocation4 + $0x71] ss:$2 sm:$0xff] }
 0x373   : > { %v4620_v37 = vmax.f32 %v4596_v56, %v4612_v42 }
 0x375   : > { %4628 = vst [vmem:[%s7331_s14 + $0x38] sm:$0xff] %v4620_v37 }
 0x376   : > { %5693 = shalt.err (!%p5690_p3)
}
 0x377   : > { %s5694_s8 = scalar_lea.hbm %s7362_s25, 1024  ;;  %s5698_s11 = scalar_lea.hbm %s7415_s5, 2048 }
 0x378   : > { %p5695_p4 = scmp.ne.s32.totalorder %s7362_s25, %s5694_s8  ;;  %p5699_p9 = scmp.lt.u32.totalorder %s7362_s25, %s7415_s5 }
 0x379   : > { %p5700_p10 = scmp.lt.u32.totalorder %s5698_s11, %s5694_s8  ;;  %p5702_p12 = scmp.lt.u32.totalorder %s5694_s8, %s7362_s25 }
 0x37a   : > { %p5696_p7 = pnand %p5695_p4, %p5816_p5 }
 0x37b   : > { %p5701_p11 = por %p5700_p10, %p5699_p9 }
 0x37c   : > { %p5697_p8 = pneg %p5696_p7 }
 0x37d   : > { %p5703_p13 = por %p5702_p12, %p5701_p11 }
 0x37f   : > { %p5704_p0 = pnand %p5703_p13, %p5697_p8 }
 0x381   : > { %5707 = shalt.err (!%p5704_p0)
}
 0x382   : > { %s5746_s14 = smov 128   ;;  %s5747_s15 = smov 8  }
 0x383   : > { %5414 = dma.vmem_to_hbm [thread:$0]  (%p5816_p5), %s7364_s16, 1024, %s7362_s25, %s7369_s26, %s5746_s14, %s5746_s14, %s5747_s15  }
 0x384 PF: > { %p5420_p1 = scmp.ge.s32.totalorder %s5742_s21, 2  ;;  %s4658_s17 = sand.u32 1, %s5730_s18  }
 0x385   : > { %s4659_s23 = scalar_lea.sflag [#allocation6], %s4658_s17 }
 0x386   : > { %p5417_p2 = pnand %p5420_p1, %p5820_p6 }
 0x388   : > { %5725 = dma.done.wait (!%p5417_p2), %s4659_s23, 1024  }
 0x389   : > { %5727 = vsyncadd (!%p5417_p2), %s4659_s23, 4294966272  ;;  %p15_p3 = scmp.ge.s32.totalorder %s5803_s24, 4   ;;  %s7433_s18 = smov %s5734_s19 }
 0x38a   : > { %s7434_s19 = smov %s5738_s20  ;;  %s7435_s20 = smov %s5814_s27 }
 0x38b   : > { %s7436_s21 = smov %s5803_s24  ;;  %17 = sbr.rel (!%p15_p3) target bundleno = 3 (0x3), region = 94 }
 0x392   :  { %4664 = vsyncpa [#allocation6], 1 }
 0x393   :  { %4666 = vsyncpa [#allocation6 + $0x1], 1 }

</bundles_post_ra>
